<compile_context>
chip_gen: v7x
topology: tpu7x:2x2x1
jax: 0.10.0
libtpu: 0.0.40
codegen_flags: <defaults>
</compile_context>

<pallas_src>
import math
import functools

import jax
import jax.numpy as jnp
from jax.experimental import pallas as pl
from jax.experimental.pallas import tpu as pltpu


def _round_up(x, m):
    return ((x + m - 1) // m) * m


def _pad_gate_cols(a, H, Hp):
    """Pad a gate-blocked (..., 3H) array to (..., 3*Hp), per-gate zero padding."""
    if H == Hp:
        return a
    widths = [(0, 0)] * (a.ndim - 1) + [(0, Hp - H)]
    return jnp.concatenate(
        [jnp.pad(a[..., g * H:(g + 1) * H], widths) for g in range(3)], axis=-1)


def _gru_recurrence_kernel(gx_ref, h0_ref, wh_ref, bhn_ref, outs_ref, hN_ref,
                           h_scr, *, hidden, hidden_pad, tt, seq_len, seq_pad,
                           norm_h, compute_dtype):
    """GRU recurrence over TT timesteps per grid step (grid axis 0 = time blocks)."""
    blk = pl.program_id(0)
    Hp = hidden_pad

    @pl.when(blk == 0)
    def _():
        h_scr[...] = h0_ref[...].astype(jnp.float32)

    wh = wh_ref[...]                          # (Hp, 3*Hp), compute dtype (resident)
    bh_n = bhn_ref[...].astype(jnp.float32)   # (1, Hp)
    h = h_scr[...]                            # (Bp, Hp) f32 carried state

    need_tail_mask = (seq_pad != seq_len)

    # Statically-unrolled time loop over the TT timesteps of this block.
    for i in range(tt):
        gx = gx_ref[i].astype(jnp.float32)    # (Bp, 3*Hp); bx + bh_{r,i} folded in
        gh = jnp.dot(h.astype(compute_dtype), wh,
                     preferred_element_type=jnp.float32)     # (Bp, 3*Hp)

        i_r, i_i, i_n = gx[:, :Hp], gx[:, Hp:2 * Hp], gx[:, 2 * Hp:]
        h_r, h_i, h_n = gh[:, :Hp], gh[:, Hp:2 * Hp], gh[:, 2 * Hp:]

        resetgate = jax.nn.sigmoid(i_r + h_r)
        inputgate = jax.nn.sigmoid(i_i + h_i)
        newgate = jnp.tanh(i_n + resetgate * (h_n + bh_n))
        hy = newgate + inputgate * (h - newgate)

        if norm_h:
            # softmax over the *real* hidden columns only (padding masked out);
            # the divide goes through the EUP reciprocal slot (free vs VALU).
            col = jax.lax.broadcasted_iota(jnp.int32, hy.shape, 1)
            masked = jnp.where(col < hidden, hy, -1e30)
            m = jnp.max(masked, axis=-1, keepdims=True)
            e = jnp.exp(masked - m)
            denom = jnp.sum(e, axis=-1, keepdims=True)
            hy = 2.0 * (e * pl.reciprocal(denom, approx=True)) - 1.0

        if need_tail_mask:
            # Freeze the state on padded timesteps (T was rounded up to TT).
            hy = jnp.where(blk * tt + i < seq_len, hy, h)

        h = hy
        outs_ref[i] = hy.astype(outs_ref.dtype)   # lane-dense (Bp, Hp) store

    h_scr[...] = h

    @pl.when(blk == pl.num_programs(0) - 1)
    def _():
        hN_ref[...] = h.astype(hN_ref.dtype)


# Flipped to False if pl.Buffered(1) is rejected by this JAX/backend.
_SINGLE_BUFFER_OK = [True]


def gru_layer(x, h0, wx, bx, wh, bh, *, norm_h=False,
              compute_dtype=jnp.bfloat16, out_dtype=jnp.float32, tt=16):
    """One GRU layer over sequence x.

    x: (T, B, D)   h0: (B, H)
    wx: (D, 3H)  bx: (3H,)  wh: (H, 3H)  bh: (3H,)   (weights = torch Linear W^T)
    returns outs (T, B, H) in out_dtype, h_last (B, H) f32.
    """
    T, B, D = x.shape
    H = h0.shape[-1]
    Bp = _round_up(B, 8)
    Hp = _round_up(H, 128)
    tt = max(1, min(tt, T))
    Tp = _round_up(T, tt)

    # ---- hoisted input projection: one big batched matmul (bf16 x bf16 -> f32).
    # bx and the r/i components of bh are folded in; bh_n stays separate because
    # it is multiplied by the resetgate inside the cell.
    bias = jnp.concatenate([bx[:2 * H] + bh[:2 * H], bx[2 * H:]])
    gx = jnp.dot(x.reshape(T * B, D).astype(compute_dtype),
                 wx.astype(compute_dtype),
                 preferred_element_type=jnp.float32) + bias
    gx = gx.reshape(T, B, 3 * H)

    # ---- pad to the (8, 128) vreg tile (per gate along the 3H axis).
    gx = _pad_gate_cols(gx, H, Hp)
    gx = jnp.pad(gx, ((0, Tp - T), (0, Bp - B), (0, 0)))
    h0_p = jnp.pad(h0.astype(jnp.float32), ((0, Bp - B), (0, Hp - H)))
    wh_p = _pad_gate_cols(jnp.pad(wh, ((0, Hp - H), (0, 0))), H, Hp)
    wh_p = wh_p.astype(compute_dtype)
    bhn_p = jnp.pad(bh[2 * H:], (0, Hp - H)).reshape(1, Hp).astype(jnp.float32)

    kernel = functools.partial(
        _gru_recurrence_kernel, hidden=H, hidden_pad=Hp, tt=tt,
        seq_len=T, seq_pad=Tp, norm_h=norm_h, compute_dtype=compute_dtype)

    def _build(single_buffer):
        def const_spec(shape):
            idx = lambda i: (0,) * len(shape)
            if single_buffer:
                # Time-invariant operands: single VMEM buffer (no double buffering).
                return pl.BlockSpec(shape, idx, pipeline_mode=pl.Buffered(1))
            return pl.BlockSpec(shape, idx)

        return pl.pallas_call(
            kernel,
            out_shape=(
                jax.ShapeDtypeStruct((Tp, Bp, Hp), out_dtype),
                jax.ShapeDtypeStruct((Bp, Hp), jnp.float32),
            ),
            grid_spec=pltpu.PrefetchScalarGridSpec(
                num_scalar_prefetch=0,
                grid=(Tp // tt,),
                in_specs=[
                    pl.BlockSpec((tt, Bp, 3 * Hp), lambda i: (i, 0, 0)),  # gate_x
                    const_spec((Bp, Hp)),            # h0
                    const_spec((Hp, 3 * Hp)),        # Wh (resident)
                    const_spec((1, Hp)),             # bh_n
                ],
                out_specs=[
                    pl.BlockSpec((tt, Bp, Hp), lambda i: (i, 0, 0)),      # outs block
                    pl.BlockSpec((Bp, Hp), lambda i: (0, 0)),             # final hidden
                ],
                scratch_shapes=[pltpu.VMEM((Bp, Hp), jnp.float32)],       # carried h
            ),
            compiler_params=pltpu.CompilerParams(
                dimension_semantics=("arbitrary",),          # time is sequential
                vmem_limit_bytes=32 * 1024 * 1024,
            ),
        )

    args = (gx, h0_p, wh_p, bhn_p)
    outs_p = h_last_p = None
    if _SINGLE_BUFFER_OK[0]:
        try:
            outs_p, h_last_p = _build(True)(*args)
        except Exception:
            # pl.Buffered(1) not supported here -> fall back to default buffering.
            _SINGLE_BUFFER_OK[0] = False
    if outs_p is None:
        outs_p, h_last_p = _build(False)(*args)

    return outs_p[:T, :B, :H], h_last_p[:B, :H]


class GRUModelPallas:
    """Mirror of the PyTorch GRUModel forward (stacked GRU cells)."""

    def __init__(self, input_dim, hidden_dim, layer_dim=1, bias=True,
                 norm_h=False, key=None, compute_dtype=jnp.bfloat16):
        self.input_dim = input_dim
        self.hidden_dim = hidden_dim
        self.layer_dim = layer_dim
        self.norm_h = norm_h
        self.compute_dtype = compute_dtype
        if key is None:
            key = jax.random.PRNGKey(0)
        std = 1.0 / math.sqrt(hidden_dim)
        self.params = []
        in_dim = input_dim
        for _ in range(layer_dim):
            key, k1, k2, k3, k4 = jax.random.split(key, 5)
            # uniform(-std, std), same as GRUCell.reset_parameters.
            # Weights stored as (in_features, 3H) == transpose of torch Linear weight.
            wx = jax.random.uniform(k1, (in_dim, 3 * hidden_dim), jnp.float32, -std, std)
            wh = jax.random.uniform(k3, (hidden_dim, 3 * hidden_dim), jnp.float32, -std, std)
            if bias:
                bx = jax.random.uniform(k2, (3 * hidden_dim,), jnp.float32, -std, std)
                bh = jax.random.uniform(k4, (3 * hidden_dim,), jnp.float32, -std, std)
            else:
                bx = jnp.zeros((3 * hidden_dim,), jnp.float32)
                bh = jnp.zeros((3 * hidden_dim,), jnp.float32)
            self.params.append((wx, bx, wh, bh))
            in_dim = hidden_dim

    def __call__(self, x, hx=None):
        # x: (T, B, input_dim)
        T, B, _ = x.shape
        if hx is None:
            h0 = jnp.zeros((self.layer_dim, B, self.hidden_dim), jnp.float32)
        else:
            h0 = hx
        # Per-timestep layer interleaving in the PyTorch loop is equivalent to
        # running each layer over the full sequence, feeding its outputs onward.
        # TODO(synk): fuse all layers into one kernel when the stacked Wh set fits
        # VMEM (removes the inter-layer HBM round trip); for now intermediate layer
        # activations are emitted in bf16 to halve that traffic.
        layer_in = x
        hidden_finals = []
        outs = None
        for layer in range(self.layer_dim):
            wx, bx, wh, bh = self.params[layer]
            last = (layer == self.layer_dim - 1)
            outs, h_last = gru_layer(
                layer_in, h0[layer], wx, bx, wh, bh,
                norm_h=self.norm_h, compute_dtype=self.compute_dtype,
                out_dtype=jnp.float32 if last else self.compute_dtype)
            hidden_finals.append(h_last)
            layer_in = outs
        hidden = jnp.stack(hidden_finals, axis=0)   # (layer_dim, B, H)
        return outs, hidden


def _gru_reference(x, h0, params, norm_h):
    """Pure-JAX f32 reference of the PyTorch forward, for a sanity check."""
    T, B, _ = x.shape
    layer_dim = len(params)
    hidden = [h0[l] for l in range(layer_dim)]
    outs = []
    for t in range(T):
        for layer in range(layer_dim):
            wx, bx, wh, bh = params[layer]
            inp = x[t] if layer == 0 else hidden[layer - 1]
            gx = inp @ wx + bx
            gh = hidden[layer] @ wh + bh
            H = hidden[layer].shape[-1]
            i_r, i_i, i_n = gx[:, :H], gx[:, H:2 * H], gx[:, 2 * H:]
            h_r, h_i, h_n = gh[:, :H], gh[:, H:2 * H], gh[:, 2 * H:]
            r = jax.nn.sigmoid(i_r + h_r)
            z = jax.nn.sigmoid(i_i + h_i)
            n = jnp.tanh(i_n + r * h_n)
            hy = n + z * (hidden[layer] - n)
            if norm_h:
                hy = 2.0 * jax.nn.softmax(hy, axis=-1) - 1.0
            hidden[layer] = hy
        outs.append(hidden[-1])
    return jnp.stack(outs, 0), jnp.stack(hidden, 0)


if __name__ == "__main__":
    T, B, D, H = 8, 2, 16, 32
    key = jax.random.PRNGKey(0)
    kx, km1, km2 = jax.random.split(key, 3)
    x = jax.random.normal(kx, (T, B, D), jnp.float32)

    # Tolerances: structural bugs produce O(1) errors; the slack only needs to
    # cover TPU matmul precision-default differences (O(1e-2)) and bf16 compute.

    # --- check 1: f32 compute path, single layer, no norm_h.
    model_f32 = GRUModelPallas(D, H, layer_dim=1, bias=True, norm_h=False,
                               key=km1, compute_dtype=jnp.float32)
    outs, hidden = model_f32(x)
    outs = jax.block_until_ready(outs)
    hidden = jax.block_until_ready(hidden)
    h0 = jnp.zeros((1, B, H), jnp.float32)
    ref_outs, ref_hidden = _gru_reference(x, h0, model_f32.params, False)
    assert outs.shape == (T, B, H) and hidden.shape == (1, B, H)
    assert jnp.max(jnp.abs(outs - ref_outs)) < 2e-2
    assert jnp.max(jnp.abs(hidden - ref_hidden)) < 2e-2

    # --- check 2: optimized bf16 path, 2 layers, norm_h=True, and a sequence
    #     length (20) that is not a multiple of the 16-step time block
    #     (exercises the tail-masking path and the multi-block grid).
    T2 = 20
    x2 = jax.random.normal(kx, (T2, B, D), jnp.float32)
    model_bf16 = GRUModelPallas(D, H, layer_dim=2, bias=True, norm_h=True,
                                key=km2, compute_dtype=jnp.bfloat16)
    outs2, hidden2 = model_bf16(x2)
    outs2 = jax.block_until_ready(outs2)
    hidden2 = jax.block_until_ready(hidden2)
    h0_2 = jnp.zeros((2, B, H), jnp.float32)
    ref_outs2, ref_hidden2 = _gru_reference(x2, h0_2, model_bf16.params, True)
    assert outs2.shape == (T2, B, H) and hidden2.shape == (2, B, H)
    assert jnp.max(jnp.abs(outs2 - ref_outs2)) < 5e-2
    assert jnp.max(jnp.abs(hidden2 - ref_hidden2)) < 5e-2

    print("KERNEL_OK")
</pallas_src>

<mosaic_0001>
module attributes {stable_mosaic.version = 11 : i64} {
  func.func @_gru_recurrence_kernel(%arg0: i32, %arg1: memref<8x8x384xf32, #tpu.memory_space<vmem>>, %arg2: memref<8x128xf32, #tpu.memory_space<vmem>>, %arg3: memref<128x384xf32, #tpu.memory_space<vmem>>, %arg4: memref<1x128xf32, #tpu.memory_space<vmem>>, %arg5: memref<8x8x128xf32, #tpu.memory_space<vmem>>, %arg6: memref<8x128xf32, #tpu.memory_space<vmem>>, %arg7: memref<8x128xf32, #tpu.memory_space<vmem>>) attributes {dimension_semantics = [#tpu.dimension_semantics<arbitrary>], iteration_bounds = array<i64: 1>, scalar_prefetch = 0 : i64, scratch_operands = 1 : i64, tpu.core_type = #tpu.core_type<tc>, window_params = [{transform_indices = @transform_0, window_bounds = array<i64: 8, 8, 384>}, {pipeline_mode = #tpu.pipeline_mode<synchronous>, transform_indices = @transform_1, window_bounds = array<i64: 8, 128>}, {pipeline_mode = #tpu.pipeline_mode<synchronous>, transform_indices = @transform_2, window_bounds = array<i64: 128, 384>}, {pipeline_mode = #tpu.pipeline_mode<synchronous>, transform_indices = @transform_3, window_bounds = array<i64: 1, 128>}, {transform_indices = @transform_4, window_bounds = array<i64: 8, 8, 128>}, {pipeline_mode = #tpu.pipeline_mode<synchronous>, transform_indices = @transform_5, window_bounds = array<i64: 8, 128>}]} {
    %c0_i32 = arith.constant 0 : i32
    %0 = arith.cmpi eq, %arg0, %c0_i32 : i32
    %1 = arith.extui %0 : i1 to i32
    %c0_i32_0 = arith.constant 0 : i32
    %2 = arith.cmpi ne, %1, %c0_i32_0 : i32
    scf.if %2 {
      %c0_74 = arith.constant 0 : index
      %c0_75 = arith.constant 0 : index
      %266 = vector.load %arg2[%c0_74, %c0_75] : memref<8x128xf32, #tpu.memory_space<vmem>>, vector<8x128xf32>
      %c0_76 = arith.constant 0 : index
      %c0_77 = arith.constant 0 : index
      %267 = vector.load %arg7[%c0_76, %c0_77] : memref<8x128xf32, #tpu.memory_space<vmem>>, vector<8x128xf32>
      tpu.vector_store %arg7[%c0_76, %c0_77], %266 {strides = array<i32>} : memref<8x128xf32, #tpu.memory_space<vmem>>, vector<8x128xf32>,
    } else {
    }
    %c0 = arith.constant 0 : index
    %c0_1 = arith.constant 0 : index
    %3 = vector.load %arg3[%c0, %c0_1] : memref<128x384xf32, #tpu.memory_space<vmem>>, vector<128x384xf32>
    %c0_2 = arith.constant 0 : index
    %c0_3 = arith.constant 0 : index
    %4 = vector.load %arg4[%c0_2, %c0_3] : memref<1x128xf32, #tpu.memory_space<vmem>>, vector<1x128xf32>
    %c0_4 = arith.constant 0 : index
    %c0_5 = arith.constant 0 : index
    %5 = vector.load %arg7[%c0_4, %c0_5] : memref<8x128xf32, #tpu.memory_space<vmem>>, vector<8x128xf32>
    %c0_6 = arith.constant 0 : index
    %c0_7 = arith.constant 0 : index
    %c0_8 = arith.constant 0 : index
    %6 = vector.load %arg1[%c0_6, %c0_7, %c0_8] : memref<8x8x384xf32, #tpu.memory_space<vmem>>, vector<1x8x384xf32>
    %7 = vector.shape_cast %6 : vector<1x8x384xf32> to vector<8x384xf32>
    %cst = arith.constant dense<0.000000e+00> : vector<8x384xf32>
    %8 = tpu.matmul %5, %3, %cst {dimension_numbers = #tpu.dot_dimension_numbers<[1], [0], [0], [1], [0, 0, 1, 1], [], []>} : vector<8x128xf32>, vector<128x384xf32>, vector<8x384xf32> -> vector<8x384xf32>
    %9 = vector.extract_strided_slice %7 {offsets = [0, 0], sizes = [8, 128], strides = [1, 1]} : vector<8x384xf32> to vector<8x128xf32>
    %10 = vector.extract_strided_slice %7 {offsets = [0, 128], sizes = [8, 128], strides = [1, 1]} : vector<8x384xf32> to vector<8x128xf32>
    %11 = vector.extract_strided_slice %7 {offsets = [0, 256], sizes = [8, 128], strides = [1, 1]} : vector<8x384xf32> to vector<8x128xf32>
    %12 = vector.extract_strided_slice %8 {offsets = [0, 0], sizes = [8, 128], strides = [1, 1]} : vector<8x384xf32> to vector<8x128xf32>
    %13 = vector.extract_strided_slice %8 {offsets = [0, 128], sizes = [8, 128], strides = [1, 1]} : vector<8x384xf32> to vector<8x128xf32>
    %14 = vector.extract_strided_slice %8 {offsets = [0, 256], sizes = [8, 128], strides = [1, 1]} : vector<8x384xf32> to vector<8x128xf32>
    %15 = arith.addf %9, %12 : vector<8x128xf32>
    %16 = arith.negf %15 : vector<8x128xf32>
    %17 = math.exp %16 : vector<8x128xf32>
    %cst_9 = arith.constant 1.000000e+00 : f32
    %18 = vector.broadcast %cst_9 : f32 to vector<8x128xf32>
    %19 = arith.addf %18, %17 : vector<8x128xf32>
    %20 = arith.divf %18, %19 : vector<8x128xf32>
    %21 = arith.addf %10, %13 : vector<8x128xf32>
    %22 = arith.negf %21 : vector<8x128xf32>
    %23 = math.exp %22 : vector<8x128xf32>
    %cst_10 = arith.constant 1.000000e+00 : f32
    %24 = vector.broadcast %cst_10 : f32 to vector<8x128xf32>
    %25 = arith.addf %24, %23 : vector<8x128xf32>
    %26 = arith.divf %24, %25 : vector<8x128xf32>
    %27 = vector.broadcast %4 : vector<1x128xf32> to vector<8x128xf32>
    %28 = arith.addf %14, %27 : vector<8x128xf32>
    %29 = arith.mulf %20, %28 : vector<8x128xf32>
    %30 = arith.addf %11, %29 : vector<8x128xf32>
    %31 = math.tanh %30 : vector<8x128xf32>
    %32 = arith.subf %5, %31 : vector<8x128xf32>
    %33 = arith.mulf %26, %32 : vector<8x128xf32>
    %34 = arith.addf %31, %33 : vector<8x128xf32>
    %c0_11 = arith.constant 0 : index
    %c0_12 = arith.constant 0 : index
    %c0_13 = arith.constant 0 : index
    %35 = vector.load %arg5[%c0_11, %c0_12, %c0_13] : memref<8x8x128xf32, #tpu.memory_space<vmem>>, vector<1x8x128xf32>
    %36 = vector.shape_cast %35 : vector<1x8x128xf32> to vector<8x128xf32>
    %37 = vector.shape_cast %34 : vector<8x128xf32> to vector<1x8x128xf32>
    tpu.vector_store %arg5[%c0_11, %c0_12, %c0_13], %37 {strides = array<i32>} : memref<8x8x128xf32, #tpu.memory_space<vmem>>, vector<1x8x128xf32>,
    %c1 = arith.constant 1 : index
    %c0_14 = arith.constant 0 : index
    %c0_15 = arith.constant 0 : index
    %38 = vector.load %arg1[%c1, %c0_14, %c0_15] : memref<8x8x384xf32, #tpu.memory_space<vmem>>, vector<1x8x384xf32>
    %39 = vector.shape_cast %38 : vector<1x8x384xf32> to vector<8x384xf32>
    %cst_16 = arith.constant dense<0.000000e+00> : vector<8x384xf32>
    %40 = tpu.matmul %34, %3, %cst_16 {dimension_numbers = #tpu.dot_dimension_numbers<[1], [0], [0], [1], [0, 0, 1, 1], [], []>} : vector<8x128xf32>, vector<128x384xf32>, vector<8x384xf32> -> vector<8x384xf32>
    %41 = vector.extract_strided_slice %39 {offsets = [0, 0], sizes = [8, 128], strides = [1, 1]} : vector<8x384xf32> to vector<8x128xf32>
    %42 = vector.extract_strided_slice %39 {offsets = [0, 128], sizes = [8, 128], strides = [1, 1]} : vector<8x384xf32> to vector<8x128xf32>
    %43 = vector.extract_strided_slice %39 {offsets = [0, 256], sizes = [8, 128], strides = [1, 1]} : vector<8x384xf32> to vector<8x128xf32>
    %44 = vector.extract_strided_slice %40 {offsets = [0, 0], sizes = [8, 128], strides = [1, 1]} : vector<8x384xf32> to vector<8x128xf32>
    %45 = vector.extract_strided_slice %40 {offsets = [0, 128], sizes = [8, 128], strides = [1, 1]} : vector<8x384xf32> to vector<8x128xf32>
    %46 = vector.extract_strided_slice %40 {offsets = [0, 256], sizes = [8, 128], strides = [1, 1]} : vector<8x384xf32> to vector<8x128xf32>
    %47 = arith.addf %41, %44 : vector<8x128xf32>
    %48 = arith.negf %47 : vector<8x128xf32>
    %49 = math.exp %48 : vector<8x128xf32>
    %cst_17 = arith.constant 1.000000e+00 : f32
    %50 = vector.broadcast %cst_17 : f32 to vector<8x128xf32>
    %51 = arith.addf %50, %49 : vector<8x128xf32>
    %52 = arith.divf %50, %51 : vector<8x128xf32>
    %53 = arith.addf %42, %45 : vector<8x128xf32>
    %54 = arith.negf %53 : vector<8x128xf32>
    %55 = math.exp %54 : vector<8x128xf32>
    %cst_18 = arith.constant 1.000000e+00 : f32
    %56 = vector.broadcast %cst_18 : f32 to vector<8x128xf32>
    %57 = arith.addf %56, %55 : vector<8x128xf32>
    %58 = arith.divf %56, %57 : vector<8x128xf32>
    %59 = vector.broadcast %4 : vector<1x128xf32> to vector<8x128xf32>
    %60 = arith.addf %46, %59 : vector<8x128xf32>
    %61 = arith.mulf %52, %60 : vector<8x128xf32>
    %62 = arith.addf %43, %61 : vector<8x128xf32>
    %63 = math.tanh %62 : vector<8x128xf32>
    %64 = arith.subf %34, %63 : vector<8x128xf32>
    %65 = arith.mulf %58, %64 : vector<8x128xf32>
    %66 = arith.addf %63, %65 : vector<8x128xf32>
    %c1_19 = arith.constant 1 : index
    %c0_20 = arith.constant 0 : index
    %c0_21 = arith.constant 0 : index
    %67 = vector.load %arg5[%c1_19, %c0_20, %c0_21] : memref<8x8x128xf32, #tpu.memory_space<vmem>>, vector<1x8x128xf32>
    %68 = vector.shape_cast %67 : vector<1x8x128xf32> to vector<8x128xf32>
    %69 = vector.shape_cast %66 : vector<8x128xf32> to vector<1x8x128xf32>
    tpu.vector_store %arg5[%c1_19, %c0_20, %c0_21], %69 {strides = array<i32>} : memref<8x8x128xf32, #tpu.memory_space<vmem>>, vector<1x8x128xf32>,
    %c2 = arith.constant 2 : index
    %c0_22 = arith.constant 0 : index
    %c0_23 = arith.constant 0 : index
    %70 = vector.load %arg1[%c2, %c0_22, %c0_23] : memref<8x8x384xf32, #tpu.memory_space<vmem>>, vector<1x8x384xf32>
    %71 = vector.shape_cast %70 : vector<1x8x384xf32> to vector<8x384xf32>
    %cst_24 = arith.constant dense<0.000000e+00> : vector<8x384xf32>
    %72 = tpu.matmul %66, %3, %cst_24 {dimension_numbers = #tpu.dot_dimension_numbers<[1], [0], [0], [1], [0, 0, 1, 1], [], []>} : vector<8x128xf32>, vector<128x384xf32>, vector<8x384xf32> -> vector<8x384xf32>
    %73 = vector.extract_strided_slice %71 {offsets = [0, 0], sizes = [8, 128], strides = [1, 1]} : vector<8x384xf32> to vector<8x128xf32>
    %74 = vector.extract_strided_slice %71 {offsets = [0, 128], sizes = [8, 128], strides = [1, 1]} : vector<8x384xf32> to vector<8x128xf32>
    %75 = vector.extract_strided_slice %71 {offsets = [0, 256], sizes = [8, 128], strides = [1, 1]} : vector<8x384xf32> to vector<8x128xf32>
    %76 = vector.extract_strided_slice %72 {offsets = [0, 0], sizes = [8, 128], strides = [1, 1]} : vector<8x384xf32> to vector<8x128xf32>
    %77 = vector.extract_strided_slice %72 {offsets = [0, 128], sizes = [8, 128], strides = [1, 1]} : vector<8x384xf32> to vector<8x128xf32>
    %78 = vector.extract_strided_slice %72 {offsets = [0, 256], sizes = [8, 128], strides = [1, 1]} : vector<8x384xf32> to vector<8x128xf32>
    %79 = arith.addf %73, %76 : vector<8x128xf32>
    %80 = arith.negf %79 : vector<8x128xf32>
    %81 = math.exp %80 : vector<8x128xf32>
    %cst_25 = arith.constant 1.000000e+00 : f32
    %82 = vector.broadcast %cst_25 : f32 to vector<8x128xf32>
    %83 = arith.addf %82, %81 : vector<8x128xf32>
    %84 = arith.divf %82, %83 : vector<8x128xf32>
    %85 = arith.addf %74, %77 : vector<8x128xf32>
    %86 = arith.negf %85 : vector<8x128xf32>
    %87 = math.exp %86 : vector<8x128xf32>
    %cst_26 = arith.constant 1.000000e+00 : f32
    %88 = vector.broadcast %cst_26 : f32 to vector<8x128xf32>
    %89 = arith.addf %88, %87 : vector<8x128xf32>
    %90 = arith.divf %88, %89 : vector<8x128xf32>
    %91 = vector.broadcast %4 : vector<1x128xf32> to vector<8x128xf32>
    %92 = arith.addf %78, %91 : vector<8x128xf32>
    %93 = arith.mulf %84, %92 : vector<8x128xf32>
    %94 = arith.addf %75, %93 : vector<8x128xf32>
    %95 = math.tanh %94 : vector<8x128xf32>
    %96 = arith.subf %66, %95 : vector<8x128xf32>
    %97 = arith.mulf %90, %96 : vector<8x128xf32>
    %98 = arith.addf %95, %97 : vector<8x128xf32>
    %c2_27 = arith.constant 2 : index
    %c0_28 = arith.constant 0 : index
    %c0_29 = arith.constant 0 : index
    %99 = vector.load %arg5[%c2_27, %c0_28, %c0_29] : memref<8x8x128xf32, #tpu.memory_space<vmem>>, vector<1x8x128xf32>
    %100 = vector.shape_cast %99 : vector<1x8x128xf32> to vector<8x128xf32>
    %101 = vector.shape_cast %98 : vector<8x128xf32> to vector<1x8x128xf32>
    tpu.vector_store %arg5[%c2_27, %c0_28, %c0_29], %101 {strides = array<i32>} : memref<8x8x128xf32, #tpu.memory_space<vmem>>, vector<1x8x128xf32>,
    %c3 = arith.constant 3 : index
    %c0_30 = arith.constant 0 : index
    %c0_31 = arith.constant 0 : index
    %102 = vector.load %arg1[%c3, %c0_30, %c0_31] : memref<8x8x384xf32, #tpu.memory_space<vmem>>, vector<1x8x384xf32>
    %103 = vector.shape_cast %102 : vector<1x8x384xf32> to vector<8x384xf32>
    %cst_32 = arith.constant dense<0.000000e+00> : vector<8x384xf32>
    %104 = tpu.matmul %98, %3, %cst_32 {dimension_numbers = #tpu.dot_dimension_numbers<[1], [0], [0], [1], [0, 0, 1, 1], [], []>} : vector<8x128xf32>, vector<128x384xf32>, vector<8x384xf32> -> vector<8x384xf32>
    %105 = vector.extract_strided_slice %103 {offsets = [0, 0], sizes = [8, 128], strides = [1, 1]} : vector<8x384xf32> to vector<8x128xf32>
    %106 = vector.extract_strided_slice %103 {offsets = [0, 128], sizes = [8, 128], strides = [1, 1]} : vector<8x384xf32> to vector<8x128xf32>
    %107 = vector.extract_strided_slice %103 {offsets = [0, 256], sizes = [8, 128], strides = [1, 1]} : vector<8x384xf32> to vector<8x128xf32>
    %108 = vector.extract_strided_slice %104 {offsets = [0, 0], sizes = [8, 128], strides = [1, 1]} : vector<8x384xf32> to vector<8x128xf32>
    %109 = vector.extract_strided_slice %104 {offsets = [0, 128], sizes = [8, 128], strides = [1, 1]} : vector<8x384xf32> to vector<8x128xf32>
    %110 = vector.extract_strided_slice %104 {offsets = [0, 256], sizes = [8, 128], strides = [1, 1]} : vector<8x384xf32> to vector<8x128xf32>
    %111 = arith.addf %105, %108 : vector<8x128xf32>
    %112 = arith.negf %111 : vector<8x128xf32>
    %113 = math.exp %112 : vector<8x128xf32>
    %cst_33 = arith.constant 1.000000e+00 : f32
    %114 = vector.broadcast %cst_33 : f32 to vector<8x128xf32>
    %115 = arith.addf %114, %113 : vector<8x128xf32>
    %116 = arith.divf %114, %115 : vector<8x128xf32>
    %117 = arith.addf %106, %109 : vector<8x128xf32>
    %118 = arith.negf %117 : vector<8x128xf32>
    %119 = math.exp %118 : vector<8x128xf32>
    %cst_34 = arith.constant 1.000000e+00 : f32
    %120 = vector.broadcast %cst_34 : f32 to vector<8x128xf32>
    %121 = arith.addf %120, %119 : vector<8x128xf32>
    %122 = arith.divf %120, %121 : vector<8x128xf32>
    %123 = vector.broadcast %4 : vector<1x128xf32> to vector<8x128xf32>
    %124 = arith.addf %110, %123 : vector<8x128xf32>
    %125 = arith.mulf %116, %124 : vector<8x128xf32>
    %126 = arith.addf %107, %125 : vector<8x128xf32>
    %127 = math.tanh %126 : vector<8x128xf32>
    %128 = arith.subf %98, %127 : vector<8x128xf32>
    %129 = arith.mulf %122, %128 : vector<8x128xf32>
    %130 = arith.addf %127, %129 : vector<8x128xf32>
    %c3_35 = arith.constant 3 : index
    %c0_36 = arith.constant 0 : index
    %c0_37 = arith.constant 0 : index
    %131 = vector.load %arg5[%c3_35, %c0_36, %c0_37] : memref<8x8x128xf32, #tpu.memory_space<vmem>>, vector<1x8x128xf32>
    %132 = vector.shape_cast %131 : vector<1x8x128xf32> to vector<8x128xf32>
    %133 = vector.shape_cast %130 : vector<8x128xf32> to vector<1x8x128xf32>
    tpu.vector_store %arg5[%c3_35, %c0_36, %c0_37], %133 {strides = array<i32>} : memref<8x8x128xf32, #tpu.memory_space<vmem>>, vector<1x8x128xf32>,
    %c4 = arith.constant 4 : index
    %c0_38 = arith.constant 0 : index
    %c0_39 = arith.constant 0 : index
    %134 = vector.load %arg1[%c4, %c0_38, %c0_39] : memref<8x8x384xf32, #tpu.memory_space<vmem>>, vector<1x8x384xf32>
    %135 = vector.shape_cast %134 : vector<1x8x384xf32> to vector<8x384xf32>
    %cst_40 = arith.constant dense<0.000000e+00> : vector<8x384xf32>
    %136 = tpu.matmul %130, %3, %cst_40 {dimension_numbers = #tpu.dot_dimension_numbers<[1], [0], [0], [1], [0, 0, 1, 1], [], []>} : vector<8x128xf32>, vector<128x384xf32>, vector<8x384xf32> -> vector<8x384xf32>
    %137 = vector.extract_strided_slice %135 {offsets = [0, 0], sizes = [8, 128], strides = [1, 1]} : vector<8x384xf32> to vector<8x128xf32>
    %138 = vector.extract_strided_slice %135 {offsets = [0, 128], sizes = [8, 128], strides = [1, 1]} : vector<8x384xf32> to vector<8x128xf32>
    %139 = vector.extract_strided_slice %135 {offsets = [0, 256], sizes = [8, 128], strides = [1, 1]} : vector<8x384xf32> to vector<8x128xf32>
    %140 = vector.extract_strided_slice %136 {offsets = [0, 0], sizes = [8, 128], strides = [1, 1]} : vector<8x384xf32> to vector<8x128xf32>
    %141 = vector.extract_strided_slice %136 {offsets = [0, 128], sizes = [8, 128], strides = [1, 1]} : vector<8x384xf32> to vector<8x128xf32>
    %142 = vector.extract_strided_slice %136 {offsets = [0, 256], sizes = [8, 128], strides = [1, 1]} : vector<8x384xf32> to vector<8x128xf32>
    %143 = arith.addf %137, %140 : vector<8x128xf32>
    %144 = arith.negf %143 : vector<8x128xf32>
    %145 = math.exp %144 : vector<8x128xf32>
    %cst_41 = arith.constant 1.000000e+00 : f32
    %146 = vector.broadcast %cst_41 : f32 to vector<8x128xf32>
    %147 = arith.addf %146, %145 : vector<8x128xf32>
    %148 = arith.divf %146, %147 : vector<8x128xf32>
    %149 = arith.addf %138, %141 : vector<8x128xf32>
    %150 = arith.negf %149 : vector<8x128xf32>
    %151 = math.exp %150 : vector<8x128xf32>
    %cst_42 = arith.constant 1.000000e+00 : f32
    %152 = vector.broadcast %cst_42 : f32 to vector<8x128xf32>
    %153 = arith.addf %152, %151 : vector<8x128xf32>
    %154 = arith.divf %152, %153 : vector<8x128xf32>
    %155 = vector.broadcast %4 : vector<1x128xf32> to vector<8x128xf32>
    %156 = arith.addf %142, %155 : vector<8x128xf32>
    %157 = arith.mulf %148, %156 : vector<8x128xf32>
    %158 = arith.addf %139, %157 : vector<8x128xf32>
    %159 = math.tanh %158 : vector<8x128xf32>
    %160 = arith.subf %130, %159 : vector<8x128xf32>
    %161 = arith.mulf %154, %160 : vector<8x128xf32>
    %162 = arith.addf %159, %161 : vector<8x128xf32>
    %c4_43 = arith.constant 4 : index
    %c0_44 = arith.constant 0 : index
    %c0_45 = arith.constant 0 : index
    %163 = vector.load %arg5[%c4_43, %c0_44, %c0_45] : memref<8x8x128xf32, #tpu.memory_space<vmem>>, vector<1x8x128xf32>
    %164 = vector.shape_cast %163 : vector<1x8x128xf32> to vector<8x128xf32>
    %165 = vector.shape_cast %162 : vector<8x128xf32> to vector<1x8x128xf32>
    tpu.vector_store %arg5[%c4_43, %c0_44, %c0_45], %165 {strides = array<i32>} : memref<8x8x128xf32, #tpu.memory_space<vmem>>, vector<1x8x128xf32>,
    %c5 = arith.constant 5 : index
    %c0_46 = arith.constant 0 : index
    %c0_47 = arith.constant 0 : index
    %166 = vector.load %arg1[%c5, %c0_46, %c0_47] : memref<8x8x384xf32, #tpu.memory_space<vmem>>, vector<1x8x384xf32>
    %167 = vector.shape_cast %166 : vector<1x8x384xf32> to vector<8x384xf32>
    %cst_48 = arith.constant dense<0.000000e+00> : vector<8x384xf32>
    %168 = tpu.matmul %162, %3, %cst_48 {dimension_numbers = #tpu.dot_dimension_numbers<[1], [0], [0], [1], [0, 0, 1, 1], [], []>} : vector<8x128xf32>, vector<128x384xf32>, vector<8x384xf32> -> vector<8x384xf32>
    %169 = vector.extract_strided_slice %167 {offsets = [0, 0], sizes = [8, 128], strides = [1, 1]} : vector<8x384xf32> to vector<8x128xf32>
    %170 = vector.extract_strided_slice %167 {offsets = [0, 128], sizes = [8, 128], strides = [1, 1]} : vector<8x384xf32> to vector<8x128xf32>
    %171 = vector.extract_strided_slice %167 {offsets = [0, 256], sizes = [8, 128], strides = [1, 1]} : vector<8x384xf32> to vector<8x128xf32>
    %172 = vector.extract_strided_slice %168 {offsets = [0, 0], sizes = [8, 128], strides = [1, 1]} : vector<8x384xf32> to vector<8x128xf32>
    %173 = vector.extract_strided_slice %168 {offsets = [0, 128], sizes = [8, 128], strides = [1, 1]} : vector<8x384xf32> to vector<8x128xf32>
    %174 = vector.extract_strided_slice %168 {offsets = [0, 256], sizes = [8, 128], strides = [1, 1]} : vector<8x384xf32> to vector<8x128xf32>
    %175 = arith.addf %169, %172 : vector<8x128xf32>
    %176 = arith.negf %175 : vector<8x128xf32>
    %177 = math.exp %176 : vector<8x128xf32>
    %cst_49 = arith.constant 1.000000e+00 : f32
    %178 = vector.broadcast %cst_49 : f32 to vector<8x128xf32>
    %179 = arith.addf %178, %177 : vector<8x128xf32>
    %180 = arith.divf %178, %179 : vector<8x128xf32>
    %181 = arith.addf %170, %173 : vector<8x128xf32>
    %182 = arith.negf %181 : vector<8x128xf32>
    %183 = math.exp %182 : vector<8x128xf32>
    %cst_50 = arith.constant 1.000000e+00 : f32
    %184 = vector.broadcast %cst_50 : f32 to vector<8x128xf32>
    %185 = arith.addf %184, %183 : vector<8x128xf32>
    %186 = arith.divf %184, %185 : vector<8x128xf32>
    %187 = vector.broadcast %4 : vector<1x128xf32> to vector<8x128xf32>
    %188 = arith.addf %174, %187 : vector<8x128xf32>
    %189 = arith.mulf %180, %188 : vector<8x128xf32>
    %190 = arith.addf %171, %189 : vector<8x128xf32>
    %191 = math.tanh %190 : vector<8x128xf32>
    %192 = arith.subf %162, %191 : vector<8x128xf32>
    %193 = arith.mulf %186, %192 : vector<8x128xf32>
    %194 = arith.addf %191, %193 : vector<8x128xf32>
    %c5_51 = arith.constant 5 : index
    %c0_52 = arith.constant 0 : index
    %c0_53 = arith.constant 0 : index
    %195 = vector.load %arg5[%c5_51, %c0_52, %c0_53] : memref<8x8x128xf32, #tpu.memory_space<vmem>>, vector<1x8x128xf32>
    %196 = vector.shape_cast %195 : vector<1x8x128xf32> to vector<8x128xf32>
    %197 = vector.shape_cast %194 : vector<8x128xf32> to vector<1x8x128xf32>
    tpu.vector_store %arg5[%c5_51, %c0_52, %c0_53], %197 {strides = array<i32>} : memref<8x8x128xf32, #tpu.memory_space<vmem>>, vector<1x8x128xf32>,
    %c6 = arith.constant 6 : index
    %c0_54 = arith.constant 0 : index
    %c0_55 = arith.constant 0 : index
    %198 = vector.load %arg1[%c6, %c0_54, %c0_55] : memref<8x8x384xf32, #tpu.memory_space<vmem>>, vector<1x8x384xf32>
    %199 = vector.shape_cast %198 : vector<1x8x384xf32> to vector<8x384xf32>
    %cst_56 = arith.constant dense<0.000000e+00> : vector<8x384xf32>
    %200 = tpu.matmul %194, %3, %cst_56 {dimension_numbers = #tpu.dot_dimension_numbers<[1], [0], [0], [1], [0, 0, 1, 1], [], []>} : vector<8x128xf32>, vector<128x384xf32>, vector<8x384xf32> -> vector<8x384xf32>
    %201 = vector.extract_strided_slice %199 {offsets = [0, 0], sizes = [8, 128], strides = [1, 1]} : vector<8x384xf32> to vector<8x128xf32>
    %202 = vector.extract_strided_slice %199 {offsets = [0, 128], sizes = [8, 128], strides = [1, 1]} : vector<8x384xf32> to vector<8x128xf32>
    %203 = vector.extract_strided_slice %199 {offsets = [0, 256], sizes = [8, 128], strides = [1, 1]} : vector<8x384xf32> to vector<8x128xf32>
    %204 = vector.extract_strided_slice %200 {offsets = [0, 0], sizes = [8, 128], strides = [1, 1]} : vector<8x384xf32> to vector<8x128xf32>
    %205 = vector.extract_strided_slice %200 {offsets = [0, 128], sizes = [8, 128], strides = [1, 1]} : vector<8x384xf32> to vector<8x128xf32>
    %206 = vector.extract_strided_slice %200 {offsets = [0, 256], sizes = [8, 128], strides = [1, 1]} : vector<8x384xf32> to vector<8x128xf32>
    %207 = arith.addf %201, %204 : vector<8x128xf32>
    %208 = arith.negf %207 : vector<8x128xf32>
    %209 = math.exp %208 : vector<8x128xf32>
    %cst_57 = arith.constant 1.000000e+00 : f32
    %210 = vector.broadcast %cst_57 : f32 to vector<8x128xf32>
    %211 = arith.addf %210, %209 : vector<8x128xf32>
    %212 = arith.divf %210, %211 : vector<8x128xf32>
    %213 = arith.addf %202, %205 : vector<8x128xf32>
    %214 = arith.negf %213 : vector<8x128xf32>
    %215 = math.exp %214 : vector<8x128xf32>
    %cst_58 = arith.constant 1.000000e+00 : f32
    %216 = vector.broadcast %cst_58 : f32 to vector<8x128xf32>
    %217 = arith.addf %216, %215 : vector<8x128xf32>
    %218 = arith.divf %216, %217 : vector<8x128xf32>
    %219 = vector.broadcast %4 : vector<1x128xf32> to vector<8x128xf32>
    %220 = arith.addf %206, %219 : vector<8x128xf32>
    %221 = arith.mulf %212, %220 : vector<8x128xf32>
    %222 = arith.addf %203, %221 : vector<8x128xf32>
    %223 = math.tanh %222 : vector<8x128xf32>
    %224 = arith.subf %194, %223 : vector<8x128xf32>
    %225 = arith.mulf %218, %224 : vector<8x128xf32>
    %226 = arith.addf %223, %225 : vector<8x128xf32>
    %c6_59 = arith.constant 6 : index
    %c0_60 = arith.constant 0 : index
    %c0_61 = arith.constant 0 : index
    %227 = vector.load %arg5[%c6_59, %c0_60, %c0_61] : memref<8x8x128xf32, #tpu.memory_space<vmem>>, vector<1x8x128xf32>
    %228 = vector.shape_cast %227 : vector<1x8x128xf32> to vector<8x128xf32>
    %229 = vector.shape_cast %226 : vector<8x128xf32> to vector<1x8x128xf32>
    tpu.vector_store %arg5[%c6_59, %c0_60, %c0_61], %229 {strides = array<i32>} : memref<8x8x128xf32, #tpu.memory_space<vmem>>, vector<1x8x128xf32>,
    %c7 = arith.constant 7 : index
    %c0_62 = arith.constant 0 : index
    %c0_63 = arith.constant 0 : index
    %230 = vector.load %arg1[%c7, %c0_62, %c0_63] : memref<8x8x384xf32, #tpu.memory_space<vmem>>, vector<1x8x384xf32>
    %231 = vector.shape_cast %230 : vector<1x8x384xf32> to vector<8x384xf32>
    %cst_64 = arith.constant dense<0.000000e+00> : vector<8x384xf32>
    %232 = tpu.matmul %226, %3, %cst_64 {dimension_numbers = #tpu.dot_dimension_numbers<[1], [0], [0], [1], [0, 0, 1, 1], [], []>} : vector<8x128xf32>, vector<128x384xf32>, vector<8x384xf32> -> vector<8x384xf32>
    %233 = vector.extract_strided_slice %231 {offsets = [0, 0], sizes = [8, 128], strides = [1, 1]} : vector<8x384xf32> to vector<8x128xf32>
    %234 = vector.extract_strided_slice %231 {offsets = [0, 128], sizes = [8, 128], strides = [1, 1]} : vector<8x384xf32> to vector<8x128xf32>
    %235 = vector.extract_strided_slice %231 {offsets = [0, 256], sizes = [8, 128], strides = [1, 1]} : vector<8x384xf32> to vector<8x128xf32>
    %236 = vector.extract_strided_slice %232 {offsets = [0, 0], sizes = [8, 128], strides = [1, 1]} : vector<8x384xf32> to vector<8x128xf32>
    %237 = vector.extract_strided_slice %232 {offsets = [0, 128], sizes = [8, 128], strides = [1, 1]} : vector<8x384xf32> to vector<8x128xf32>
    %238 = vector.extract_strided_slice %232 {offsets = [0, 256], sizes = [8, 128], strides = [1, 1]} : vector<8x384xf32> to vector<8x128xf32>
    %239 = arith.addf %233, %236 : vector<8x128xf32>
    %240 = arith.negf %239 : vector<8x128xf32>
    %241 = math.exp %240 : vector<8x128xf32>
    %cst_65 = arith.constant 1.000000e+00 : f32
    %242 = vector.broadcast %cst_65 : f32 to vector<8x128xf32>
    %243 = arith.addf %242, %241 : vector<8x128xf32>
    %244 = arith.divf %242, %243 : vector<8x128xf32>
    %245 = arith.addf %234, %237 : vector<8x128xf32>
    %246 = arith.negf %245 : vector<8x128xf32>
    %247 = math.exp %246 : vector<8x128xf32>
    %cst_66 = arith.constant 1.000000e+00 : f32
    %248 = vector.broadcast %cst_66 : f32 to vector<8x128xf32>
    %249 = arith.addf %248, %247 : vector<8x128xf32>
    %250 = arith.divf %248, %249 : vector<8x128xf32>
    %251 = vector.broadcast %4 : vector<1x128xf32> to vector<8x128xf32>
    %252 = arith.addf %238, %251 : vector<8x128xf32>
    %253 = arith.mulf %244, %252 : vector<8x128xf32>
    %254 = arith.addf %235, %253 : vector<8x128xf32>
    %255 = math.tanh %254 : vector<8x128xf32>
    %256 = arith.subf %226, %255 : vector<8x128xf32>
    %257 = arith.mulf %250, %256 : vector<8x128xf32>
    %258 = arith.addf %255, %257 : vector<8x128xf32>
    %c7_67 = arith.constant 7 : index
    %c0_68 = arith.constant 0 : index
    %c0_69 = arith.constant 0 : index
    %259 = vector.load %arg5[%c7_67, %c0_68, %c0_69] : memref<8x8x128xf32, #tpu.memory_space<vmem>>, vector<1x8x128xf32>
    %260 = vector.shape_cast %259 : vector<1x8x128xf32> to vector<8x128xf32>
    %261 = vector.shape_cast %258 : vector<8x128xf32> to vector<1x8x128xf32>
    tpu.vector_store %arg5[%c7_67, %c0_68, %c0_69], %261 {strides = array<i32>} : memref<8x8x128xf32, #tpu.memory_space<vmem>>, vector<1x8x128xf32>,
    %c0_70 = arith.constant 0 : index
    %c0_71 = arith.constant 0 : index
    %262 = vector.load %arg7[%c0_70, %c0_71] : memref<8x128xf32, #tpu.memory_space<vmem>>, vector<8x128xf32>
    tpu.vector_store %arg7[%c0_70, %c0_71], %258 {strides = array<i32>} : memref<8x128xf32, #tpu.memory_space<vmem>>, vector<8x128xf32>,
    %c0_i32_72 = arith.constant 0 : i32
    %263 = arith.cmpi eq, %arg0, %c0_i32_72 : i32
    %264 = arith.extui %263 : i1 to i32
    %c0_i32_73 = arith.constant 0 : i32
    %265 = arith.cmpi ne, %264, %c0_i32_73 : i32
    scf.if %265 {
      %c0_74 = arith.constant 0 : index
      %c0_75 = arith.constant 0 : index
      %266 = vector.load %arg6[%c0_74, %c0_75] : memref<8x128xf32, #tpu.memory_space<vmem>>, vector<8x128xf32>
      tpu.vector_store %arg6[%c0_74, %c0_75], %258 {strides = array<i32>} : memref<8x128xf32, #tpu.memory_space<vmem>>, vector<8x128xf32>,
    } else {
    }
    return
  }
  func.func @transform_0(%arg0: i32) -> (i32, i32, i32) {
    %c0_i32 = arith.constant 0 : i32
    %c0_i32_0 = arith.constant 0 : i32
    %c0_i32_1 = arith.constant 0 : i32
    return %arg0, %c0_i32, %c0_i32_0 : i32, i32, i32
  }
  func.func @transform_1(%arg0: i32) -> (i32, i32) {
    %c0_i32 = arith.constant 0 : i32
    %c0_i32_0 = arith.constant 0 : i32
    %c0_i32_1 = arith.constant 0 : i32
    return %c0_i32, %c0_i32_0 : i32, i32
  }
  func.func @transform_2(%arg0: i32) -> (i32, i32) {
    %c0_i32 = arith.constant 0 : i32
    %c0_i32_0 = arith.constant 0 : i32
    %c0_i32_1 = arith.constant 0 : i32
    return %c0_i32, %c0_i32_0 : i32, i32
  }
  func.func @transform_3(%arg0: i32) -> (i32, i32) {
    %c0_i32 = arith.constant 0 : i32
    %c0_i32_0 = arith.constant 0 : i32
    %c0_i32_1 = arith.constant 0 : i32
    return %c0_i32, %c0_i32_0 : i32, i32
  }
  func.func @transform_4(%arg0: i32) -> (i32, i32, i32) {
    %c0_i32 = arith.constant 0 : i32
    %c0_i32_0 = arith.constant 0 : i32
    %c0_i32_1 = arith.constant 0 : i32
    return %arg0, %c0_i32, %c0_i32_0 : i32, i32, i32
  }
  func.func @transform_5(%arg0: i32) -> (i32, i32) {
    %c0_i32 = arith.constant 0 : i32
    %c0_i32_0 = arith.constant 0 : i32
    %c0_i32_1 = arith.constant 0 : i32
    return %c0_i32, %c0_i32_0 : i32, i32
  }
}

module attributes {stable_mosaic.version = 11 : i64} {
  func.func @_gru_recurrence_kernel(%arg0: i32, %arg1: memref<8x8x384xf32, #tpu.memory_space<vmem>>, %arg2: memref<8x128xf32, #tpu.memory_space<vmem>>, %arg3: memref<128x384xf32, #tpu.memory_space<vmem>>, %arg4: memref<1x128xf32, #tpu.memory_space<vmem>>, %arg5: memref<8x8x128xf32, #tpu.memory_space<vmem>>, %arg6: memref<8x128xf32, #tpu.memory_space<vmem>>, %arg7: memref<8x128xf32, #tpu.memory_space<vmem>>) attributes {dimension_semantics = [#tpu.dimension_semantics<arbitrary>], iteration_bounds = array<i64: 1>, scalar_prefetch = 0 : i64, scratch_operands = 1 : i64, tpu.core_type = #tpu.core_type<tc>, window_params = [{transform_indices = @transform_0, window_bounds = array<i64: 8, 8, 384>}, {pipeline_mode = #tpu.pipeline_mode<synchronous>, transform_indices = @transform_1, window_bounds = array<i64: 8, 128>}, {pipeline_mode = #tpu.pipeline_mode<synchronous>, transform_indices = @transform_2, window_bounds = array<i64: 128, 384>}, {pipeline_mode = #tpu.pipeline_mode<synchronous>, transform_indices = @transform_3, window_bounds = array<i64: 1, 128>}, {transform_indices = @transform_4, window_bounds = array<i64: 8, 8, 128>}, {pipeline_mode = #tpu.pipeline_mode<synchronous>, transform_indices = @transform_5, window_bounds = array<i64: 8, 128>}]} {
    %c0_i32 = arith.constant 0 : i32
    %0 = arith.cmpi eq, %arg0, %c0_i32 : i32
    %1 = arith.extui %0 : i1 to i32
    %c0_i32_0 = arith.constant 0 : i32
    %2 = arith.cmpi ne, %1, %c0_i32_0 : i32
    scf.if %2 {
      %c0_74 = arith.constant 0 : index
      %c0_75 = arith.constant 0 : index
      %266 = vector.load %arg2[%c0_74, %c0_75] : memref<8x128xf32, #tpu.memory_space<vmem>>, vector<8x128xf32>
      %c0_76 = arith.constant 0 : index
      %c0_77 = arith.constant 0 : index
      %267 = vector.load %arg7[%c0_76, %c0_77] : memref<8x128xf32, #tpu.memory_space<vmem>>, vector<8x128xf32>
      tpu.vector_store %arg7[%c0_76, %c0_77], %266 {strides = array<i32>} : memref<8x128xf32, #tpu.memory_space<vmem>>, vector<8x128xf32>,
    } else {
    }
    %c0 = arith.constant 0 : index
    %c0_1 = arith.constant 0 : index
    %3 = vector.load %arg3[%c0, %c0_1] : memref<128x384xf32, #tpu.memory_space<vmem>>, vector<128x384xf32>
    %c0_2 = arith.constant 0 : index
    %c0_3 = arith.constant 0 : index
    %4 = vector.load %arg4[%c0_2, %c0_3] : memref<1x128xf32, #tpu.memory_space<vmem>>, vector<1x128xf32>
    %c0_4 = arith.constant 0 : index
    %c0_5 = arith.constant 0 : index
    %5 = vector.load %arg7[%c0_4, %c0_5] : memref<8x128xf32, #tpu.memory_space<vmem>>, vector<8x128xf32>
    %c0_6 = arith.constant 0 : index
    %c0_7 = arith.constant 0 : index
    %c0_8 = arith.constant 0 : index
    %6 = vector.load %arg1[%c0_6, %c0_7, %c0_8] : memref<8x8x384xf32, #tpu.memory_space<vmem>>, vector<1x8x384xf32>
    %7 = vector.shape_cast %6 : vector<1x8x384xf32> to vector<8x384xf32>
    %cst = arith.constant dense<0.000000e+00> : vector<8x384xf32>
    %8 = tpu.matmul %5, %3, %cst {dimension_numbers = #tpu.dot_dimension_numbers<[1], [0], [0], [1], [0, 0, 1, 1], [], []>} : vector<8x128xf32>, vector<128x384xf32>, vector<8x384xf32> -> vector<8x384xf32>
    %9 = vector.extract_strided_slice %7 {offsets = [0, 0], sizes = [8, 128], strides = [1, 1]} : vector<8x384xf32> to vector<8x128xf32>
    %10 = vector.extract_strided_slice %7 {offsets = [0, 128], sizes = [8, 128], strides = [1, 1]} : vector<8x384xf32> to vector<8x128xf32>
    %11 = vector.extract_strided_slice %7 {offsets = [0, 256], sizes = [8, 128], strides = [1, 1]} : vector<8x384xf32> to vector<8x128xf32>
    %12 = vector.extract_strided_slice %8 {offsets = [0, 0], sizes = [8, 128], strides = [1, 1]} : vector<8x384xf32> to vector<8x128xf32>
    %13 = vector.extract_strided_slice %8 {offsets = [0, 128], sizes = [8, 128], strides = [1, 1]} : vector<8x384xf32> to vector<8x128xf32>
    %14 = vector.extract_strided_slice %8 {offsets = [0, 256], sizes = [8, 128], strides = [1, 1]} : vector<8x384xf32> to vector<8x128xf32>
    %15 = arith.addf %9, %12 : vector<8x128xf32>
    %16 = arith.negf %15 : vector<8x128xf32>
    %17 = math.exp %16 : vector<8x128xf32>
    %cst_9 = arith.constant 1.000000e+00 : f32
    %18 = vector.broadcast %cst_9 : f32 to vector<8x128xf32>
    %19 = arith.addf %18, %17 : vector<8x128xf32>
    %20 = arith.divf %18, %19 : vector<8x128xf32>
    %21 = arith.addf %10, %13 : vector<8x128xf32>
    %22 = arith.negf %21 : vector<8x128xf32>
    %23 = math.exp %22 : vector<8x128xf32>
    %cst_10 = arith.constant 1.000000e+00 : f32
    %24 = vector.broadcast %cst_10 : f32 to vector<8x128xf32>
    %25 = arith.addf %24, %23 : vector<8x128xf32>
    %26 = arith.divf %24, %25 : vector<8x128xf32>
    %27 = vector.broadcast %4 : vector<1x128xf32> to vector<8x128xf32>
    %28 = arith.addf %14, %27 : vector<8x128xf32>
    %29 = arith.mulf %20, %28 : vector<8x128xf32>
    %30 = arith.addf %11, %29 : vector<8x128xf32>
    %31 = math.tanh %30 : vector<8x128xf32>
    %32 = arith.subf %5, %31 : vector<8x128xf32>
    %33 = arith.mulf %26, %32 : vector<8x128xf32>
    %34 = arith.addf %31, %33 : vector<8x128xf32>
    %c0_11 = arith.constant 0 : index
    %c0_12 = arith.constant 0 : index
    %c0_13 = arith.constant 0 : index
    %35 = vector.load %arg5[%c0_11, %c0_12, %c0_13] : memref<8x8x128xf32, #tpu.memory_space<vmem>>, vector<1x8x128xf32>
    %36 = vector.shape_cast %35 : vector<1x8x128xf32> to vector<8x128xf32>
    %37 = vector.shape_cast %34 : vector<8x128xf32> to vector<1x8x128xf32>
    tpu.vector_store %arg5[%c0_11, %c0_12, %c0_13], %37 {strides = array<i32>} : memref<8x8x128xf32, #tpu.memory_space<vmem>>, vector<1x8x128xf32>,
    %c1 = arith.constant 1 : index
    %c0_14 = arith.constant 0 : index
    %c0_15 = arith.constant 0 : index
    %38 = vector.load %arg1[%c1, %c0_14, %c0_15] : memref<8x8x384xf32, #tpu.memory_space<vmem>>, vector<1x8x384xf32>
    %39 = vector.shape_cast %38 : vector<1x8x384xf32> to vector<8x384xf32>
    %cst_16 = arith.constant dense<0.000000e+00> : vector<8x384xf32>
    %40 = tpu.matmul %34, %3, %cst_16 {dimension_numbers = #tpu.dot_dimension_numbers<[1], [0], [0], [1], [0, 0, 1, 1], [], []>} : vector<8x128xf32>, vector<128x384xf32>, vector<8x384xf32> -> vector<8x384xf32>
    %41 = vector.extract_strided_slice %39 {offsets = [0, 0], sizes = [8, 128], strides = [1, 1]} : vector<8x384xf32> to vector<8x128xf32>
    %42 = vector.extract_strided_slice %39 {offsets = [0, 128], sizes = [8, 128], strides = [1, 1]} : vector<8x384xf32> to vector<8x128xf32>
    %43 = vector.extract_strided_slice %39 {offsets = [0, 256], sizes = [8, 128], strides = [1, 1]} : vector<8x384xf32> to vector<8x128xf32>
    %44 = vector.extract_strided_slice %40 {offsets = [0, 0], sizes = [8, 128], strides = [1, 1]} : vector<8x384xf32> to vector<8x128xf32>
    %45 = vector.extract_strided_slice %40 {offsets = [0, 128], sizes = [8, 128], strides = [1, 1]} : vector<8x384xf32> to vector<8x128xf32>
    %46 = vector.extract_strided_slice %40 {offsets = [0, 256], sizes = [8, 128], strides = [1, 1]} : vector<8x384xf32> to vector<8x128xf32>
    %47 = arith.addf %41, %44 : vector<8x128xf32>
    %48 = arith.negf %47 : vector<8x128xf32>
    %49 = math.exp %48 : vector<8x128xf32>
    %cst_17 = arith.constant 1.000000e+00 : f32
    %50 = vector.broadcast %cst_17 : f32 to vector<8x128xf32>
    %51 = arith.addf %50, %49 : vector<8x128xf32>
    %52 = arith.divf %50, %51 : vector<8x128xf32>
    %53 = arith.addf %42, %45 : vector<8x128xf32>
    %54 = arith.negf %53 : vector<8x128xf32>
    %55 = math.exp %54 : vector<8x128xf32>
    %cst_18 = arith.constant 1.000000e+00 : f32
    %56 = vector.broadcast %cst_18 : f32 to vector<8x128xf32>
    %57 = arith.addf %56, %55 : vector<8x128xf32>
    %58 = arith.divf %56, %57 : vector<8x128xf32>
    %59 = vector.broadcast %4 : vector<1x128xf32> to vector<8x128xf32>
    %60 = arith.addf %46, %59 : vector<8x128xf32>
    %61 = arith.mulf %52, %60 : vector<8x128xf32>
    %62 = arith.addf %43, %61 : vector<8x128xf32>
    %63 = math.tanh %62 : vector<8x128xf32>
    %64 = arith.subf %34, %63 : vector<8x128xf32>
    %65 = arith.mulf %58, %64 : vector<8x128xf32>
    %66 = arith.addf %63, %65 : vector<8x128xf32>
    %c1_19 = arith.constant 1 : index
    %c0_20 = arith.constant 0 : index
    %c0_21 = arith.constant 0 : index
    %67 = vector.load %arg5[%c1_19, %c0_20, %c0_21] : memref<8x8x128xf32, #tpu.memory_space<vmem>>, vector<1x8x128xf32>
    %68 = vector.shape_cast %67 : vector<1x8x128xf32> to vector<8x128xf32>
    %69 = vector.shape_cast %66 : vector<8x128xf32> to vector<1x8x128xf32>
    tpu.vector_store %arg5[%c1_19, %c0_20, %c0_21], %69 {strides = array<i32>} : memref<8x8x128xf32, #tpu.memory_space<vmem>>, vector<1x8x128xf32>,
    %c2 = arith.constant 2 : index
    %c0_22 = arith.constant 0 : index
    %c0_23 = arith.constant 0 : index
    %70 = vector.load %arg1[%c2, %c0_22, %c0_23] : memref<8x8x384xf32, #tpu.memory_space<vmem>>, vector<1x8x384xf32>
    %71 = vector.shape_cast %70 : vector<1x8x384xf32> to vector<8x384xf32>
    %cst_24 = arith.constant dense<0.000000e+00> : vector<8x384xf32>
    %72 = tpu.matmul %66, %3, %cst_24 {dimension_numbers = #tpu.dot_dimension_numbers<[1], [0], [0], [1], [0, 0, 1, 1], [], []>} : vector<8x128xf32>, vector<128x384xf32>, vector<8x384xf32> -> vector<8x384xf32>
    %73 = vector.extract_strided_slice %71 {offsets = [0, 0], sizes = [8, 128], strides = [1, 1]} : vector<8x384xf32> to vector<8x128xf32>
    %74 = vector.extract_strided_slice %71 {offsets = [0, 128], sizes = [8, 128], strides = [1, 1]} : vector<8x384xf32> to vector<8x128xf32>
    %75 = vector.extract_strided_slice %71 {offsets = [0, 256], sizes = [8, 128], strides = [1, 1]} : vector<8x384xf32> to vector<8x128xf32>
    %76 = vector.extract_strided_slice %72 {offsets = [0, 0], sizes = [8, 128], strides = [1, 1]} : vector<8x384xf32> to vector<8x128xf32>
    %77 = vector.extract_strided_slice %72 {offsets = [0, 128], sizes = [8, 128], strides = [1, 1]} : vector<8x384xf32> to vector<8x128xf32>
    %78 = vector.extract_strided_slice %72 {offsets = [0, 256], sizes = [8, 128], strides = [1, 1]} : vector<8x384xf32> to vector<8x128xf32>
    %79 = arith.addf %73, %76 : vector<8x128xf32>
    %80 = arith.negf %79 : vector<8x128xf32>
    %81 = math.exp %80 : vector<8x128xf32>
    %cst_25 = arith.constant 1.000000e+00 : f32
    %82 = vector.broadcast %cst_25 : f32 to vector<8x128xf32>
    %83 = arith.addf %82, %81 : vector<8x128xf32>
    %84 = arith.divf %82, %83 : vector<8x128xf32>
    %85 = arith.addf %74, %77 : vector<8x128xf32>
    %86 = arith.negf %85 : vector<8x128xf32>
    %87 = math.exp %86 : vector<8x128xf32>
    %cst_26 = arith.constant 1.000000e+00 : f32
    %88 = vector.broadcast %cst_26 : f32 to vector<8x128xf32>
    %89 = arith.addf %88, %87 : vector<8x128xf32>
    %90 = arith.divf %88, %89 : vector<8x128xf32>
    %91 = vector.broadcast %4 : vector<1x128xf32> to vector<8x128xf32>
    %92 = arith.addf %78, %91 : vector<8x128xf32>
    %93 = arith.mulf %84, %92 : vector<8x128xf32>
    %94 = arith.addf %75, %93 : vector<8x128xf32>
    %95 = math.tanh %94 : vector<8x128xf32>
    %96 = arith.subf %66, %95 : vector<8x128xf32>
    %97 = arith.mulf %90, %96 : vector<8x128xf32>
    %98 = arith.addf %95, %97 : vector<8x128xf32>
    %c2_27 = arith.constant 2 : index
    %c0_28 = arith.constant 0 : index
    %c0_29 = arith.constant 0 : index
    %99 = vector.load %arg5[%c2_27, %c0_28, %c0_29] : memref<8x8x128xf32, #tpu.memory_space<vmem>>, vector<1x8x128xf32>
    %100 = vector.shape_cast %99 : vector<1x8x128xf32> to vector<8x128xf32>
    %101 = vector.shape_cast %98 : vector<8x128xf32> to vector<1x8x128xf32>
    tpu.vector_store %arg5[%c2_27, %c0_28, %c0_29], %101 {strides = array<i32>} : memref<8x8x128xf32, #tpu.memory_space<vmem>>, vector<1x8x128xf32>,
    %c3 = arith.constant 3 : index
    %c0_30 = arith.constant 0 : index
    %c0_31 = arith.constant 0 : index
    %102 = vector.load %arg1[%c3, %c0_30, %c0_31] : memref<8x8x384xf32, #tpu.memory_space<vmem>>, vector<1x8x384xf32>
    %103 = vector.shape_cast %102 : vector<1x8x384xf32> to vector<8x384xf32>
    %cst_32 = arith.constant dense<0.000000e+00> : vector<8x384xf32>
    %104 = tpu.matmul %98, %3, %cst_32 {dimension_numbers = #tpu.dot_dimension_numbers<[1], [0], [0], [1], [0, 0, 1, 1], [], []>} : vector<8x128xf32>, vector<128x384xf32>, vector<8x384xf32> -> vector<8x384xf32>
    %105 = vector.extract_strided_slice %103 {offsets = [0, 0], sizes = [8, 128], strides = [1, 1]} : vector<8x384xf32> to vector<8x128xf32>
    %106 = vector.extract_strided_slice %103 {offsets = [0, 128], sizes = [8, 128], strides = [1, 1]} : vector<8x384xf32> to vector<8x128xf32>
    %107 = vector.extract_strided_slice %103 {offsets = [0, 256], sizes = [8, 128], strides = [1, 1]} : vector<8x384xf32> to vector<8x128xf32>
    %108 = vector.extract_strided_slice %104 {offsets = [0, 0], sizes = [8, 128], strides = [1, 1]} : vector<8x384xf32> to vector<8x128xf32>
    %109 = vector.extract_strided_slice %104 {offsets = [0, 128], sizes = [8, 128], strides = [1, 1]} : vector<8x384xf32> to vector<8x128xf32>
    %110 = vector.extract_strided_slice %104 {offsets = [0, 256], sizes = [8, 128], strides = [1, 1]} : vector<8x384xf32> to vector<8x128xf32>
    %111 = arith.addf %105, %108 : vector<8x128xf32>
    %112 = arith.negf %111 : vector<8x128xf32>
    %113 = math.exp %112 : vector<8x128xf32>
    %cst_33 = arith.constant 1.000000e+00 : f32
    %114 = vector.broadcast %cst_33 : f32 to vector<8x128xf32>
    %115 = arith.addf %114, %113 : vector<8x128xf32>
    %116 = arith.divf %114, %115 : vector<8x128xf32>
    %117 = arith.addf %106, %109 : vector<8x128xf32>
    %118 = arith.negf %117 : vector<8x128xf32>
    %119 = math.exp %118 : vector<8x128xf32>
    %cst_34 = arith.constant 1.000000e+00 : f32
    %120 = vector.broadcast %cst_34 : f32 to vector<8x128xf32>
    %121 = arith.addf %120, %119 : vector<8x128xf32>
    %122 = arith.divf %120, %121 : vector<8x128xf32>
    %123 = vector.broadcast %4 : vector<1x128xf32> to vector<8x128xf32>
    %124 = arith.addf %110, %123 : vector<8x128xf32>
    %125 = arith.mulf %116, %124 : vector<8x128xf32>
    %126 = arith.addf %107, %125 : vector<8x128xf32>
    %127 = math.tanh %126 : vector<8x128xf32>
    %128 = arith.subf %98, %127 : vector<8x128xf32>
    %129 = arith.mulf %122, %128 : vector<8x128xf32>
    %130 = arith.addf %127, %129 : vector<8x128xf32>
    %c3_35 = arith.constant 3 : index
    %c0_36 = arith.constant 0 : index
    %c0_37 = arith.constant 0 : index
    %131 = vector.load %arg5[%c3_35, %c0_36, %c0_37] : memref<8x8x128xf32, #tpu.memory_space<vmem>>, vector<1x8x128xf32>
    %132 = vector.shape_cast %131 : vector<1x8x128xf32> to vector<8x128xf32>
    %133 = vector.shape_cast %130 : vector<8x128xf32> to vector<1x8x128xf32>
    tpu.vector_store %arg5[%c3_35, %c0_36, %c0_37], %133 {strides = array<i32>} : memref<8x8x128xf32, #tpu.memory_space<vmem>>, vector<1x8x128xf32>,
    %c4 = arith.constant 4 : index
    %c0_38 = arith.constant 0 : index
    %c0_39 = arith.constant 0 : index
    %134 = vector.load %arg1[%c4, %c0_38, %c0_39] : memref<8x8x384xf32, #tpu.memory_space<vmem>>, vector<1x8x384xf32>
    %135 = vector.shape_cast %134 : vector<1x8x384xf32> to vector<8x384xf32>
    %cst_40 = arith.constant dense<0.000000e+00> : vector<8x384xf32>
    %136 = tpu.matmul %130, %3, %cst_40 {dimension_numbers = #tpu.dot_dimension_numbers<[1], [0], [0], [1], [0, 0, 1, 1], [], []>} : vector<8x128xf32>, vector<128x384xf32>, vector<8x384xf32> -> vector<8x384xf32>
    %137 = vector.extract_strided_slice %135 {offsets = [0, 0], sizes = [8, 128], strides = [1, 1]} : vector<8x384xf32> to vector<8x128xf32>
    %138 = vector.extract_strided_slice %135 {offsets = [0, 128], sizes = [8, 128], strides = [1, 1]} : vector<8x384xf32> to vector<8x128xf32>
    %139 = vector.extract_strided_slice %135 {offsets = [0, 256], sizes = [8, 128], strides = [1, 1]} : vector<8x384xf32> to vector<8x128xf32>
    %140 = vector.extract_strided_slice %136 {offsets = [0, 0], sizes = [8, 128], strides = [1, 1]} : vector<8x384xf32> to vector<8x128xf32>
    %141 = vector.extract_strided_slice %136 {offsets = [0, 128], sizes = [8, 128], strides = [1, 1]} : vector<8x384xf32> to vector<8x128xf32>
    %142 = vector.extract_strided_slice %136 {offsets = [0, 256], sizes = [8, 128], strides = [1, 1]} : vector<8x384xf32> to vector<8x128xf32>
    %143 = arith.addf %137, %140 : vector<8x128xf32>
    %144 = arith.negf %143 : vector<8x128xf32>
    %145 = math.exp %144 : vector<8x128xf32>
    %cst_41 = arith.constant 1.000000e+00 : f32
    %146 = vector.broadcast %cst_41 : f32 to vector<8x128xf32>
    %147 = arith.addf %146, %145 : vector<8x128xf32>
    %148 = arith.divf %146, %147 : vector<8x128xf32>
    %149 = arith.addf %138, %141 : vector<8x128xf32>
    %150 = arith.negf %149 : vector<8x128xf32>
    %151 = math.exp %150 : vector<8x128xf32>
    %cst_42 = arith.constant 1.000000e+00 : f32
    %152 = vector.broadcast %cst_42 : f32 to vector<8x128xf32>
    %153 = arith.addf %152, %151 : vector<8x128xf32>
    %154 = arith.divf %152, %153 : vector<8x128xf32>
    %155 = vector.broadcast %4 : vector<1x128xf32> to vector<8x128xf32>
    %156 = arith.addf %142, %155 : vector<8x128xf32>
    %157 = arith.mulf %148, %156 : vector<8x128xf32>
    %158 = arith.addf %139, %157 : vector<8x128xf32>
    %159 = math.tanh %158 : vector<8x128xf32>
    %160 = arith.subf %130, %159 : vector<8x128xf32>
    %161 = arith.mulf %154, %160 : vector<8x128xf32>
    %162 = arith.addf %159, %161 : vector<8x128xf32>
    %c4_43 = arith.constant 4 : index
    %c0_44 = arith.constant 0 : index
    %c0_45 = arith.constant 0 : index
    %163 = vector.load %arg5[%c4_43, %c0_44, %c0_45] : memref<8x8x128xf32, #tpu.memory_space<vmem>>, vector<1x8x128xf32>
    %164 = vector.shape_cast %163 : vector<1x8x128xf32> to vector<8x128xf32>
    %165 = vector.shape_cast %162 : vector<8x128xf32> to vector<1x8x128xf32>
    tpu.vector_store %arg5[%c4_43, %c0_44, %c0_45], %165 {strides = array<i32>} : memref<8x8x128xf32, #tpu.memory_space<vmem>>, vector<1x8x128xf32>,
    %c5 = arith.constant 5 : index
    %c0_46 = arith.constant 0 : index
    %c0_47 = arith.constant 0 : index
    %166 = vector.load %arg1[%c5, %c0_46, %c0_47] : memref<8x8x384xf32, #tpu.memory_space<vmem>>, vector<1x8x384xf32>
    %167 = vector.shape_cast %166 : vector<1x8x384xf32> to vector<8x384xf32>
    %cst_48 = arith.constant dense<0.000000e+00> : vector<8x384xf32>
    %168 = tpu.matmul %162, %3, %cst_48 {dimension_numbers = #tpu.dot_dimension_numbers<[1], [0], [0], [1], [0, 0, 1, 1], [], []>} : vector<8x128xf32>, vector<128x384xf32>, vector<8x384xf32> -> vector<8x384xf32>
    %169 = vector.extract_strided_slice %167 {offsets = [0, 0], sizes = [8, 128], strides = [1, 1]} : vector<8x384xf32> to vector<8x128xf32>
    %170 = vector.extract_strided_slice %167 {offsets = [0, 128], sizes = [8, 128], strides = [1, 1]} : vector<8x384xf32> to vector<8x128xf32>
    %171 = vector.extract_strided_slice %167 {offsets = [0, 256], sizes = [8, 128], strides = [1, 1]} : vector<8x384xf32> to vector<8x128xf32>
    %172 = vector.extract_strided_slice %168 {offsets = [0, 0], sizes = [8, 128], strides = [1, 1]} : vector<8x384xf32> to vector<8x128xf32>
    %173 = vector.extract_strided_slice %168 {offsets = [0, 128], sizes = [8, 128], strides = [1, 1]} : vector<8x384xf32> to vector<8x128xf32>
    %174 = vector.extract_strided_slice %168 {offsets = [0, 256], sizes = [8, 128], strides = [1, 1]} : vector<8x384xf32> to vector<8x128xf32>
    %175 = arith.addf %169, %172 : vector<8x128xf32>
    %176 = arith.negf %175 : vector<8x128xf32>
    %177 = math.exp %176 : vector<8x128xf32>
    %cst_49 = arith.constant 1.000000e+00 : f32
    %178 = vector.broadcast %cst_49 : f32 to vector<8x128xf32>
    %179 = arith.addf %178, %177 : vector<8x128xf32>
    %180 = arith.divf %178, %179 : vector<8x128xf32>
    %181 = arith.addf %170, %173 : vector<8x128xf32>
    %182 = arith.negf %181 : vector<8x128xf32>
    %183 = math.exp %182 : vector<8x128xf32>
    %cst_50 = arith.constant 1.000000e+00 : f32
    %184 = vector.broadcast %cst_50 : f32 to vector<8x128xf32>
    %185 = arith.addf %184, %183 : vector<8x128xf32>
    %186 = arith.divf %184, %185 : vector<8x128xf32>
    %187 = vector.broadcast %4 : vector<1x128xf32> to vector<8x128xf32>
    %188 = arith.addf %174, %187 : vector<8x128xf32>
    %189 = arith.mulf %180, %188 : vector<8x128xf32>
    %190 = arith.addf %171, %189 : vector<8x128xf32>
    %191 = math.tanh %190 : vector<8x128xf32>
    %192 = arith.subf %162, %191 : vector<8x128xf32>
    %193 = arith.mulf %186, %192 : vector<8x128xf32>
    %194 = arith.addf %191, %193 : vector<8x128xf32>
    %c5_51 = arith.constant 5 : index
    %c0_52 = arith.constant 0 : index
    %c0_53 = arith.constant 0 : index
    %195 = vector.load %arg5[%c5_51, %c0_52, %c0_53] : memref<8x8x128xf32, #tpu.memory_space<vmem>>, vector<1x8x128xf32>
    %196 = vector.shape_cast %195 : vector<1x8x128xf32> to vector<8x128xf32>
    %197 = vector.shape_cast %194 : vector<8x128xf32> to vector<1x8x128xf32>
    tpu.vector_store %arg5[%c5_51, %c0_52, %c0_53], %197 {strides = array<i32>} : memref<8x8x128xf32, #tpu.memory_space<vmem>>, vector<1x8x128xf32>,
    %c6 = arith.constant 6 : index
    %c0_54 = arith.constant 0 : index
    %c0_55 = arith.constant 0 : index
    %198 = vector.load %arg1[%c6, %c0_54, %c0_55] : memref<8x8x384xf32, #tpu.memory_space<vmem>>, vector<1x8x384xf32>
    %199 = vector.shape_cast %198 : vector<1x8x384xf32> to vector<8x384xf32>
    %cst_56 = arith.constant dense<0.000000e+00> : vector<8x384xf32>
    %200 = tpu.matmul %194, %3, %cst_56 {dimension_numbers = #tpu.dot_dimension_numbers<[1], [0], [0], [1], [0, 0, 1, 1], [], []>} : vector<8x128xf32>, vector<128x384xf32>, vector<8x384xf32> -> vector<8x384xf32>
    %201 = vector.extract_strided_slice %199 {offsets = [0, 0], sizes = [8, 128], strides = [1, 1]} : vector<8x384xf32> to vector<8x128xf32>
    %202 = vector.extract_strided_slice %199 {offsets = [0, 128], sizes = [8, 128], strides = [1, 1]} : vector<8x384xf32> to vector<8x128xf32>
    %203 = vector.extract_strided_slice %199 {offsets = [0, 256], sizes = [8, 128], strides = [1, 1]} : vector<8x384xf32> to vector<8x128xf32>
    %204 = vector.extract_strided_slice %200 {offsets = [0, 0], sizes = [8, 128], strides = [1, 1]} : vector<8x384xf32> to vector<8x128xf32>
    %205 = vector.extract_strided_slice %200 {offsets = [0, 128], sizes = [8, 128], strides = [1, 1]} : vector<8x384xf32> to vector<8x128xf32>
    %206 = vector.extract_strided_slice %200 {offsets = [0, 256], sizes = [8, 128], strides = [1, 1]} : vector<8x384xf32> to vector<8x128xf32>
    %207 = arith.addf %201, %204 : vector<8x128xf32>
    %208 = arith.negf %207 : vector<8x128xf32>
    %209 = math.exp %208 : vector<8x128xf32>
    %cst_57 = arith.constant 1.000000e+00 : f32
    %210 = vector.broadcast %cst_57 : f32 to vector<8x128xf32>
    %211 = arith.addf %210, %209 : vector<8x128xf32>
    %212 = arith.divf %210, %211 : vector<8x128xf32>
    %213 = arith.addf %202, %205 : vector<8x128xf32>
    %214 = arith.negf %213 : vector<8x128xf32>
    %215 = math.exp %214 : vector<8x128xf32>
    %cst_58 = arith.constant 1.000000e+00 : f32
    %216 = vector.broadcast %cst_58 : f32 to vector<8x128xf32>
    %217 = arith.addf %216, %215 : vector<8x128xf32>
    %218 = arith.divf %216, %217 : vector<8x128xf32>
    %219 = vector.broadcast %4 : vector<1x128xf32> to vector<8x128xf32>
    %220 = arith.addf %206, %219 : vector<8x128xf32>
    %221 = arith.mulf %212, %220 : vector<8x128xf32>
    %222 = arith.addf %203, %221 : vector<8x128xf32>
    %223 = math.tanh %222 : vector<8x128xf32>
    %224 = arith.subf %194, %223 : vector<8x128xf32>
    %225 = arith.mulf %218, %224 : vector<8x128xf32>
    %226 = arith.addf %223, %225 : vector<8x128xf32>
    %c6_59 = arith.constant 6 : index
    %c0_60 = arith.constant 0 : index
    %c0_61 = arith.constant 0 : index
    %227 = vector.load %arg5[%c6_59, %c0_60, %c0_61] : memref<8x8x128xf32, #tpu.memory_space<vmem>>, vector<1x8x128xf32>
    %228 = vector.shape_cast %227 : vector<1x8x128xf32> to vector<8x128xf32>
    %229 = vector.shape_cast %226 : vector<8x128xf32> to vector<1x8x128xf32>
    tpu.vector_store %arg5[%c6_59, %c0_60, %c0_61], %229 {strides = array<i32>} : memref<8x8x128xf32, #tpu.memory_space<vmem>>, vector<1x8x128xf32>,
    %c7 = arith.constant 7 : index
    %c0_62 = arith.constant 0 : index
    %c0_63 = arith.constant 0 : index
    %230 = vector.load %arg1[%c7, %c0_62, %c0_63] : memref<8x8x384xf32, #tpu.memory_space<vmem>>, vector<1x8x384xf32>
    %231 = vector.shape_cast %230 : vector<1x8x384xf32> to vector<8x384xf32>
    %cst_64 = arith.constant dense<0.000000e+00> : vector<8x384xf32>
    %232 = tpu.matmul %226, %3, %cst_64 {dimension_numbers = #tpu.dot_dimension_numbers<[1], [0], [0], [1], [0, 0, 1, 1], [], []>} : vector<8x128xf32>, vector<128x384xf32>, vector<8x384xf32> -> vector<8x384xf32>
    %233 = vector.extract_strided_slice %231 {offsets = [0, 0], sizes = [8, 128], strides = [1, 1]} : vector<8x384xf32> to vector<8x128xf32>
    %234 = vector.extract_strided_slice %231 {offsets = [0, 128], sizes = [8, 128], strides = [1, 1]} : vector<8x384xf32> to vector<8x128xf32>
    %235 = vector.extract_strided_slice %231 {offsets = [0, 256], sizes = [8, 128], strides = [1, 1]} : vector<8x384xf32> to vector<8x128xf32>
    %236 = vector.extract_strided_slice %232 {offsets = [0, 0], sizes = [8, 128], strides = [1, 1]} : vector<8x384xf32> to vector<8x128xf32>
    %237 = vector.extract_strided_slice %232 {offsets = [0, 128], sizes = [8, 128], strides = [1, 1]} : vector<8x384xf32> to vector<8x128xf32>
    %238 = vector.extract_strided_slice %232 {offsets = [0, 256], sizes = [8, 128], strides = [1, 1]} : vector<8x384xf32> to vector<8x128xf32>
    %239 = arith.addf %233, %236 : vector<8x128xf32>
    %240 = arith.negf %239 : vector<8x128xf32>
    %241 = math.exp %240 : vector<8x128xf32>
    %cst_65 = arith.constant 1.000000e+00 : f32
    %242 = vector.broadcast %cst_65 : f32 to vector<8x128xf32>
    %243 = arith.addf %242, %241 : vector<8x128xf32>
    %244 = arith.divf %242, %243 : vector<8x128xf32>
    %245 = arith.addf %234, %237 : vector<8x128xf32>
    %246 = arith.negf %245 : vector<8x128xf32>
    %247 = math.exp %246 : vector<8x128xf32>
    %cst_66 = arith.constant 1.000000e+00 : f32
    %248 = vector.broadcast %cst_66 : f32 to vector<8x128xf32>
    %249 = arith.addf %248, %247 : vector<8x128xf32>
    %250 = arith.divf %248, %249 : vector<8x128xf32>
    %251 = vector.broadcast %4 : vector<1x128xf32> to vector<8x128xf32>
    %252 = arith.addf %238, %251 : vector<8x128xf32>
    %253 = arith.mulf %244, %252 : vector<8x128xf32>
    %254 = arith.addf %235, %253 : vector<8x128xf32>
    %255 = math.tanh %254 : vector<8x128xf32>
    %256 = arith.subf %226, %255 : vector<8x128xf32>
    %257 = arith.mulf %250, %256 : vector<8x128xf32>
    %258 = arith.addf %255, %257 : vector<8x128xf32>
    %c7_67 = arith.constant 7 : index
    %c0_68 = arith.constant 0 : index
    %c0_69 = arith.constant 0 : index
    %259 = vector.load %arg5[%c7_67, %c0_68, %c0_69] : memref<8x8x128xf32, #tpu.memory_space<vmem>>, vector<1x8x128xf32>
    %260 = vector.shape_cast %259 : vector<1x8x128xf32> to vector<8x128xf32>
    %261 = vector.shape_cast %258 : vector<8x128xf32> to vector<1x8x128xf32>
    tpu.vector_store %arg5[%c7_67, %c0_68, %c0_69], %261 {strides = array<i32>} : memref<8x8x128xf32, #tpu.memory_space<vmem>>, vector<1x8x128xf32>,
    %c0_70 = arith.constant 0 : index
    %c0_71 = arith.constant 0 : index
    %262 = vector.load %arg7[%c0_70, %c0_71] : memref<8x128xf32, #tpu.memory_space<vmem>>, vector<8x128xf32>
    tpu.vector_store %arg7[%c0_70, %c0_71], %258 {strides = array<i32>} : memref<8x128xf32, #tpu.memory_space<vmem>>, vector<8x128xf32>,
    %c0_i32_72 = arith.constant 0 : i32
    %263 = arith.cmpi eq, %arg0, %c0_i32_72 : i32
    %264 = arith.extui %263 : i1 to i32
    %c0_i32_73 = arith.constant 0 : i32
    %265 = arith.cmpi ne, %264, %c0_i32_73 : i32
    scf.if %265 {
      %c0_74 = arith.constant 0 : index
      %c0_75 = arith.constant 0 : index
      %266 = vector.load %arg6[%c0_74, %c0_75] : memref<8x128xf32, #tpu.memory_space<vmem>>, vector<8x128xf32>
      tpu.vector_store %arg6[%c0_74, %c0_75], %258 {strides = array<i32>} : memref<8x128xf32, #tpu.memory_space<vmem>>, vector<8x128xf32>,
    } else {
    }
    return
  }
  func.func @transform_0(%arg0: i32) -> (i32, i32, i32) {
    %c0_i32 = arith.constant 0 : i32
    %c0_i32_0 = arith.constant 0 : i32
    %c0_i32_1 = arith.constant 0 : i32
    return %arg0, %c0_i32, %c0_i32_0 : i32, i32, i32
  }
  func.func @transform_1(%arg0: i32) -> (i32, i32) {
    %c0_i32 = arith.constant 0 : i32
    %c0_i32_0 = arith.constant 0 : i32
    %c0_i32_1 = arith.constant 0 : i32
    return %c0_i32, %c0_i32_0 : i32, i32
  }
  func.func @transform_2(%arg0: i32) -> (i32, i32) {
    %c0_i32 = arith.constant 0 : i32
    %c0_i32_0 = arith.constant 0 : i32
    %c0_i32_1 = arith.constant 0 : i32
    return %c0_i32, %c0_i32_0 : i32, i32
  }
  func.func @transform_3(%arg0: i32) -> (i32, i32) {
    %c0_i32 = arith.constant 0 : i32
    %c0_i32_0 = arith.constant 0 : i32
    %c0_i32_1 = arith.constant 0 : i32
    return %c0_i32, %c0_i32_0 : i32, i32
  }
  func.func @transform_4(%arg0: i32) -> (i32, i32, i32) {
    %c0_i32 = arith.constant 0 : i32
    %c0_i32_0 = arith.constant 0 : i32
    %c0_i32_1 = arith.constant 0 : i32
    return %arg0, %c0_i32, %c0_i32_0 : i32, i32, i32
  }
  func.func @transform_5(%arg0: i32) -> (i32, i32) {
    %c0_i32 = arith.constant 0 : i32
    %c0_i32_0 = arith.constant 0 : i32
    %c0_i32_1 = arith.constant 0 : i32
    return %c0_i32, %c0_i32_0 : i32, i32
  }
}

</mosaic_0001>

<bundles_post_ra>
// kernel: tpu_custom_call.1
= control target key start
LH: loop header
LB: loop body
LE: loop exit
PB: predicated region body
PF: predicated region fallthrough
CT: control target
= control target key end

     0   :  { %11 = vsyncpa [#allocation4], 0  ;;  %s3090_s0 = inlined_call_operand.hbm [shape: f32[8,8,384], index: 0, kind: input, shape index: {}]   ;;  %s3091_s1 = inlined_call_operand.hbm [shape: f32[8,128], index: 1, kind: input, shape index: {}]   ;;  %s3092_s2 = inlined_call_operand.hbm [shape: f32[128,384], index: 2, kind: input, shape index: {}]   ;;  %s3093_s3 = inlined_call_operand.vmem [shape: f32[1,128], index: 3, kind: input, shape index: {}]   ;;  %s3094_s4 = inlined_call_operand.hbm [shape: f32[8,8,128], index: 4, kind: output, shape index: {0}]   ;;  %s3095_s5 = inlined_call_operand.hbm [shape: f32[8,128], index: 5, kind: output, shape index: {1}]  }
   0x1   :  { %12 = vsyncpa [#allocation7], 0 }
   0x2   :  { %13 = vsyncpa [#allocation5], 0 }
   0x3   :  { %14 = vsyncpa [#allocation11], 0  ;;  %s2592_s18 = smov [#allocation6]   ;;  %s2593_s20 = smov [#allocation3]  }
   0x4   :  { %s33_s19 = sshll.u32 %s2592_s18, 4  ;;  %s20_s21 = sshll.u32 %s2593_s20, 4  ;;  %s34_s19 = int_to_ptr.vmem [resolvable:$true] %s33_s19  ;;  %s2634_s21 = int_to_ptr.vmem [resolvable:$true] %s20_s21 }
   0x5   :  { %s2474_s24 = scalar_lea.hbm %s3091_s1, 128 }
   0x6   :  { %p2475_p0 = scmp.ne.s32.totalorder %s3091_s1, %s2474_s24  ;;  %p2478_p1 = scmp.lt.u32.totalorder %s2474_s24, %s3091_s1 }
   0x8   :  { %p2480_p2 = pnand %p2478_p1, %p2475_p0 }
   0xa   :  { %2483 = shalt.err (!%p2480_p2)
}
   0xb   :  { %s2484_s29 = scalar_lea.vmem %s34_s19, 128  ;;  %p2489_p4 = scmp.lt.s32.totalorder %s34_s19, %s34_s19 }
   0xc   :  { %p2485_p3 = scmp.ne.s32.totalorder %s34_s19, %s2484_s29  ;;  %p2490_p5 = scmp.lt.s32.totalorder %s2484_s29, %s2484_s29 }
   0xe   :  { %p2491_p6 = por %p2490_p5, %p2489_p4 }
  0x10   :  { %p2492_p7 = pnand %p2491_p6, %p2485_p3 }
  0x12   :  { %2495 = shalt.err (!%p2492_p7)
}
  0x13   :  { %36 = dma.hbm_to_vmem [thread:$0]  %s3091_s1, 128, %s34_s19, [#allocation7]  }
  0x14   :  { %s2496_s9 = scalar_lea.hbm %s3090_s0, 3072 }
  0x15   :  { %p2497_p8 = scmp.ne.s32.totalorder %s3090_s0, %s2496_s9  ;;  %p2500_p9 = scmp.lt.u32.totalorder %s2496_s9, %s3090_s0 }
  0x17   :  { %p2502_p10 = pnand %p2500_p9, %p2497_p8 }
  0x19   :  { %2505 = shalt.err (!%p2502_p10)
}
  0x1a   :  { %s2506_s14 = scalar_lea.vmem %s2634_s21, 3072  ;;  %p2511_p12 = scmp.lt.s32.totalorder %s2634_s21, %s2634_s21 }
  0x1b   :  { %p2507_p11 = scmp.ne.s32.totalorder %s2634_s21, %s2506_s14  ;;  %p2512_p13 = scmp.lt.s32.totalorder %s2506_s14, %s2506_s14 }
  0x1d   :  { %p2513_p0 = por %p2512_p13, %p2511_p12 }
  0x1f   :  { %p2514_p1 = pnand %p2513_p0, %p2507_p11 }
  0x21   :  { %2517 = shalt.err (!%p2514_p1)
}
  0x22   :  { %s2594_s1 = smov 384   ;;  %s2595_s15 = smov 24  }
  0x23   :  { %26 = dma.hbm_to_vmem [thread:$0]  %s3090_s0, 3072, %s2634_s21, [#allocation4], %s2594_s1, %s2594_s1, %s2595_s15  }
  0x24   :  { %s2596_s18 = smov [#allocation8]   ;;  %s2518_s23 = scalar_lea.hbm %s3092_s2, 6144 }
  0x25   :  { %s42_s19 = sshll.u32 %s2596_s18, 4  ;;  %p2519_p2 = scmp.ne.s32.totalorder %s3092_s2, %s2518_s23  ;;  %s43_s19 = int_to_ptr.vmem [resolvable:$true] %s42_s19 }
  0x26   :  { %p2522_p3 = scmp.lt.u32.totalorder %s2518_s23, %s3092_s2 }
  0x28   :  { %p2524_p4 = pnand %p2522_p3, %p2519_p2 }
  0x2a   :  { %2527 = shalt.err (!%p2524_p4)
}
  0x2b   :  { %s2528_s28 = scalar_lea.vmem %s43_s19, 6144  ;;  %p2533_p6 = scmp.lt.s32.totalorder %s43_s19, %s43_s19 }
  0x2c   :  { %p2529_p5 = scmp.ne.s32.totalorder %s43_s19, %s2528_s28  ;;  %p2534_p7 = scmp.lt.s32.totalorder %s2528_s28, %s2528_s28 }
  0x2e   :  { %p2535_p8 = por %p2534_p7, %p2533_p6 }
  0x30   :  { %p2536_p9 = pnand %p2535_p8, %p2529_p5 }
  0x32   :  { %2539 = shalt.err (!%p2536_p9)
}
  0x33   :  { %48 = dma.hbm_to_vmem [thread:$0]  %s3092_s2, 6144, %s43_s19, [#allocation7], %s2594_s1, %s2594_s1, %s2595_s15  }
  0x34   :  { %2584 = dma.done.wait [#allocation4], 3072  }
  0x35   :  { %2585 = vsyncadd [#allocation4], 4294964224 }
  0x36   :  { %2586 = dma.done.wait [#allocation7], 6272  }
  0x37   :  { %2587 = vsyncadd [#allocation7], 4294961024  ;;  %v2597_v0 = vmov 0.0|0.0   ;;  %v2598_v1 = vmov 0.0   ;;  %vm2599_vm0 = vmmov 0   ;;  %v67_v2 = vld [vmem:[#allocation8 + $0x8] sm:$0xff] }
  0x38   :  { %1966 = vmatprep.subr.bf16.mxu1 %v2597_v0  ;;  %183 = vmatprep.mubr.f32.mxu0 %v2598_v1  ;;  %v70_v3 = vld [vmem:[#allocation8 + $0x20] sm:$0xff]  ;;  %v69_v6 = vld [vmem:[#allocation8 + $0x18] sm:$0xff]  ;;  %v76_v8 = vld [vmem:[#allocation8 + $0x50] sm:$0xff]  ;;  %s2601_s6 = smov [#allocation10]  }
  0x39   :  { %1686 = vmatprep.mubr.msk.f32.mxu1 %vm2599_vm0, %v2598_v1  ;;  %v66_v4 = vld [vmem:[#allocation8] sm:$0xff]  ;;  %v2681_v5 = vpack.c.bf16 %v70_v3, %v67_v2  ;;  %v73_v7 = vld [vmem:[#allocation8 + $0x38] sm:$0xff]  ;;  %v72_v11 = vld [vmem:[#allocation8 + $0x30] sm:$0xff]  ;;  %s1487_s7 = sshll.u32 %s2601_s6, 4  ;;  %s3059_s7 = int_to_ptr.vmem [resolvable:$true] %s1487_s7 }
  0x3a   :  { %v2683_v9 = vpack.c.bf16 %v69_v6, %v66_v4  ;;  %v2685_v10 = vpack.c.bf16 %v76_v8, %v73_v7  ;;  %v75_v12 = vld [vmem:[#allocation8 + $0x48] sm:$0xff]  ;;  %v82_v14 = vld [vmem:[#allocation8 + $0x80] sm:$0xff]  ;;  %v81_v18 = vld [vmem:[#allocation8 + $0x78] sm:$0xff] }
  0x3b   :  { %v79_v13 = vld [vmem:[#allocation8 + $0x68] sm:$0xff]  ;;  %1935 = vmatprep.subr.bf16.mxu0 %v2681_v5  ;;  %v2689_v15 = vpack.c.bf16 %v75_v12, %v72_v11  ;;  %v78_v17 = vld [vmem:[#allocation8 + $0x60] sm:$0xff]  ;;  %v85_v19 = vld [vmem:[#allocation8 + $0x98] sm:$0xff] }
  0x3c   :  { %1937 = vmatpush1.bf16.msra.mxu0 %v2683_v9  ;;  %v2692_v16 = vpack.c.bf16 %v82_v14, %v79_v13  ;;  %v88_v20 = vld [vmem:[#allocation8 + $0xb0] sm:$0xff]  ;;  %v2695_v21 = vpack.c.bf16 %v81_v18, %v78_v17  ;;  %v87_v24 = vld [vmem:[#allocation8 + $0xa8] sm:$0xff]  ;;  %v94_v28 = vld [vmem:[#allocation8 + $0xe0] sm:$0xff] }
  0x3d   :  { %1939 = vmatprep.subr.bf16.mxu0 %v2685_v10  ;;  %v84_v22 = vld [vmem:[#allocation8 + $0x90] sm:$0xff]  ;;  %v2698_v23 = vpack.c.bf16 %v88_v20, %v85_v19  ;;  %v71_v26 = vld [vmem:[#allocation8 + $0x28] sm:$0xff]  ;;  %v74_v30 = vld [vmem:[#allocation8 + $0x40] sm:$0xff] }
  0x3e   :  { %v68_v25 = vld [vmem:[#allocation8 + $0x10] sm:$0xff]  ;;  %v91_v27 = vld [vmem:[#allocation8 + $0xc8] sm:$0xff]  ;;  %v77_v31 = vld [vmem:[#allocation8 + $0x58] sm:$0xff]  ;;  %v2703_v32 = vpack.c.bf16 %v87_v24, %v84_v22 }
  0x3f   :  { %v2700_v29 = vpack.c.bf16 %v71_v26, %v68_v25  ;;  %v90_v33 = vld [vmem:[#allocation8 + $0xc0] sm:$0xff]  ;;  %v2706_v34 = vpack.c.bf16 %v77_v31, %v74_v30  ;;  %v2709_v35 = vpack.c.bf16 %v94_v28, %v91_v27  ;;  %v93_v36 = vld [vmem:[#allocation8 + $0xd8] sm:$0xff]  ;;  %v80_v37 = vld [vmem:[#allocation8 + $0x70] sm:$0xff] }
  0x40   :  { %1941 = vmatpush1.bf16.msra.mxu0 %v2689_v15  ;;  %v83_v38 = vld [vmem:[#allocation8 + $0x88] sm:$0xff]  ;;  %v97_v39 = vld [vmem:[#allocation8 + $0xf8] sm:$0xff]  ;;  %v100_v40 = vld [vmem:[#allocation8 + $0x110] sm:$0xff]  ;;  %v2713_v41 = vpack.c.bf16 %v93_v36, %v90_v33 }
  0x41   :  { %1943 = vmatprep.subr.bf16.mxu0 %v2692_v16  ;;  %1968 = vmatpush3.bf16.msra.mxu1 %v2700_v29  ;;  %v96_v42 = vld [vmem:[#allocation8 + $0xf0] sm:$0xff]  ;;  %v2716_v43 = vpack.c.bf16 %v83_v38, %v80_v37  ;;  %v2719_v44 = vpack.c.bf16 %v100_v40, %v97_v39  ;;  %v99_v45 = vld [vmem:[#allocation8 + $0x108] sm:$0xff]  ;;  %v86_v46 = vld [vmem:[#allocation8 + $0xa0] sm:$0xff] }
  0x42   :  { %1969 = vmatprep.subr.bf16.mxu1 %v2597_v0  ;;  %v89_v47 = vld [vmem:[#allocation8 + $0xb8] sm:$0xff]  ;;  %v103_v48 = vld [vmem:[#allocation8 + $0x128] sm:$0xff]  ;;  %v106_v49 = vld [vmem:[#allocation8 + $0x140] sm:$0xff]  ;;  %v2723_v50 = vpack.c.bf16 %v99_v45, %v96_v42 }
  0x43   :  { %v102_v51 = vld [vmem:[#allocation8 + $0x120] sm:$0xff]  ;;  %v2726_v52 = vpack.c.bf16 %v89_v47, %v86_v46  ;;  %v2729_v53 = vpack.c.bf16 %v106_v49, %v103_v48  ;;  %v105_v54 = vld [vmem:[#allocation8 + $0x138] sm:$0xff]  ;;  %v92_v55 = vld [vmem:[#allocation8 + $0xd0] sm:$0xff] }
  0x44   :  { %1945 = vmatpush1.bf16.msra.mxu0 %v2695_v21  ;;  %v95_v56 = vld [vmem:[#allocation8 + $0xe8] sm:$0xff]  ;;  %v109_v57 = vld [vmem:[#allocation8 + $0x158] sm:$0xff]  ;;  %v112_v58 = vld [vmem:[#allocation8 + $0x170] sm:$0xff]  ;;  %v2733_v59 = vpack.c.bf16 %v105_v54, %v102_v51 }
  0x45   :  { %1947 = vmatprep.subr.bf16.mxu0 %v2698_v23  ;;  %1971 = vmatpush3.bf16.msra.mxu1 %v2706_v34  ;;  %v108_v60 = vld [vmem:[#allocation8 + $0x150] sm:$0xff]  ;;  %v2736_v61 = vpack.c.bf16 %v95_v56, %v92_v55  ;;  %v2739_v62 = vpack.c.bf16 %v112_v58, %v109_v57  ;;  %v111_v63 = vld [vmem:[#allocation8 + $0x168] sm:$0xff]  ;;  %v98_v2 = vld [vmem:[#allocation8 + $0x100] sm:$0xff] }
  0x46   :  { %1972 = vmatprep.subr.bf16.mxu1 %v2597_v0  ;;  %v101_v3 = vld [vmem:[#allocation8 + $0x118] sm:$0xff]  ;;  %v2743_v4 = vpack.c.bf16 %v111_v63, %v108_v60  ;;  %v104_v7 = vld [vmem:[#allocation8 + $0x130] sm:$0xff]  ;;  %v107_v8 = vld [vmem:[#allocation8 + $0x148] sm:$0xff] }
  0x47   :  { %v2746_v6 = vpack.c.bf16 %v101_v3, %v98_v2  ;;  %v2751_v11 = vld [vmem:[#allocation6] sm:$0xff]  ;;  %v2754_v12 = vpack.c.bf16 %v107_v8, %v104_v7  ;;  %v110_v13 = vld [vmem:[#allocation8 + $0x160] sm:$0xff]  ;;  %v118_v40 = vld [vmem:[#allocation3 + $0x10] sm:$0xff] }
  0x48   :  { %1949 = vmatpush1.bf16.msra.mxu0 %v2703_v32  ;;  %v113_v14 = vld [vmem:[#allocation8 + $0x178] sm:$0xff]  ;;  %v117_v25 = vld [vmem:[#allocation3 + $0x8] sm:$0xff]  ;;  %v289_v55 = vld [vmem:[#allocation3 + $0x18] sm:$0xff] }
  0x49   :  { %1951 = vmatprep.subr.bf16.mxu0 %v2709_v35  ;;  %1974 = vmatpush3.bf16.msra.mxu1 %v2716_v43  ;;  %v2760_v17 = vpack.c.bf16 %v113_v14, %v110_v13  ;;  %v116_v18 = vld [vmem:[#allocation3] sm:$0xff] }
  0x4a   :  { %1975 = vmatprep.subr.bf16.mxu1 %v2597_v0  ;;  %v2804_v36 = vld [vmem:[%s3093_s3] ss:$0 sm:$0xff]  ;;  %s2600_s3 = smov [#allocation9]  }
  0x4b   :  { %v290_v3 = vld [vmem:[#allocation3 + $0x20] sm:$0xff]  ;;  %s1474_s30 = sshll.u32 %s2600_s3, 4  ;;  %s1475_s30 = int_to_ptr.vmem [resolvable:$true] %s1474_s30 }
  0x4c   :  { %1953 = vmatpush1.bf16.msra.mxu0 %v2713_v41  ;;  %s2540_s8 = scalar_lea.vmem %s1475_s30, 1024  ;;  %p2545_p11 = scmp.lt.s32.totalorder %s1475_s30, %s1475_s30 }
  0x4d   :  { %1955 = vmatprep.subr.bf16.mxu0 %v2719_v44  ;;  %1977 = vmatpush3.bf16.msra.mxu1 %v2726_v52  ;;  %p2541_p10 = scmp.ne.s32.totalorder %s1475_s30, %s2540_s8  ;;  %p2546_p12 = scmp.lt.s32.totalorder %s2540_s8, %s2540_s8 }
  0x4e   :  { %1978 = vmatprep.subr.bf16.mxu1 %v2597_v0 }
  0x4f   :  { %p2547_p13 = por %p2546_p12, %p2545_p11 }
  0x50   :  { %1957 = vmatpush1.bf16.msra.mxu0 %v2723_v50 }
  0x51   :  { %1959 = vmatprep.subr.bf16.mxu0 %v2729_v53  ;;  %1980 = vmatpush3.bf16.msra.mxu1 %v2736_v61  ;;  %p2548_p0 = pnand %p2547_p13, %p2541_p10 }
  0x52   :  { %1981 = vmatprep.subr.bf16.mxu1 %v2597_v0 }
  0x54   :  { %1961 = vmatpush1.bf16.msra.mxu0 %v2733_v59 }
  0x55   :  { %1963 = vmatprep.subr.bf16.mxu0 %v2739_v62  ;;  %1983 = vmatpush3.bf16.msra.mxu1 %v2746_v6 }
  0x56   :  { %1984 = vmatprep.subr.bf16.mxu1 %v2597_v0 }
  0x58   :  { %1965 = vmatpush1.bf16.msra.mxu0 %v2743_v4 }
  0x59   :  { %1991 = vmatprep.subr.bf16.mxu0 %v2681_v5  ;;  %1986 = vmatpush3.bf16.msra.mxu1 %v2754_v12 }
  0x5a   :  { %1987 = vmatprep.subr.bf16.mxu1 %v2597_v0 }
  0x5b   :  { %184 = vmatmul.mubr.f32.vlgmr.msra.gmra.mrb[0].mxu0 %v2751_v11 }
  0x5c   :  { %1993 = vmatpush1.bf16.msra.mxu0 %v2683_v9  ;;  %356 = vmatprep.mubr.f32.mxu0 %v2598_v1 }
  0x5d   :  { %1995 = vmatprep.subr.bf16.mxu0 %v2685_v10  ;;  %1989 = vmatpush3.bf16.msra.mxu1 %v2760_v17 }
  0x5e   :  { %2022 = vmatprep.subr.bf16.mxu1 %v2597_v0 }
  0x60   :  { %1997 = vmatpush1.bf16.msra.mxu0 %v2689_v15  ;;  %1687 = vmatmul.mubr.f32.vlgmr.msra.gmra.mrb[0].mxu1 %v2751_v11 }
  0x61   :  { %1999 = vmatprep.subr.bf16.mxu0 %v2692_v16  ;;  %2024 = vmatpush3.bf16.msra.mxu1 %v2700_v29 }
  0x62   :  { %2025 = vmatprep.subr.bf16.mxu1 %v2597_v0  ;;  %1721 = vmatprep.mubr.msk.f32.mxu1 %vm2599_vm0, %v2598_v1 }
  0x64   :  { %2001 = vmatpush1.bf16.msra.mxu0 %v2695_v21 }
  0x65   :  { %2003 = vmatprep.subr.bf16.mxu0 %v2698_v23  ;;  %2027 = vmatpush3.bf16.msra.mxu1 %v2706_v34 }
  0x66   :  { %2028 = vmatprep.subr.bf16.mxu1 %v2597_v0 }
  0x68   :  { %2005 = vmatpush1.bf16.msra.mxu0 %v2703_v32 }
  0x69   :  { %2007 = vmatprep.subr.bf16.mxu0 %v2709_v35  ;;  %2030 = vmatpush3.bf16.msra.mxu1 %v2716_v43 }
  0x6a   :  { %2031 = vmatprep.subr.bf16.mxu1 %v2597_v0 }
  0x6c   :  { %2009 = vmatpush1.bf16.msra.mxu0 %v2713_v41 }
  0x6d   :  { %2011 = vmatprep.subr.bf16.mxu0 %v2719_v44  ;;  %2033 = vmatpush3.bf16.msra.mxu1 %v2726_v52 }
  0x6e   :  { %2034 = vmatprep.subr.bf16.mxu1 %v2597_v0 }
  0x70   :  { %2013 = vmatpush1.bf16.msra.mxu0 %v2723_v50 }
  0x71   :  { %2015 = vmatprep.subr.bf16.mxu0 %v2729_v53  ;;  %2036 = vmatpush3.bf16.msra.mxu1 %v2736_v61 }
  0x72   :  { %2037 = vmatprep.subr.bf16.mxu1 %v2597_v0 }
  0x74   :  { %2017 = vmatpush1.bf16.msra.mxu0 %v2733_v59 }
  0x75   :  { %2019 = vmatprep.subr.bf16.mxu0 %v2739_v62  ;;  %2039 = vmatpush3.bf16.msra.mxu1 %v2746_v6 }
  0x76   :  { %2040 = vmatprep.subr.bf16.mxu1 %v2597_v0 }
  0x78   :  { %2021 = vmatpush1.bf16.msra.mxu0 %v2743_v4 }
  0x79   :  { %2047 = vmatprep.subr.bf16.mxu0 %v2681_v5  ;;  %2042 = vmatpush3.bf16.msra.mxu1 %v2754_v12 }
  0x7a   :  { %2043 = vmatprep.subr.bf16.mxu1 %v2597_v0 }
  0x7d   :  { %2045 = vmatpush3.bf16.msra.mxu1 %v2760_v17 }
  0x7e   :  { %2078 = vmatprep.subr.bf16.mxu1 %v2597_v0 }
 0x12e   :  { %v185_v19 = vpop.f32.mrb[0].mxu0 }
 0x12f   :  { %v260_v20 = vadd.f32 %v185_v19, %v116_v18  ;;  %v187_v22 = vpop.f32.mrb[1].mxu0 }
 0x130   :  { %v267_v27 = vadd.f32 %v187_v22, %v117_v25 }
 0x131   :  { %v1501_v24 = vmul.f32 -1.442695, %v260_v20  ;;  %v291_v20 = vld [vmem:[#allocation3 + $0x28] sm:$0xff] }
 0x132   :  { %v1502_v30 = vmul.f32 -1.442695, %v267_v27 }
 0x133   :  { %2394 = vpow2.f32 %v1501_v24  ;;  %v256_v26 = vpop.f32.mrb[0].mxu1 }
 0x134   :  { %v1688_v28 = vpop.f32.mrb[1].mxu1  ;;  %2396 = vpow2.f32 %v1502_v30  ;;  %v280_v37 = vadd.f32 %v2804_v36, %v256_v26 }
 0x13d   :  { %v2395_v31 = vpop.eup %2394 }
 0x13e   :  { %v264_v33 = vadd.f32 1.0, %v2395_v31  ;;  %v2397_v38 = vpop.eup %2396 }
 0x13f   :  { %v271_v45 = vadd.f32 1.0, %v2397_v38 }
 0x140   :  { %2398 = vrcp.f32 %v264_v33  ;;  %v457_v33 = vld [vmem:[#allocation3 + $0x30] sm:$0xff] }
 0x14a   :  { %v2399_v39 = vpop.eup %2398 }
 0x14b   :  { %v281_v42 = vmul.f32 %v2399_v39, %v280_v37 }
 0x14d   :  { %v282_v46 = vadd.f32 %v281_v42, %v118_v40 }
 0x14f   :  { %2400 = vtanh.f32 %v282_v46  ;;  %v458_v46 = vld [vmem:[#allocation3 + $0x38] sm:$0xff] }
 0x150   :  { %2402 = vrcp.f32 %v271_v45 }
 0x159   :  { %v2401_v47 = vpop.eup %2400 }
 0x15a   :  { %v284_v48 = vsub.f32 %v2751_v11, %v2401_v47  ;;  %v2403_v49 = vpop.eup %2402 }
 0x15c   :  { %v285_v51 = vmul.f32 %v2403_v49, %v284_v48 }
 0x15e   :  { %v2808_v54 = vadd.f32 %v2401_v47, %v285_v51 }
 0x160   :  { %287 = vst [vmem:[#allocation9] sm:$0xff] %v2808_v54  ;;  %357 = vmatmul.mubr.f32.vlgmr.msra.gmra.mrb[2].mxu0 %v2808_v54  ;;  %1722 = vmatmul.mubr.f32.vlgmr.msra.gmra.mrb[2].mxu1 %v2808_v54 }
 0x161   :  { %2049 = vmatpush1.bf16.msra.mxu0 %v2683_v9  ;;  %2080 = vmatpush3.bf16.msra.mxu1 %v2700_v29 }
 0x162   :  { %2051 = vmatprep.subr.bf16.mxu0 %v2685_v10  ;;  %2081 = vmatprep.subr.bf16.mxu1 %v2597_v0 }
 0x163   :  { %524 = vmatprep.mubr.f32.mxu0 %v2598_v1  ;;  %1756 = vmatprep.mubr.msk.f32.mxu1 %vm2599_vm0, %v2598_v1 }
 0x165   :  { %2053 = vmatpush1.bf16.msra.mxu0 %v2689_v15  ;;  %2083 = vmatpush3.bf16.msra.mxu1 %v2706_v34 }
 0x166   :  { %2055 = vmatprep.subr.bf16.mxu0 %v2692_v16  ;;  %2084 = vmatprep.subr.bf16.mxu1 %v2597_v0 }
 0x169   :  { %2057 = vmatpush1.bf16.msra.mxu0 %v2695_v21  ;;  %2086 = vmatpush3.bf16.msra.mxu1 %v2716_v43 }
 0x16a   :  { %2059 = vmatprep.subr.bf16.mxu0 %v2698_v23  ;;  %2087 = vmatprep.subr.bf16.mxu1 %v2597_v0 }
 0x16d   :  { %2061 = vmatpush1.bf16.msra.mxu0 %v2703_v32  ;;  %2089 = vmatpush3.bf16.msra.mxu1 %v2726_v52 }
 0x16e   :  { %2063 = vmatprep.subr.bf16.mxu0 %v2709_v35  ;;  %2090 = vmatprep.subr.bf16.mxu1 %v2597_v0 }
 0x171   :  { %2065 = vmatpush1.bf16.msra.mxu0 %v2713_v41  ;;  %2092 = vmatpush3.bf16.msra.mxu1 %v2736_v61 }
 0x172   :  { %2067 = vmatprep.subr.bf16.mxu0 %v2719_v44  ;;  %2093 = vmatprep.subr.bf16.mxu1 %v2597_v0 }
 0x175   :  { %2069 = vmatpush1.bf16.msra.mxu0 %v2723_v50  ;;  %2095 = vmatpush3.bf16.msra.mxu1 %v2746_v6 }
 0x176   :  { %2071 = vmatprep.subr.bf16.mxu0 %v2729_v53  ;;  %2096 = vmatprep.subr.bf16.mxu1 %v2597_v0 }
 0x179   :  { %2073 = vmatpush1.bf16.msra.mxu0 %v2733_v59  ;;  %2098 = vmatpush3.bf16.msra.mxu1 %v2754_v12 }
 0x17a   :  { %2075 = vmatprep.subr.bf16.mxu0 %v2739_v62  ;;  %2099 = vmatprep.subr.bf16.mxu1 %v2597_v0 }
 0x17d   :  { %2077 = vmatpush1.bf16.msra.mxu0 %v2743_v4  ;;  %2101 = vmatpush3.bf16.msra.mxu1 %v2760_v17 }
 0x17e   :  { %2103 = vmatprep.subr.bf16.mxu0 %v2681_v5  ;;  %2134 = vmatprep.subr.bf16.mxu1 %v2597_v0 }
 0x233   :  { %v358_v56 = vpop.f32.mrb[2].mxu0  ;;  %v429_v57 = vpop.f32.mrb[2].mxu1 }
 0x234   :  { %v433_v58 = vadd.f32 %v358_v56, %v289_v55  ;;  %v360_v60 = vpop.f32.mrb[3].mxu0  ;;  %v1723_v63 = vpop.f32.mrb[3].mxu1  ;;  %v447_v18 = vadd.f32 %v2804_v36, %v429_v57  ;;  %v459_v57 = vld [vmem:[#allocation3 + $0x40] sm:$0xff] }
 0x235   :  { %v440_v7 = vadd.f32 %v360_v60, %v290_v3 }
 0x236   :  { %v1504_v2 = vmul.f32 -1.442695, %v433_v58 }
 0x237   :  { %v1505_v8 = vmul.f32 -1.442695, %v440_v7 }
 0x238   :  { %2404 = vpow2.f32 %v1504_v2 }
 0x239   :  { %2406 = vpow2.f32 %v1505_v8 }
 0x242   :  { %v2405_v11 = vpop.eup %2404 }
 0x243   :  { %v437_v13 = vadd.f32 1.0, %v2405_v11  ;;  %v2407_v14 = vpop.eup %2406 }
 0x244   :  { %v444_v25 = vadd.f32 1.0, %v2407_v14 }
 0x245   :  { %2408 = vrcp.f32 %v437_v13  ;;  %v625_v13 = vld [vmem:[#allocation3 + $0x48] sm:$0xff] }
 0x24f   :  { %v2409_v19 = vpop.eup %2408 }
 0x250   :  { %v448_v22 = vmul.f32 %v2409_v19, %v447_v18 }
 0x252   :  { %v449_v24 = vadd.f32 %v448_v22, %v291_v20 }
 0x254   :  { %2410 = vtanh.f32 %v449_v24 }
 0x255   :  { %2412 = vrcp.f32 %v444_v25  ;;  %v626_v25 = vld [vmem:[#allocation3 + $0x50] sm:$0xff] }
 0x25e   :  { %v2411_v26 = vpop.eup %2410 }
 0x25f   :  { %v451_v27 = vsub.f32 %v2808_v54, %v2411_v26  ;;  %v2413_v28 = vpop.eup %2412 }
 0x261   :  { %v452_v30 = vmul.f32 %v2413_v28, %v451_v27 }
 0x263   :  { %v2850_v31 = vadd.f32 %v2411_v26, %v452_v30 }
 0x265   :  { %455 = vst [vmem:[#allocation9 + $0x8] sm:$0xff] %v2850_v31  ;;  %525 = vmatmul.mubr.f32.vlgmr.msra.gmra.mrb[4].mxu0 %v2850_v31  ;;  %1757 = vmatmul.mubr.f32.vlgmr.msra.gmra.mrb[4].mxu1 %v2850_v31 }
 0x266   :  { %2105 = vmatpush1.bf16.msra.mxu0 %v2683_v9  ;;  %2136 = vmatpush3.bf16.msra.mxu1 %v2700_v29 }
 0x267   :  { %2107 = vmatprep.subr.bf16.mxu0 %v2685_v10  ;;  %2137 = vmatprep.subr.bf16.mxu1 %v2597_v0 }
 0x268   :  { %692 = vmatprep.mubr.f32.mxu0 %v2598_v1  ;;  %1791 = vmatprep.mubr.msk.f32.mxu1 %vm2599_vm0, %v2598_v1 }
 0x26a   :  { %2109 = vmatpush1.bf16.msra.mxu0 %v2689_v15  ;;  %2139 = vmatpush3.bf16.msra.mxu1 %v2706_v34 }
 0x26b   :  { %2111 = vmatprep.subr.bf16.mxu0 %v2692_v16  ;;  %2140 = vmatprep.subr.bf16.mxu1 %v2597_v0 }
 0x26e   :  { %2113 = vmatpush1.bf16.msra.mxu0 %v2695_v21  ;;  %2142 = vmatpush3.bf16.msra.mxu1 %v2716_v43 }
 0x26f   :  { %2115 = vmatprep.subr.bf16.mxu0 %v2698_v23  ;;  %2143 = vmatprep.subr.bf16.mxu1 %v2597_v0 }
 0x272   :  { %2117 = vmatpush1.bf16.msra.mxu0 %v2703_v32  ;;  %2145 = vmatpush3.bf16.msra.mxu1 %v2726_v52 }
 0x273   :  { %2119 = vmatprep.subr.bf16.mxu0 %v2709_v35  ;;  %2146 = vmatprep.subr.bf16.mxu1 %v2597_v0 }
 0x276   :  { %2121 = vmatpush1.bf16.msra.mxu0 %v2713_v41  ;;  %2148 = vmatpush3.bf16.msra.mxu1 %v2736_v61 }
 0x277   :  { %2123 = vmatprep.subr.bf16.mxu0 %v2719_v44  ;;  %2149 = vmatprep.subr.bf16.mxu1 %v2597_v0 }
 0x27a   :  { %2125 = vmatpush1.bf16.msra.mxu0 %v2723_v50  ;;  %2151 = vmatpush3.bf16.msra.mxu1 %v2746_v6 }
 0x27b   :  { %2127 = vmatprep.subr.bf16.mxu0 %v2729_v53  ;;  %2152 = vmatprep.subr.bf16.mxu1 %v2597_v0 }
 0x27e   :  { %2129 = vmatpush1.bf16.msra.mxu0 %v2733_v59  ;;  %2154 = vmatpush3.bf16.msra.mxu1 %v2754_v12 }
 0x27f   :  { %2131 = vmatprep.subr.bf16.mxu0 %v2739_v62  ;;  %2155 = vmatprep.subr.bf16.mxu1 %v2597_v0 }
 0x282   :  { %2133 = vmatpush1.bf16.msra.mxu0 %v2743_v4  ;;  %2157 = vmatpush3.bf16.msra.mxu1 %v2760_v17 }
 0x283   :  { %2159 = vmatprep.subr.bf16.mxu0 %v2681_v5  ;;  %2190 = vmatprep.subr.bf16.mxu1 %v2597_v0 }
 0x338   :  { %v526_v37 = vpop.f32.mrb[4].mxu0  ;;  %v597_v38 = vpop.f32.mrb[4].mxu1 }
 0x339   :  { %v601_v39 = vadd.f32 %v526_v37, %v457_v33  ;;  %v528_v40 = vpop.f32.mrb[5].mxu0  ;;  %v1758_v42 = vpop.f32.mrb[5].mxu1  ;;  %v615_v55 = vadd.f32 %v2804_v36, %v597_v38  ;;  %v627_v38 = vld [vmem:[#allocation3 + $0x58] sm:$0xff] }
 0x33a   :  { %v608_v47 = vadd.f32 %v528_v40, %v458_v46 }
 0x33b   :  { %v1506_v45 = vmul.f32 -1.442695, %v601_v39 }
 0x33c   :  { %v1507_v48 = vmul.f32 -1.442695, %v608_v47 }
 0x33d   :  { %2414 = vpow2.f32 %v1506_v45 }
 0x33e   :  { %2416 = vpow2.f32 %v1507_v48 }
 0x347   :  { %v2415_v49 = vpop.eup %2414 }
 0x348   :  { %v605_v51 = vadd.f32 1.0, %v2415_v49  ;;  %v2417_v54 = vpop.eup %2416 }
 0x349   :  { %v612_v63 = vadd.f32 1.0, %v2417_v54 }
 0x34a   :  { %2418 = vrcp.f32 %v605_v51  ;;  %v793_v51 = vld [vmem:[#allocation3 + $0x60] sm:$0xff] }
 0x354   :  { %v2419_v56 = vpop.eup %2418 }
 0x355   :  { %v616_v58 = vmul.f32 %v2419_v56, %v615_v55 }
 0x357   :  { %v617_v60 = vadd.f32 %v616_v58, %v459_v57 }
 0x359   :  { %2420 = vtanh.f32 %v617_v60 }
 0x35a   :  { %2422 = vrcp.f32 %v612_v63  ;;  %v794_v63 = vld [vmem:[#allocation3 + $0x68] sm:$0xff] }
 0x363   :  { %v2421_v2 = vpop.eup %2420 }
 0x364   :  { %v619_v3 = vsub.f32 %v2850_v31, %v2421_v2  ;;  %v2423_v7 = vpop.eup %2422 }
 0x366   :  { %v620_v8 = vmul.f32 %v2423_v7, %v619_v3 }
 0x368   :  { %v2892_v11 = vadd.f32 %v2421_v2, %v620_v8 }
 0x36a   :  { %623 = vst [vmem:[#allocation9 + $0x10] sm:$0xff] %v2892_v11  ;;  %693 = vmatmul.mubr.f32.vlgmr.msra.gmra.mrb[6].mxu0 %v2892_v11  ;;  %1792 = vmatmul.mubr.f32.vlgmr.msra.gmra.mrb[6].mxu1 %v2892_v11 }
 0x36b   :  { %2161 = vmatpush1.bf16.msra.mxu0 %v2683_v9  ;;  %2192 = vmatpush3.bf16.msra.mxu1 %v2700_v29 }
 0x36c   :  { %2163 = vmatprep.subr.bf16.mxu0 %v2685_v10  ;;  %2193 = vmatprep.subr.bf16.mxu1 %v2597_v0 }
 0x36d   :  { %860 = vmatprep.mubr.f32.mxu0 %v2598_v1  ;;  %1826 = vmatprep.mubr.msk.f32.mxu1 %vm2599_vm0, %v2598_v1 }
 0x36f   :  { %2165 = vmatpush1.bf16.msra.mxu0 %v2689_v15  ;;  %2195 = vmatpush3.bf16.msra.mxu1 %v2706_v34 }
 0x370   :  { %2167 = vmatprep.subr.bf16.mxu0 %v2692_v16  ;;  %2196 = vmatprep.subr.bf16.mxu1 %v2597_v0 }
 0x373   :  { %2169 = vmatpush1.bf16.msra.mxu0 %v2695_v21  ;;  %2198 = vmatpush3.bf16.msra.mxu1 %v2716_v43 }
 0x374   :  { %2171 = vmatprep.subr.bf16.mxu0 %v2698_v23  ;;  %2199 = vmatprep.subr.bf16.mxu1 %v2597_v0 }
 0x377   :  { %2173 = vmatpush1.bf16.msra.mxu0 %v2703_v32  ;;  %2201 = vmatpush3.bf16.msra.mxu1 %v2726_v52 }
 0x378   :  { %2175 = vmatprep.subr.bf16.mxu0 %v2709_v35  ;;  %2202 = vmatprep.subr.bf16.mxu1 %v2597_v0 }
 0x37b   :  { %2177 = vmatpush1.bf16.msra.mxu0 %v2713_v41  ;;  %2204 = vmatpush3.bf16.msra.mxu1 %v2736_v61 }
 0x37c   :  { %2179 = vmatprep.subr.bf16.mxu0 %v2719_v44  ;;  %2205 = vmatprep.subr.bf16.mxu1 %v2597_v0 }
 0x37f   :  { %2181 = vmatpush1.bf16.msra.mxu0 %v2723_v50  ;;  %2207 = vmatpush3.bf16.msra.mxu1 %v2746_v6 }
 0x380   :  { %2183 = vmatprep.subr.bf16.mxu0 %v2729_v53  ;;  %2208 = vmatprep.subr.bf16.mxu1 %v2597_v0 }
 0x383   :  { %2185 = vmatpush1.bf16.msra.mxu0 %v2733_v59  ;;  %2210 = vmatpush3.bf16.msra.mxu1 %v2754_v12 }
 0x384   :  { %2187 = vmatprep.subr.bf16.mxu0 %v2739_v62  ;;  %2211 = vmatprep.subr.bf16.mxu1 %v2597_v0 }
 0x387   :  { %2189 = vmatpush1.bf16.msra.mxu0 %v2743_v4  ;;  %2213 = vmatpush3.bf16.msra.mxu1 %v2760_v17 }
 0x388   :  { %2215 = vmatprep.subr.bf16.mxu0 %v2681_v5  ;;  %2246 = vmatprep.subr.bf16.mxu1 %v2597_v0 }
 0x43d   :  { %v694_v14 = vpop.f32.mrb[6].mxu0  ;;  %v765_v18 = vpop.f32.mrb[6].mxu1 }
 0x43e   :  { %v769_v19 = vadd.f32 %v694_v14, %v625_v13  ;;  %v696_v20 = vpop.f32.mrb[7].mxu0  ;;  %v1793_v22 = vpop.f32.mrb[7].mxu1  ;;  %v783_v33 = vadd.f32 %v2804_v36, %v765_v18  ;;  %v795_v18 = vld [vmem:[#allocation3 + $0x70] sm:$0xff] }
 0x43f   :  { %v776_v26 = vadd.f32 %v696_v20, %v626_v25 }
 0x440   :  { %v1508_v24 = vmul.f32 -1.442695, %v769_v19 }
 0x441   :  { %v1509_v27 = vmul.f32 -1.442695, %v776_v26 }
 0x442   :  { %2424 = vpow2.f32 %v1508_v24 }
 0x443   :  { %2426 = vpow2.f32 %v1509_v27 }
 0x44c   :  { %v2425_v28 = vpop.eup %2424 }
 0x44d   :  { %v773_v30 = vadd.f32 1.0, %v2425_v28  ;;  %v2427_v31 = vpop.eup %2426 }
 0x44e   :  { %v780_v42 = vadd.f32 1.0, %v2427_v31 }
 0x44f   :  { %2428 = vrcp.f32 %v773_v30  ;;  %v961_v30 = vld [vmem:[#allocation3 + $0x78] sm:$0xff] }
 0x459   :  { %v2429_v37 = vpop.eup %2428 }
 0x45a   :  { %v784_v39 = vmul.f32 %v2429_v37, %v783_v33 }
 0x45c   :  { %v785_v40 = vadd.f32 %v784_v39, %v627_v38 }
 0x45e   :  { %2430 = vtanh.f32 %v785_v40 }
 0x45f   :  { %2432 = vrcp.f32 %v780_v42  ;;  %v962_v42 = vld [vmem:[#allocation3 + $0x80] sm:$0xff] }
 0x468   :  { %v2431_v45 = vpop.eup %2430 }
 0x469   :  { %v787_v46 = vsub.f32 %v2892_v11, %v2431_v45  ;;  %v2433_v47 = vpop.eup %2432 }
 0x46b   :  { %v788_v48 = vmul.f32 %v2433_v47, %v787_v46 }
 0x46d   :  { %v2934_v49 = vadd.f32 %v2431_v45, %v788_v48 }
 0x46f   :  { %791 = vst [vmem:[#allocation9 + $0x18] sm:$0xff] %v2934_v49  ;;  %861 = vmatmul.mubr.f32.vlgmr.msra.gmra.mrb[8].mxu0 %v2934_v49  ;;  %1827 = vmatmul.mubr.f32.vlgmr.msra.gmra.mrb[8].mxu1 %v2934_v49 }
 0x470   :  { %2217 = vmatpush1.bf16.msra.mxu0 %v2683_v9  ;;  %2248 = vmatpush3.bf16.msra.mxu1 %v2700_v29 }
 0x471   :  { %2219 = vmatprep.subr.bf16.mxu0 %v2685_v10  ;;  %2249 = vmatprep.subr.bf16.mxu1 %v2597_v0 }
 0x472   :  { %1028 = vmatprep.mubr.f32.mxu0 %v2598_v1  ;;  %1861 = vmatprep.mubr.msk.f32.mxu1 %vm2599_vm0, %v2598_v1 }
 0x474   :  { %2221 = vmatpush1.bf16.msra.mxu0 %v2689_v15  ;;  %2251 = vmatpush3.bf16.msra.mxu1 %v2706_v34 }
 0x475   :  { %2223 = vmatprep.subr.bf16.mxu0 %v2692_v16  ;;  %2252 = vmatprep.subr.bf16.mxu1 %v2597_v0 }
 0x478   :  { %2225 = vmatpush1.bf16.msra.mxu0 %v2695_v21  ;;  %2254 = vmatpush3.bf16.msra.mxu1 %v2716_v43 }
 0x479   :  { %2227 = vmatprep.subr.bf16.mxu0 %v2698_v23  ;;  %2255 = vmatprep.subr.bf16.mxu1 %v2597_v0 }
 0x47c   :  { %2229 = vmatpush1.bf16.msra.mxu0 %v2703_v32  ;;  %2257 = vmatpush3.bf16.msra.mxu1 %v2726_v52 }
 0x47d   :  { %2231 = vmatprep.subr.bf16.mxu0 %v2709_v35  ;;  %2258 = vmatprep.subr.bf16.mxu1 %v2597_v0 }
 0x480   :  { %2233 = vmatpush1.bf16.msra.mxu0 %v2713_v41  ;;  %2260 = vmatpush3.bf16.msra.mxu1 %v2736_v61 }
 0x481   :  { %2235 = vmatprep.subr.bf16.mxu0 %v2719_v44  ;;  %2261 = vmatprep.subr.bf16.mxu1 %v2597_v0 }
 0x484   :  { %2237 = vmatpush1.bf16.msra.mxu0 %v2723_v50  ;;  %2263 = vmatpush3.bf16.msra.mxu1 %v2746_v6 }
 0x485   :  { %2239 = vmatprep.subr.bf16.mxu0 %v2729_v53  ;;  %2264 = vmatprep.subr.bf16.mxu1 %v2597_v0 }
 0x488   :  { %2241 = vmatpush1.bf16.msra.mxu0 %v2733_v59  ;;  %2266 = vmatpush3.bf16.msra.mxu1 %v2754_v12 }
 0x489   :  { %2243 = vmatprep.subr.bf16.mxu0 %v2739_v62  ;;  %2267 = vmatprep.subr.bf16.mxu1 %v2597_v0 }
 0x48c   :  { %2245 = vmatpush1.bf16.msra.mxu0 %v2743_v4  ;;  %2269 = vmatpush3.bf16.msra.mxu1 %v2760_v17 }
 0x48d   :  { %2271 = vmatprep.subr.bf16.mxu0 %v2681_v5  ;;  %2302 = vmatprep.subr.bf16.mxu1 %v2597_v0 }
 0x542   :  { %v862_v54 = vpop.f32.mrb[8].mxu0  ;;  %v933_v55 = vpop.f32.mrb[8].mxu1 }
 0x543   :  { %v937_v56 = vadd.f32 %v862_v54, %v793_v51  ;;  %v864_v57 = vpop.f32.mrb[9].mxu0  ;;  %v1828_v58 = vpop.f32.mrb[9].mxu1  ;;  %v951_v13 = vadd.f32 %v2804_v36, %v933_v55  ;;  %v963_v54 = vld [vmem:[#allocation3 + $0x88] sm:$0xff] }
 0x544   :  { %v944_v2 = vadd.f32 %v864_v57, %v794_v63 }
 0x545   :  { %v1510_v60 = vmul.f32 -1.442695, %v937_v56 }
 0x546   :  { %v1511_v3 = vmul.f32 -1.442695, %v944_v2 }
 0x547   :  { %2434 = vpow2.f32 %v1510_v60 }
 0x548   :  { %2436 = vpow2.f32 %v1511_v3 }
 0x551   :  { %v2435_v7 = vpop.eup %2434 }
 0x552   :  { %v941_v8 = vadd.f32 1.0, %v2435_v7  ;;  %v2437_v11 = vpop.eup %2436 }
 0x553   :  { %v948_v22 = vadd.f32 1.0, %v2437_v11 }
 0x554   :  { %2438 = vrcp.f32 %v941_v8 }
 0x55e   :  { %v2439_v14 = vpop.eup %2438 }
 0x55f   :  { %v952_v19 = vmul.f32 %v2439_v14, %v951_v13 }
 0x561   :  { %v953_v20 = vadd.f32 %v952_v19, %v795_v18  ;;  %v1298_v19 = vld [vmem:[#allocation3 + $0xb0] sm:$0xff] }
 0x563   :  { %2440 = vtanh.f32 %v953_v20 }
 0x564   :  { %2442 = vrcp.f32 %v948_v22 }
 0x56d   :  { %v2441_v24 = vpop.eup %2440 }
 0x56e   :  { %v955_v25 = vsub.f32 %v2934_v49, %v2441_v24  ;;  %v2443_v26 = vpop.eup %2442 }
 0x570   :  { %v956_v27 = vmul.f32 %v2443_v26, %v955_v25 }
 0x572   :  { %v2976_v28 = vadd.f32 %v2441_v24, %v956_v27 }
 0x574   :  { %959 = vst [vmem:[#allocation9 + $0x20] sm:$0xff] %v2976_v28  ;;  %1029 = vmatmul.mubr.f32.vlgmr.msra.gmra.mrb[10].mxu0 %v2976_v28  ;;  %1862 = vmatmul.mubr.f32.vlgmr.msra.gmra.mrb[10].mxu1 %v2976_v28 }
 0x575   :  { %2273 = vmatpush1.bf16.msra.mxu0 %v2683_v9  ;;  %2304 = vmatpush3.bf16.msra.mxu1 %v2700_v29 }
 0x576   :  { %2275 = vmatprep.subr.bf16.mxu0 %v2685_v10  ;;  %2305 = vmatprep.subr.bf16.mxu1 %v2597_v0 }
 0x577   :  { %1196 = vmatprep.mubr.f32.mxu0 %v2598_v1  ;;  %1896 = vmatprep.mubr.msk.f32.mxu1 %vm2599_vm0, %v2598_v1 }
 0x579   :  { %2277 = vmatpush1.bf16.msra.mxu0 %v2689_v15  ;;  %2307 = vmatpush3.bf16.msra.mxu1 %v2706_v34 }
 0x57a   :  { %2279 = vmatprep.subr.bf16.mxu0 %v2692_v16  ;;  %2308 = vmatprep.subr.bf16.mxu1 %v2597_v0 }
 0x57d   :  { %2281 = vmatpush1.bf16.msra.mxu0 %v2695_v21  ;;  %2310 = vmatpush3.bf16.msra.mxu1 %v2716_v43 }
 0x57e   :  { %2283 = vmatprep.subr.bf16.mxu0 %v2698_v23  ;;  %2311 = vmatprep.subr.bf16.mxu1 %v2597_v0 }
 0x581   :  { %2285 = vmatpush1.bf16.msra.mxu0 %v2703_v32  ;;  %2313 = vmatpush3.bf16.msra.mxu1 %v2726_v52 }
 0x582   :  { %2287 = vmatprep.subr.bf16.mxu0 %v2709_v35  ;;  %2314 = vmatprep.subr.bf16.mxu1 %v2597_v0 }
 0x585   :  { %2289 = vmatpush1.bf16.msra.mxu0 %v2713_v41  ;;  %2316 = vmatpush3.bf16.msra.mxu1 %v2736_v61 }
 0x586   :  { %2291 = vmatprep.subr.bf16.mxu0 %v2719_v44  ;;  %2317 = vmatprep.subr.bf16.mxu1 %v2597_v0 }
 0x589   :  { %2293 = vmatpush1.bf16.msra.mxu0 %v2723_v50  ;;  %2319 = vmatpush3.bf16.msra.mxu1 %v2746_v6 }
 0x58a   :  { %2295 = vmatprep.subr.bf16.mxu0 %v2729_v53  ;;  %2320 = vmatprep.subr.bf16.mxu1 %v2597_v0 }
 0x58d   :  { %2297 = vmatpush1.bf16.msra.mxu0 %v2733_v59  ;;  %2322 = vmatpush3.bf16.msra.mxu1 %v2754_v12 }
 0x58e   :  { %2299 = vmatprep.subr.bf16.mxu0 %v2739_v62  ;;  %2323 = vmatprep.subr.bf16.mxu1 %v2597_v0 }
 0x591   :  { %2301 = vmatpush1.bf16.msra.mxu0 %v2743_v4  ;;  %2325 = vmatpush3.bf16.msra.mxu1 %v2760_v17 }
 0x592   :  { %2327 = vmatprep.subr.bf16.mxu0 %v2681_v5  ;;  %2358 = vmatprep.subr.bf16.mxu1 %v2597_v0 }
 0x647   :  { %v1030_v31 = vpop.f32.mrb[10].mxu0  ;;  %v1101_v33 = vpop.f32.mrb[10].mxu1 }
 0x648   :  { %v1105_v37 = vadd.f32 %v1030_v31, %v961_v30  ;;  %v1032_v38 = vpop.f32.mrb[11].mxu0  ;;  %v1863_v39 = vpop.f32.mrb[11].mxu1  ;;  %v1119_v5 = vadd.f32 %v2804_v36, %v1101_v33  ;;  %v1299_v30 = vld [vmem:[#allocation3 + $0xb8] sm:$0xff] }
 0x649   :  { %v1112_v45 = vadd.f32 %v1032_v38, %v962_v42 }
 0x64a   :  { %v1512_v40 = vmul.f32 -1.442695, %v1105_v37 }
 0x64b   :  { %v1513_v46 = vmul.f32 -1.442695, %v1112_v45 }
 0x64c   :  { %2444 = vpow2.f32 %v1512_v40 }
 0x64d   :  { %2446 = vpow2.f32 %v1513_v46 }
 0x656   :  { %v2445_v47 = vpop.eup %2444 }
 0x657   :  { %v1109_v48 = vadd.f32 1.0, %v2445_v47  ;;  %v2447_v49 = vpop.eup %2446 }
 0x658   :  { %v1116_v57 = vadd.f32 1.0, %v2447_v49 }
 0x659   :  { %2448 = vrcp.f32 %v1109_v48 }
 0x663   :  { %v2449_v51 = vpop.eup %2448 }
 0x664   :  { %v1120_v55 = vmul.f32 %v2449_v51, %v1119_v5 }
 0x666   :  { %v1121_v56 = vadd.f32 %v1120_v55, %v963_v54 }
 0x668   :  { %2450 = vtanh.f32 %v1121_v56 }
 0x669   :  { %2452 = vrcp.f32 %v1116_v57 }
 0x672   :  { %v2451_v58 = vpop.eup %2450 }
 0x673   :  { %v1123_v60 = vsub.f32 %v2976_v28, %v2451_v58  ;;  %v2453_v63 = vpop.eup %2452 }
 0x675   :  { %v1124_v2 = vmul.f32 %v2453_v63, %v1123_v60 }
 0x677   :  { %v3018_v3 = vadd.f32 %v2451_v58, %v1124_v2 }
 0x679   :  { %1127 = vst [vmem:[#allocation9 + $0x28] sm:$0xff] %v3018_v3  ;;  %1197 = vmatmul.mubr.f32.vlgmr.msra.gmra.mrb[12].mxu0 %v3018_v3  ;;  %1897 = vmatmul.mubr.f32.vlgmr.msra.gmra.mrb[12].mxu1 %v3018_v3 }
 0x67a   :  { %2329 = vmatpush1.bf16.msra.mxu0 %v2683_v9  ;;  %2360 = vmatpush3.bf16.msra.mxu1 %v2700_v29  ;;  %v1130_v29 = vld [vmem:[#allocation3 + $0x98] sm:$0xff] }
 0x67b   :  { %2331 = vmatprep.subr.bf16.mxu0 %v2685_v10  ;;  %2361 = vmatprep.subr.bf16.mxu1 %v2597_v0 }
 0x67c   :  { %1364 = vmatprep.mubr.f32.mxu0 %v2598_v1  ;;  %1931 = vmatprep.mubr.msk.f32.mxu1 %vm2599_vm0, %v2598_v1  ;;  %v1129_v1 = vld [vmem:[#allocation3 + $0x90] sm:$0xff] }
 0x67e   :  { %2333 = vmatpush1.bf16.msra.mxu0 %v2689_v15  ;;  %2363 = vmatpush3.bf16.msra.mxu1 %v2706_v34 }
 0x67f   :  { %2335 = vmatprep.subr.bf16.mxu0 %v2692_v16  ;;  %2364 = vmatprep.subr.bf16.mxu1 %v2597_v0 }
 0x682   :  { %2337 = vmatpush1.bf16.msra.mxu0 %v2695_v21  ;;  %2366 = vmatpush3.bf16.msra.mxu1 %v2716_v43 }
 0x683   :  { %2339 = vmatprep.subr.bf16.mxu0 %v2698_v23  ;;  %2367 = vmatprep.subr.bf16.mxu1 %v2597_v0 }
 0x686   :  { %2341 = vmatpush1.bf16.msra.mxu0 %v2703_v32  ;;  %2369 = vmatpush3.bf16.msra.mxu1 %v2726_v52 }
 0x687   :  { %2343 = vmatprep.subr.bf16.mxu0 %v2709_v35  ;;  %2370 = vmatprep.subr.bf16.mxu1 %v2597_v0 }
 0x68a   :  { %2345 = vmatpush1.bf16.msra.mxu0 %v2713_v41  ;;  %2372 = vmatpush3.bf16.msra.mxu1 %v2736_v61 }
 0x68b   :  { %2347 = vmatprep.subr.bf16.mxu0 %v2719_v44  ;;  %2373 = vmatprep.subr.bf16.mxu1 %v2597_v0 }
 0x68e   :  { %2349 = vmatpush1.bf16.msra.mxu0 %v2723_v50  ;;  %2375 = vmatpush3.bf16.msra.mxu1 %v2746_v6  ;;  %v1131_v50 = vld [vmem:[#allocation3 + $0xa0] sm:$0xff] }
 0x68f   :  { %2351 = vmatprep.subr.bf16.mxu0 %v2729_v53  ;;  %2376 = vmatprep.subr.bf16.mxu1 %v2597_v0 }
 0x692   :  { %2353 = vmatpush1.bf16.msra.mxu0 %v2733_v59  ;;  %2378 = vmatpush3.bf16.msra.mxu1 %v2754_v12 }
 0x693   :  { %2355 = vmatprep.subr.bf16.mxu0 %v2739_v62  ;;  %2379 = vmatprep.subr.bf16.mxu1 %v2597_v0 }
 0x696   :  { %2357 = vmatpush1.bf16.msra.mxu0 %v2743_v4  ;;  %2381 = vmatpush3.bf16.msra.mxu1 %v2760_v17  ;;  %v1297_v17 = vld [vmem:[#allocation3 + $0xa8] sm:$0xff] }
 0x74c   :  { %v1198_v9 = vpop.f32.mrb[12].mxu0  ;;  %v1269_v10 = vpop.f32.mrb[12].mxu1 }
 0x74d   :  { %v1273_v15 = vadd.f32 %v1198_v9, %v1129_v1  ;;  %v1200_v16 = vpop.f32.mrb[13].mxu0  ;;  %v1898_v21 = vpop.f32.mrb[13].mxu1  ;;  %v1287_v43 = vadd.f32 %v2804_v36, %v1269_v10 }
 0x74e   :  { %v1280_v32 = vadd.f32 %v1200_v16, %v1130_v29 }
 0x74f   :  { %v1514_v23 = vmul.f32 -1.442695, %v1273_v15 }
 0x750   :  { %v1515_v34 = vmul.f32 -1.442695, %v1280_v32 }
 0x751   :  { %2454 = vpow2.f32 %v1514_v23 }
 0x752   :  { %2456 = vpow2.f32 %v1515_v34 }
 0x75b   :  { %v2455_v35 = vpop.eup %2454 }
 0x75c   :  { %v1277_v41 = vadd.f32 1.0, %v2455_v35  ;;  %v2457_v0 = vpop.eup %2456 }
 0x75d   :  { %v1284_v59 = vadd.f32 1.0, %v2457_v0 }
 0x75e   :  { %2458 = vrcp.f32 %v1277_v41 }
 0x768   :  { %v2459_v44 = vpop.eup %2458 }
 0x769   :  { %v1288_v52 = vmul.f32 %v2459_v44, %v1287_v43 }
 0x76b   :  { %v1289_v53 = vadd.f32 %v1288_v52, %v1131_v50 }
 0x76d   :  { %2460 = vtanh.f32 %v1289_v53 }
 0x76e   :  { %2462 = vrcp.f32 %v1284_v59 }
 0x777   :  { %v2461_v61 = vpop.eup %2460 }
 0x778   :  { %v1291_v62 = vsub.f32 %v3018_v3, %v2461_v61  ;;  %v2463_v4 = vpop.eup %2462 }
 0x77a   :  { %v1292_v6 = vmul.f32 %v2463_v4, %v1291_v62 }
 0x77c   :  { %v1293_v12 = vadd.f32 %v2461_v61, %v1292_v6 }
 0x77e   :  { %1295 = vst [vmem:[#allocation9 + $0x30] sm:$0xff] %v1293_v12  ;;  %1365 = vmatmul.mubr.f32.vlgmr.msra.gmra.mrb[14].mxu0 %v1293_v12  ;;  %1932 = vmatmul.mubr.f32.vlgmr.msra.gmra.mrb[14].mxu1 %v1293_v12 }
 0x851   :  { %v1366_v7 = vpop.f32.mrb[14].mxu0  ;;  %v1437_v8 = vpop.f32.mrb[14].mxu1 }
 0x852   :  { %v1441_v11 = vadd.f32 %v1366_v7, %v1297_v17  ;;  %v1368_v13 = vpop.f32.mrb[15].mxu0  ;;  %v1933_v14 = vpop.f32.mrb[15].mxu1  ;;  %v1455_v27 = vadd.f32 %v2804_v36, %v1437_v8 }
 0x853   :  { %v1448_v20 = vadd.f32 %v1368_v13, %v1298_v19 }
 0x854   :  { %v1516_v18 = vmul.f32 -1.442695, %v1441_v11 }
 0x855   :  { %v1517_v22 = vmul.f32 -1.442695, %v1448_v20 }
 0x856   :  { %2464 = vpow2.f32 %v1516_v18 }
 0x857   :  { %2466 = vpow2.f32 %v1517_v22 }
 0x860   :  { %v2465_v24 = vpop.eup %2464 }
 0x861   :  { %v1445_v25 = vadd.f32 1.0, %v2465_v24  ;;  %v2467_v26 = vpop.eup %2466 }
 0x862   :  { %v1452_v37 = vadd.f32 1.0, %v2467_v26 }
 0x863   :  { %2468 = vrcp.f32 %v1445_v25 }
 0x86d   :  { %v2469_v28 = vpop.eup %2468 }
 0x86e   :  { %v1456_v31 = vmul.f32 %v2469_v28, %v1455_v27 }
 0x870   :  { %v1457_v33 = vadd.f32 %v1456_v31, %v1299_v30 }
 0x872   :  { %2470 = vtanh.f32 %v1457_v33 }
 0x873   :  { %2472 = vrcp.f32 %v1452_v37 }
 0x87c   :  { %v2471_v38 = vpop.eup %2470 }
 0x87d   :  { %v1459_v39 = vsub.f32 %v1293_v12, %v2471_v38  ;;  %v2473_v40 = vpop.eup %2472 }
 0x87f   :  { %v1460_v42 = vmul.f32 %v2473_v40, %v1459_v39 }
 0x881   :  { %v1461_v45 = vadd.f32 %v2471_v38, %v1460_v42 }
 0x883   :  { %1463 = vst [vmem:[#allocation9 + $0x38] sm:$0xff] %v1461_v45  ;;  %1468 = vst [vmem:[#allocation10] sm:$0xff] %v1461_v45 }
 0x884   :  { %2551 = shalt.err (!%p2548_p0)
}
 0x885   :  { %s2552_s11 = scalar_lea.hbm %s3094_s4, 1024 }
 0x886   :  { %p2553_p1 = scmp.ne.s32.totalorder %s3094_s4, %s2552_s11  ;;  %p2556_p2 = scmp.lt.u32.totalorder %s2552_s11, %s3094_s4 }
 0x888   :  { %p2558_p3 = pnand %p2556_p2, %p2553_p1 }
 0x88a   :  { %2561 = shalt.err (!%p2558_p3)
}
 0x88b   :  { %s2602_s15 = smov 128   ;;  %s2603_s16 = smov 8  }
 0x88c   :  { %1480 = dma.vmem_to_hbm [thread:$0]  %s1475_s30, 1024, %s3094_s4, [#allocation5], %s2602_s15, %s2602_s15, %s2603_s16  }
 0x88d   :  { %s2562_s19 = scalar_lea.vmem %s3059_s7, 128  ;;  %p2567_p5 = scmp.lt.s32.totalorder %s3059_s7, %s3059_s7 }
 0x88e   :  { %p2563_p4 = scmp.ne.s32.totalorder %s3059_s7, %s2562_s19  ;;  %p2568_p6 = scmp.lt.s32.totalorder %s2562_s19, %s2562_s19 }
 0x890   :  { %p2569_p7 = por %p2568_p6, %p2567_p5 }
 0x892   :  { %p2570_p8 = pnand %p2569_p7, %p2563_p4 }
 0x894   :  { %2573 = shalt.err (!%p2570_p8)
}
 0x895   :  { %s2574_s23 = scalar_lea.hbm %s3095_s5, 128 }
 0x896   :  { %p2575_p9 = scmp.ne.s32.totalorder %s3095_s5, %s2574_s23  ;;  %p2578_p10 = scmp.lt.u32.totalorder %s2574_s23, %s3095_s5 }
 0x898   :  { %p2580_p11 = pnand %p2578_p10, %p2575_p9 }
 0x89a   :  { %2583 = shalt.err (!%p2580_p11)
}
 0x89b   :  { %1490 = dma.vmem_to_hbm [thread:$0]  %s3059_s7, 128, %s3095_s5, [#allocation11]  }
 0x89c   :  { %2588 = dma.done.wait [#allocation5], 1024  }
 0x89d   :  { %2589 = vsyncadd [#allocation5], 4294966272 }
 0x89e   :  { %2590 = dma.done.wait [#allocation11], 128  }
 0x89f   :  { %2591 = vsyncadd [#allocation11], 4294967168 }
 0x8a0   :  { %1497 = vsyncpa [#allocation4], 1 }
 0x8a1   :  { %1498 = vsyncpa [#allocation7], 1 }
 0x8a2   :  { %1499 = vsyncpa [#allocation5], 1 }
 0x8a3   :  { %1500 = vsyncpa [#allocation11], 1 }

// kernel: tpu_custom_call.1
= control target key start
LH: loop header
LB: loop body
LE: loop exit
PB: predicated region body
PF: predicated region fallthrough
CT: control target
= control target key end

     0   :  { %11 = vsyncpa [#allocation4], 0  ;;  %s3090_s0 = inlined_call_operand.hbm [shape: f32[8,8,384], index: 0, kind: input, shape index: {}]   ;;  %s3091_s1 = inlined_call_operand.hbm [shape: f32[8,128], index: 1, kind: input, shape index: {}]   ;;  %s3092_s2 = inlined_call_operand.hbm [shape: f32[128,384], index: 2, kind: input, shape index: {}]   ;;  %s3093_s3 = inlined_call_operand.vmem [shape: f32[1,128], index: 3, kind: input, shape index: {}]   ;;  %s3094_s4 = inlined_call_operand.hbm [shape: f32[8,8,128], index: 4, kind: output, shape index: {0}]   ;;  %s3095_s5 = inlined_call_operand.hbm [shape: f32[8,128], index: 5, kind: output, shape index: {1}]  }
   0x1   :  { %12 = vsyncpa [#allocation7], 0 }
   0x2   :  { %13 = vsyncpa [#allocation5], 0 }
   0x3   :  { %14 = vsyncpa [#allocation11], 0  ;;  %s2592_s18 = smov [#allocation6]   ;;  %s2593_s20 = smov [#allocation3]  }
   0x4   :  { %s33_s19 = sshll.u32 %s2592_s18, 4  ;;  %s20_s21 = sshll.u32 %s2593_s20, 4  ;;  %s34_s19 = int_to_ptr.vmem [resolvable:$true] %s33_s19  ;;  %s2634_s21 = int_to_ptr.vmem [resolvable:$true] %s20_s21 }
   0x5   :  { %s2474_s24 = scalar_lea.hbm %s3091_s1, 128 }
   0x6   :  { %p2475_p0 = scmp.ne.s32.totalorder %s3091_s1, %s2474_s24  ;;  %p2478_p1 = scmp.lt.u32.totalorder %s2474_s24, %s3091_s1 }
   0x8   :  { %p2480_p2 = pnand %p2478_p1, %p2475_p0 }
   0xa   :  { %2483 = shalt.err (!%p2480_p2)
}
   0xb   :  { %s2484_s29 = scalar_lea.vmem %s34_s19, 128  ;;  %p2489_p4 = scmp.lt.s32.totalorder %s34_s19, %s34_s19 }
   0xc   :  { %p2485_p3 = scmp.ne.s32.totalorder %s34_s19, %s2484_s29  ;;  %p2490_p5 = scmp.lt.s32.totalorder %s2484_s29, %s2484_s29 }
   0xe   :  { %p2491_p6 = por %p2490_p5, %p2489_p4 }
  0x10   :  { %p2492_p7 = pnand %p2491_p6, %p2485_p3 }
  0x12   :  { %2495 = shalt.err (!%p2492_p7)
}
  0x13   :  { %36 = dma.hbm_to_vmem [thread:$0]  %s3091_s1, 128, %s34_s19, [#allocation7]  }
  0x14   :  { %s2496_s9 = scalar_lea.hbm %s3090_s0, 3072 }
  0x15   :  { %p2497_p8 = scmp.ne.s32.totalorder %s3090_s0, %s2496_s9  ;;  %p2500_p9 = scmp.lt.u32.totalorder %s2496_s9, %s3090_s0 }
  0x17   :  { %p2502_p10 = pnand %p2500_p9, %p2497_p8 }
  0x19   :  { %2505 = shalt.err (!%p2502_p10)
}
  0x1a   :  { %s2506_s14 = scalar_lea.vmem %s2634_s21, 3072  ;;  %p2511_p12 = scmp.lt.s32.totalorder %s2634_s21, %s2634_s21 }
  0x1b   :  { %p2507_p11 = scmp.ne.s32.totalorder %s2634_s21, %s2506_s14  ;;  %p2512_p13 = scmp.lt.s32.totalorder %s2506_s14, %s2506_s14 }
  0x1d   :  { %p2513_p0 = por %p2512_p13, %p2511_p12 }
  0x1f   :  { %p2514_p1 = pnand %p2513_p0, %p2507_p11 }
  0x21   :  { %2517 = shalt.err (!%p2514_p1)
}
  0x22   :  { %s2594_s1 = smov 384   ;;  %s2595_s15 = smov 24  }
  0x23   :  { %26 = dma.hbm_to_vmem [thread:$0]  %s3090_s0, 3072, %s2634_s21, [#allocation4], %s2594_s1, %s2594_s1, %s2595_s15  }
  0x24   :  { %s2596_s18 = smov [#allocation8]   ;;  %s2518_s23 = scalar_lea.hbm %s3092_s2, 6144 }
  0x25   :  { %s42_s19 = sshll.u32 %s2596_s18, 4  ;;  %p2519_p2 = scmp.ne.s32.totalorder %s3092_s2, %s2518_s23  ;;  %s43_s19 = int_to_ptr.vmem [resolvable:$true] %s42_s19 }
  0x26   :  { %p2522_p3 = scmp.lt.u32.totalorder %s2518_s23, %s3092_s2 }
  0x28   :  { %p2524_p4 = pnand %p2522_p3, %p2519_p2 }
  0x2a   :  { %2527 = shalt.err (!%p2524_p4)
}
  0x2b   :  { %s2528_s28 = scalar_lea.vmem %s43_s19, 6144  ;;  %p2533_p6 = scmp.lt.s32.totalorder %s43_s19, %s43_s19 }
  0x2c   :  { %p2529_p5 = scmp.ne.s32.totalorder %s43_s19, %s2528_s28  ;;  %p2534_p7 = scmp.lt.s32.totalorder %s2528_s28, %s2528_s28 }
  0x2e   :  { %p2535_p8 = por %p2534_p7, %p2533_p6 }
  0x30   :  { %p2536_p9 = pnand %p2535_p8, %p2529_p5 }
  0x32   :  { %2539 = shalt.err (!%p2536_p9)
}
  0x33   :  { %48 = dma.hbm_to_vmem [thread:$0]  %s3092_s2, 6144, %s43_s19, [#allocation7], %s2594_s1, %s2594_s1, %s2595_s15  }
  0x34   :  { %2584 = dma.done.wait [#allocation4], 3072  }
  0x35   :  { %2585 = vsyncadd [#allocation4], 4294964224 }
  0x36   :  { %2586 = dma.done.wait [#allocation7], 6272  }
  0x37   :  { %2587 = vsyncadd [#allocation7], 4294961024  ;;  %v2597_v0 = vmov 0.0|0.0   ;;  %v2598_v1 = vmov 0.0   ;;  %vm2599_vm0 = vmmov 0   ;;  %v67_v2 = vld [vmem:[#allocation8 + $0x8] sm:$0xff] }
  0x38   :  { %1966 = vmatprep.subr.bf16.mxu1 %v2597_v0  ;;  %183 = vmatprep.mubr.f32.mxu0 %v2598_v1  ;;  %v70_v3 = vld [vmem:[#allocation8 + $0x20] sm:$0xff]  ;;  %v69_v6 = vld [vmem:[#allocation8 + $0x18] sm:$0xff]  ;;  %v76_v8 = vld [vmem:[#allocation8 + $0x50] sm:$0xff]  ;;  %s2601_s6 = smov [#allocation10]  }
  0x39   :  { %1686 = vmatprep.mubr.msk.f32.mxu1 %vm2599_vm0, %v2598_v1  ;;  %v66_v4 = vld [vmem:[#allocation8] sm:$0xff]  ;;  %v2681_v5 = vpack.c.bf16 %v70_v3, %v67_v2  ;;  %v73_v7 = vld [vmem:[#allocation8 + $0x38] sm:$0xff]  ;;  %v72_v11 = vld [vmem:[#allocation8 + $0x30] sm:$0xff]  ;;  %s1487_s7 = sshll.u32 %s2601_s6, 4  ;;  %s3059_s7 = int_to_ptr.vmem [resolvable:$true] %s1487_s7 }
  0x3a   :  { %v2683_v9 = vpack.c.bf16 %v69_v6, %v66_v4  ;;  %v2685_v10 = vpack.c.bf16 %v76_v8, %v73_v7  ;;  %v75_v12 = vld [vmem:[#allocation8 + $0x48] sm:$0xff]  ;;  %v82_v14 = vld [vmem:[#allocation8 + $0x80] sm:$0xff]  ;;  %v81_v18 = vld [vmem:[#allocation8 + $0x78] sm:$0xff] }
  0x3b   :  { %v79_v13 = vld [vmem:[#allocation8 + $0x68] sm:$0xff]  ;;  %1935 = vmatprep.subr.bf16.mxu0 %v2681_v5  ;;  %v2689_v15 = vpack.c.bf16 %v75_v12, %v72_v11  ;;  %v78_v17 = vld [vmem:[#allocation8 + $0x60] sm:$0xff]  ;;  %v85_v19 = vld [vmem:[#allocation8 + $0x98] sm:$0xff] }
  0x3c   :  { %1937 = vmatpush1.bf16.msra.mxu0 %v2683_v9  ;;  %v2692_v16 = vpack.c.bf16 %v82_v14, %v79_v13  ;;  %v88_v20 = vld [vmem:[#allocation8 + $0xb0] sm:$0xff]  ;;  %v2695_v21 = vpack.c.bf16 %v81_v18, %v78_v17  ;;  %v87_v24 = vld [vmem:[#allocation8 + $0xa8] sm:$0xff]  ;;  %v94_v28 = vld [vmem:[#allocation8 + $0xe0] sm:$0xff] }
  0x3d   :  { %1939 = vmatprep.subr.bf16.mxu0 %v2685_v10  ;;  %v84_v22 = vld [vmem:[#allocation8 + $0x90] sm:$0xff]  ;;  %v2698_v23 = vpack.c.bf16 %v88_v20, %v85_v19  ;;  %v71_v26 = vld [vmem:[#allocation8 + $0x28] sm:$0xff]  ;;  %v74_v30 = vld [vmem:[#allocation8 + $0x40] sm:$0xff] }
  0x3e   :  { %v68_v25 = vld [vmem:[#allocation8 + $0x10] sm:$0xff]  ;;  %v91_v27 = vld [vmem:[#allocation8 + $0xc8] sm:$0xff]  ;;  %v77_v31 = vld [vmem:[#allocation8 + $0x58] sm:$0xff]  ;;  %v2703_v32 = vpack.c.bf16 %v87_v24, %v84_v22 }
  0x3f   :  { %v2700_v29 = vpack.c.bf16 %v71_v26, %v68_v25  ;;  %v90_v33 = vld [vmem:[#allocation8 + $0xc0] sm:$0xff]  ;;  %v2706_v34 = vpack.c.bf16 %v77_v31, %v74_v30  ;;  %v2709_v35 = vpack.c.bf16 %v94_v28, %v91_v27  ;;  %v93_v36 = vld [vmem:[#allocation8 + $0xd8] sm:$0xff]  ;;  %v80_v37 = vld [vmem:[#allocation8 + $0x70] sm:$0xff] }
  0x40   :  { %1941 = vmatpush1.bf16.msra.mxu0 %v2689_v15  ;;  %v83_v38 = vld [vmem:[#allocation8 + $0x88] sm:$0xff]  ;;  %v97_v39 = vld [vmem:[#allocation8 + $0xf8] sm:$0xff]  ;;  %v100_v40 = vld [vmem:[#allocation8 + $0x110] sm:$0xff]  ;;  %v2713_v41 = vpack.c.bf16 %v93_v36, %v90_v33 }
  0x41   :  { %1943 = vmatprep.subr.bf16.mxu0 %v2692_v16  ;;  %1968 = vmatpush3.bf16.msra.mxu1 %v2700_v29  ;;  %v96_v42 = vld [vmem:[#allocation8 + $0xf0] sm:$0xff]  ;;  %v2716_v43 = vpack.c.bf16 %v83_v38, %v80_v37  ;;  %v2719_v44 = vpack.c.bf16 %v100_v40, %v97_v39  ;;  %v99_v45 = vld [vmem:[#allocation8 + $0x108] sm:$0xff]  ;;  %v86_v46 = vld [vmem:[#allocation8 + $0xa0] sm:$0xff] }
  0x42   :  { %1969 = vmatprep.subr.bf16.mxu1 %v2597_v0  ;;  %v89_v47 = vld [vmem:[#allocation8 + $0xb8] sm:$0xff]  ;;  %v103_v48 = vld [vmem:[#allocation8 + $0x128] sm:$0xff]  ;;  %v106_v49 = vld [vmem:[#allocation8 + $0x140] sm:$0xff]  ;;  %v2723_v50 = vpack.c.bf16 %v99_v45, %v96_v42 }
  0x43   :  { %v102_v51 = vld [vmem:[#allocation8 + $0x120] sm:$0xff]  ;;  %v2726_v52 = vpack.c.bf16 %v89_v47, %v86_v46  ;;  %v2729_v53 = vpack.c.bf16 %v106_v49, %v103_v48  ;;  %v105_v54 = vld [vmem:[#allocation8 + $0x138] sm:$0xff]  ;;  %v92_v55 = vld [vmem:[#allocation8 + $0xd0] sm:$0xff] }
  0x44   :  { %1945 = vmatpush1.bf16.msra.mxu0 %v2695_v21  ;;  %v95_v56 = vld [vmem:[#allocation8 + $0xe8] sm:$0xff]  ;;  %v109_v57 = vld [vmem:[#allocation8 + $0x158] sm:$0xff]  ;;  %v112_v58 = vld [vmem:[#allocation8 + $0x170] sm:$0xff]  ;;  %v2733_v59 = vpack.c.bf16 %v105_v54, %v102_v51 }
  0x45   :  { %1947 = vmatprep.subr.bf16.mxu0 %v2698_v23  ;;  %1971 = vmatpush3.bf16.msra.mxu1 %v2706_v34  ;;  %v108_v60 = vld [vmem:[#allocation8 + $0x150] sm:$0xff]  ;;  %v2736_v61 = vpack.c.bf16 %v95_v56, %v92_v55  ;;  %v2739_v62 = vpack.c.bf16 %v112_v58, %v109_v57  ;;  %v111_v63 = vld [vmem:[#allocation8 + $0x168] sm:$0xff]  ;;  %v98_v2 = vld [vmem:[#allocation8 + $0x100] sm:$0xff] }
  0x46   :  { %1972 = vmatprep.subr.bf16.mxu1 %v2597_v0  ;;  %v101_v3 = vld [vmem:[#allocation8 + $0x118] sm:$0xff]  ;;  %v2743_v4 = vpack.c.bf16 %v111_v63, %v108_v60  ;;  %v104_v7 = vld [vmem:[#allocation8 + $0x130] sm:$0xff]  ;;  %v107_v8 = vld [vmem:[#allocation8 + $0x148] sm:$0xff] }
  0x47   :  { %v2746_v6 = vpack.c.bf16 %v101_v3, %v98_v2  ;;  %v2751_v11 = vld [vmem:[#allocation6] sm:$0xff]  ;;  %v2754_v12 = vpack.c.bf16 %v107_v8, %v104_v7  ;;  %v110_v13 = vld [vmem:[#allocation8 + $0x160] sm:$0xff]  ;;  %v118_v40 = vld [vmem:[#allocation3 + $0x10] sm:$0xff] }
  0x48   :  { %1949 = vmatpush1.bf16.msra.mxu0 %v2703_v32  ;;  %v113_v14 = vld [vmem:[#allocation8 + $0x178] sm:$0xff]  ;;  %v117_v25 = vld [vmem:[#allocation3 + $0x8] sm:$0xff]  ;;  %v289_v55 = vld [vmem:[#allocation3 + $0x18] sm:$0xff] }
  0x49   :  { %1951 = vmatprep.subr.bf16.mxu0 %v2709_v35  ;;  %1974 = vmatpush3.bf16.msra.mxu1 %v2716_v43  ;;  %v2760_v17 = vpack.c.bf16 %v113_v14, %v110_v13  ;;  %v116_v18 = vld [vmem:[#allocation3] sm:$0xff] }
  0x4a   :  { %1975 = vmatprep.subr.bf16.mxu1 %v2597_v0  ;;  %v2804_v36 = vld [vmem:[%s3093_s3] ss:$0 sm:$0xff]  ;;  %s2600_s3 = smov [#allocation9]  }
  0x4b   :  { %v290_v3 = vld [vmem:[#allocation3 + $0x20] sm:$0xff]  ;;  %s1474_s30 = sshll.u32 %s2600_s3, 4  ;;  %s1475_s30 = int_to_ptr.vmem [resolvable:$true] %s1474_s30 }
  0x4c   :  { %1953 = vmatpush1.bf16.msra.mxu0 %v2713_v41  ;;  %s2540_s8 = scalar_lea.vmem %s1475_s30, 1024  ;;  %p2545_p11 = scmp.lt.s32.totalorder %s1475_s30, %s1475_s30 }
  0x4d   :  { %1955 = vmatprep.subr.bf16.mxu0 %v2719_v44  ;;  %1977 = vmatpush3.bf16.msra.mxu1 %v2726_v52  ;;  %p2541_p10 = scmp.ne.s32.totalorder %s1475_s30, %s2540_s8  ;;  %p2546_p12 = scmp.lt.s32.totalorder %s2540_s8, %s2540_s8 }
  0x4e   :  { %1978 = vmatprep.subr.bf16.mxu1 %v2597_v0 }
  0x4f   :  { %p2547_p13 = por %p2546_p12, %p2545_p11 }
  0x50   :  { %1957 = vmatpush1.bf16.msra.mxu0 %v2723_v50 }
  0x51   :  { %1959 = vmatprep.subr.bf16.mxu0 %v2729_v53  ;;  %1980 = vmatpush3.bf16.msra.mxu1 %v2736_v61  ;;  %p2548_p0 = pnand %p2547_p13, %p2541_p10 }
  0x52   :  { %1981 = vmatprep.subr.bf16.mxu1 %v2597_v0 }
  0x54   :  { %1961 = vmatpush1.bf16.msra.mxu0 %v2733_v59 }
  0x55   :  { %1963 = vmatprep.subr.bf16.mxu0 %v2739_v62  ;;  %1983 = vmatpush3.bf16.msra.mxu1 %v2746_v6 }
  0x56   :  { %1984 = vmatprep.subr.bf16.mxu1 %v2597_v0 }
  0x58   :  { %1965 = vmatpush1.bf16.msra.mxu0 %v2743_v4 }
  0x59   :  { %1991 = vmatprep.subr.bf16.mxu0 %v2681_v5  ;;  %1986 = vmatpush3.bf16.msra.mxu1 %v2754_v12 }
  0x5a   :  { %1987 = vmatprep.subr.bf16.mxu1 %v2597_v0 }
  0x5b   :  { %184 = vmatmul.mubr.f32.vlgmr.msra.gmra.mrb[0].mxu0 %v2751_v11 }
  0x5c   :  { %1993 = vmatpush1.bf16.msra.mxu0 %v2683_v9  ;;  %356 = vmatprep.mubr.f32.mxu0 %v2598_v1 }
  0x5d   :  { %1995 = vmatprep.subr.bf16.mxu0 %v2685_v10  ;;  %1989 = vmatpush3.bf16.msra.mxu1 %v2760_v17 }
  0x5e   :  { %2022 = vmatprep.subr.bf16.mxu1 %v2597_v0 }
  0x60   :  { %1997 = vmatpush1.bf16.msra.mxu0 %v2689_v15  ;;  %1687 = vmatmul.mubr.f32.vlgmr.msra.gmra.mrb[0].mxu1 %v2751_v11 }
  0x61   :  { %1999 = vmatprep.subr.bf16.mxu0 %v2692_v16  ;;  %2024 = vmatpush3.bf16.msra.mxu1 %v2700_v29 }
  0x62   :  { %2025 = vmatprep.subr.bf16.mxu1 %v2597_v0  ;;  %1721 = vmatprep.mubr.msk.f32.mxu1 %vm2599_vm0, %v2598_v1 }
  0x64   :  { %2001 = vmatpush1.bf16.msra.mxu0 %v2695_v21 }
  0x65   :  { %2003 = vmatprep.subr.bf16.mxu0 %v2698_v23  ;;  %2027 = vmatpush3.bf16.msra.mxu1 %v2706_v34 }
  0x66   :  { %2028 = vmatprep.subr.bf16.mxu1 %v2597_v0 }
  0x68   :  { %2005 = vmatpush1.bf16.msra.mxu0 %v2703_v32 }
  0x69   :  { %2007 = vmatprep.subr.bf16.mxu0 %v2709_v35  ;;  %2030 = vmatpush3.bf16.msra.mxu1 %v2716_v43 }
  0x6a   :  { %2031 = vmatprep.subr.bf16.mxu1 %v2597_v0 }
  0x6c   :  { %2009 = vmatpush1.bf16.msra.mxu0 %v2713_v41 }
  0x6d   :  { %2011 = vmatprep.subr.bf16.mxu0 %v2719_v44  ;;  %2033 = vmatpush3.bf16.msra.mxu1 %v2726_v52 }
  0x6e   :  { %2034 = vmatprep.subr.bf16.mxu1 %v2597_v0 }
  0x70   :  { %2013 = vmatpush1.bf16.msra.mxu0 %v2723_v50 }
  0x71   :  { %2015 = vmatprep.subr.bf16.mxu0 %v2729_v53  ;;  %2036 = vmatpush3.bf16.msra.mxu1 %v2736_v61 }
  0x72   :  { %2037 = vmatprep.subr.bf16.mxu1 %v2597_v0 }
  0x74   :  { %2017 = vmatpush1.bf16.msra.mxu0 %v2733_v59 }
  0x75   :  { %2019 = vmatprep.subr.bf16.mxu0 %v2739_v62  ;;  %2039 = vmatpush3.bf16.msra.mxu1 %v2746_v6 }
  0x76   :  { %2040 = vmatprep.subr.bf16.mxu1 %v2597_v0 }
  0x78   :  { %2021 = vmatpush1.bf16.msra.mxu0 %v2743_v4 }
  0x79   :  { %2047 = vmatprep.subr.bf16.mxu0 %v2681_v5  ;;  %2042 = vmatpush3.bf16.msra.mxu1 %v2754_v12 }
  0x7a   :  { %2043 = vmatprep.subr.bf16.mxu1 %v2597_v0 }
  0x7d   :  { %2045 = vmatpush3.bf16.msra.mxu1 %v2760_v17 }
  0x7e   :  { %2078 = vmatprep.subr.bf16.mxu1 %v2597_v0 }
 0x12e   :  { %v185_v19 = vpop.f32.mrb[0].mxu0 }
 0x12f   :  { %v260_v20 = vadd.f32 %v185_v19, %v116_v18  ;;  %v187_v22 = vpop.f32.mrb[1].mxu0 }
 0x130   :  { %v267_v27 = vadd.f32 %v187_v22, %v117_v25 }
 0x131   :  { %v1501_v24 = vmul.f32 -1.442695, %v260_v20  ;;  %v291_v20 = vld [vmem:[#allocation3 + $0x28] sm:$0xff] }
 0x132   :  { %v1502_v30 = vmul.f32 -1.442695, %v267_v27 }
 0x133   :  { %2394 = vpow2.f32 %v1501_v24  ;;  %v256_v26 = vpop.f32.mrb[0].mxu1 }
 0x134   :  { %v1688_v28 = vpop.f32.mrb[1].mxu1  ;;  %2396 = vpow2.f32 %v1502_v30  ;;  %v280_v37 = vadd.f32 %v2804_v36, %v256_v26 }
 0x13d   :  { %v2395_v31 = vpop.eup %2394 }
 0x13e   :  { %v264_v33 = vadd.f32 1.0, %v2395_v31  ;;  %v2397_v38 = vpop.eup %2396 }
 0x13f   :  { %v271_v45 = vadd.f32 1.0, %v2397_v38 }
 0x140   :  { %2398 = vrcp.f32 %v264_v33  ;;  %v457_v33 = vld [vmem:[#allocation3 + $0x30] sm:$0xff] }
 0x14a   :  { %v2399_v39 = vpop.eup %2398 }
 0x14b   :  { %v281_v42 = vmul.f32 %v2399_v39, %v280_v37 }
 0x14d   :  { %v282_v46 = vadd.f32 %v281_v42, %v118_v40 }
 0x14f   :  { %2400 = vtanh.f32 %v282_v46  ;;  %v458_v46 = vld [vmem:[#allocation3 + $0x38] sm:$0xff] }
 0x150   :  { %2402 = vrcp.f32 %v271_v45 }
 0x159   :  { %v2401_v47 = vpop.eup %2400 }
 0x15a   :  { %v284_v48 = vsub.f32 %v2751_v11, %v2401_v47  ;;  %v2403_v49 = vpop.eup %2402 }
 0x15c   :  { %v285_v51 = vmul.f32 %v2403_v49, %v284_v48 }
 0x15e   :  { %v2808_v54 = vadd.f32 %v2401_v47, %v285_v51 }
 0x160   :  { %287 = vst [vmem:[#allocation9] sm:$0xff] %v2808_v54  ;;  %357 = vmatmul.mubr.f32.vlgmr.msra.gmra.mrb[2].mxu0 %v2808_v54  ;;  %1722 = vmatmul.mubr.f32.vlgmr.msra.gmra.mrb[2].mxu1 %v2808_v54 }
 0x161   :  { %2049 = vmatpush1.bf16.msra.mxu0 %v2683_v9  ;;  %2080 = vmatpush3.bf16.msra.mxu1 %v2700_v29 }
 0x162   :  { %2051 = vmatprep.subr.bf16.mxu0 %v2685_v10  ;;  %2081 = vmatprep.subr.bf16.mxu1 %v2597_v0 }
 0x163   :  { %524 = vmatprep.mubr.f32.mxu0 %v2598_v1  ;;  %1756 = vmatprep.mubr.msk.f32.mxu1 %vm2599_vm0, %v2598_v1 }
 0x165   :  { %2053 = vmatpush1.bf16.msra.mxu0 %v2689_v15  ;;  %2083 = vmatpush3.bf16.msra.mxu1 %v2706_v34 }
 0x166   :  { %2055 = vmatprep.subr.bf16.mxu0 %v2692_v16  ;;  %2084 = vmatprep.subr.bf16.mxu1 %v2597_v0 }
 0x169   :  { %2057 = vmatpush1.bf16.msra.mxu0 %v2695_v21  ;;  %2086 = vmatpush3.bf16.msra.mxu1 %v2716_v43 }
 0x16a   :  { %2059 = vmatprep.subr.bf16.mxu0 %v2698_v23  ;;  %2087 = vmatprep.subr.bf16.mxu1 %v2597_v0 }
 0x16d   :  { %2061 = vmatpush1.bf16.msra.mxu0 %v2703_v32  ;;  %2089 = vmatpush3.bf16.msra.mxu1 %v2726_v52 }
 0x16e   :  { %2063 = vmatprep.subr.bf16.mxu0 %v2709_v35  ;;  %2090 = vmatprep.subr.bf16.mxu1 %v2597_v0 }
 0x171   :  { %2065 = vmatpush1.bf16.msra.mxu0 %v2713_v41  ;;  %2092 = vmatpush3.bf16.msra.mxu1 %v2736_v61 }
 0x172   :  { %2067 = vmatprep.subr.bf16.mxu0 %v2719_v44  ;;  %2093 = vmatprep.subr.bf16.mxu1 %v2597_v0 }
 0x175   :  { %2069 = vmatpush1.bf16.msra.mxu0 %v2723_v50  ;;  %2095 = vmatpush3.bf16.msra.mxu1 %v2746_v6 }
 0x176   :  { %2071 = vmatprep.subr.bf16.mxu0 %v2729_v53  ;;  %2096 = vmatprep.subr.bf16.mxu1 %v2597_v0 }
 0x179   :  { %2073 = vmatpush1.bf16.msra.mxu0 %v2733_v59  ;;  %2098 = vmatpush3.bf16.msra.mxu1 %v2754_v12 }
 0x17a   :  { %2075 = vmatprep.subr.bf16.mxu0 %v2739_v62  ;;  %2099 = vmatprep.subr.bf16.mxu1 %v2597_v0 }
 0x17d   :  { %2077 = vmatpush1.bf16.msra.mxu0 %v2743_v4  ;;  %2101 = vmatpush3.bf16.msra.mxu1 %v2760_v17 }
 0x17e   :  { %2103 = vmatprep.subr.bf16.mxu0 %v2681_v5  ;;  %2134 = vmatprep.subr.bf16.mxu1 %v2597_v0 }
 0x233   :  { %v358_v56 = vpop.f32.mrb[2].mxu0  ;;  %v429_v57 = vpop.f32.mrb[2].mxu1 }
 0x234   :  { %v433_v58 = vadd.f32 %v358_v56, %v289_v55  ;;  %v360_v60 = vpop.f32.mrb[3].mxu0  ;;  %v1723_v63 = vpop.f32.mrb[3].mxu1  ;;  %v447_v18 = vadd.f32 %v2804_v36, %v429_v57  ;;  %v459_v57 = vld [vmem:[#allocation3 + $0x40] sm:$0xff] }
 0x235   :  { %v440_v7 = vadd.f32 %v360_v60, %v290_v3 }
 0x236   :  { %v1504_v2 = vmul.f32 -1.442695, %v433_v58 }
 0x237   :  { %v1505_v8 = vmul.f32 -1.442695, %v440_v7 }
 0x238   :  { %2404 = vpow2.f32 %v1504_v2 }
 0x239   :  { %2406 = vpow2.f32 %v1505_v8 }
 0x242   :  { %v2405_v11 = vpop.eup %2404 }
 0x243   :  { %v437_v13 = vadd.f32 1.0, %v2405_v11  ;;  %v2407_v14 = vpop.eup %2406 }
 0x244   :  { %v444_v25 = vadd.f32 1.0, %v2407_v14 }
 0x245   :  { %2408 = vrcp.f32 %v437_v13  ;;  %v625_v13 = vld [vmem:[#allocation3 + $0x48] sm:$0xff] }
 0x24f   :  { %v2409_v19 = vpop.eup %2408 }
 0x250   :  { %v448_v22 = vmul.f32 %v2409_v19, %v447_v18 }
 0x252   :  { %v449_v24 = vadd.f32 %v448_v22, %v291_v20 }
 0x254   :  { %2410 = vtanh.f32 %v449_v24 }
 0x255   :  { %2412 = vrcp.f32 %v444_v25  ;;  %v626_v25 = vld [vmem:[#allocation3 + $0x50] sm:$0xff] }
 0x25e   :  { %v2411_v26 = vpop.eup %2410 }
 0x25f   :  { %v451_v27 = vsub.f32 %v2808_v54, %v2411_v26  ;;  %v2413_v28 = vpop.eup %2412 }
 0x261   :  { %v452_v30 = vmul.f32 %v2413_v28, %v451_v27 }
 0x263   :  { %v2850_v31 = vadd.f32 %v2411_v26, %v452_v30 }
 0x265   :  { %455 = vst [vmem:[#allocation9 + $0x8] sm:$0xff] %v2850_v31  ;;  %525 = vmatmul.mubr.f32.vlgmr.msra.gmra.mrb[4].mxu0 %v2850_v31  ;;  %1757 = vmatmul.mubr.f32.vlgmr.msra.gmra.mrb[4].mxu1 %v2850_v31 }
 0x266   :  { %2105 = vmatpush1.bf16.msra.mxu0 %v2683_v9  ;;  %2136 = vmatpush3.bf16.msra.mxu1 %v2700_v29 }
 0x267   :  { %2107 = vmatprep.subr.bf16.mxu0 %v2685_v10  ;;  %2137 = vmatprep.subr.bf16.mxu1 %v2597_v0 }
 0x268   :  { %692 = vmatprep.mubr.f32.mxu0 %v2598_v1  ;;  %1791 = vmatprep.mubr.msk.f32.mxu1 %vm2599_vm0, %v2598_v1 }
 0x26a   :  { %2109 = vmatpush1.bf16.msra.mxu0 %v2689_v15  ;;  %2139 = vmatpush3.bf16.msra.mxu1 %v2706_v34 }
 0x26b   :  { %2111 = vmatprep.subr.bf16.mxu0 %v2692_v16  ;;  %2140 = vmatprep.subr.bf16.mxu1 %v2597_v0 }
 0x26e   :  { %2113 = vmatpush1.bf16.msra.mxu0 %v2695_v21  ;;  %2142 = vmatpush3.bf16.msra.mxu1 %v2716_v43 }
 0x26f   :  { %2115 = vmatprep.subr.bf16.mxu0 %v2698_v23  ;;  %2143 = vmatprep.subr.bf16.mxu1 %v2597_v0 }
 0x272   :  { %2117 = vmatpush1.bf16.msra.mxu0 %v2703_v32  ;;  %2145 = vmatpush3.bf16.msra.mxu1 %v2726_v52 }
 0x273   :  { %2119 = vmatprep.subr.bf16.mxu0 %v2709_v35  ;;  %2146 = vmatprep.subr.bf16.mxu1 %v2597_v0 }
 0x276   :  { %2121 = vmatpush1.bf16.msra.mxu0 %v2713_v41  ;;  %2148 = vmatpush3.bf16.msra.mxu1 %v2736_v61 }
 0x277   :  { %2123 = vmatprep.subr.bf16.mxu0 %v2719_v44  ;;  %2149 = vmatprep.subr.bf16.mxu1 %v2597_v0 }
 0x27a   :  { %2125 = vmatpush1.bf16.msra.mxu0 %v2723_v50  ;;  %2151 = vmatpush3.bf16.msra.mxu1 %v2746_v6 }
 0x27b   :  { %2127 = vmatprep.subr.bf16.mxu0 %v2729_v53  ;;  %2152 = vmatprep.subr.bf16.mxu1 %v2597_v0 }
 0x27e   :  { %2129 = vmatpush1.bf16.msra.mxu0 %v2733_v59  ;;  %2154 = vmatpush3.bf16.msra.mxu1 %v2754_v12 }
 0x27f   :  { %2131 = vmatprep.subr.bf16.mxu0 %v2739_v62  ;;  %2155 = vmatprep.subr.bf16.mxu1 %v2597_v0 }
 0x282   :  { %2133 = vmatpush1.bf16.msra.mxu0 %v2743_v4  ;;  %2157 = vmatpush3.bf16.msra.mxu1 %v2760_v17 }
 0x283   :  { %2159 = vmatprep.subr.bf16.mxu0 %v2681_v5  ;;  %2190 = vmatprep.subr.bf16.mxu1 %v2597_v0 }
 0x338   :  { %v526_v37 = vpop.f32.mrb[4].mxu0  ;;  %v597_v38 = vpop.f32.mrb[4].mxu1 }
 0x339   :  { %v601_v39 = vadd.f32 %v526_v37, %v457_v33  ;;  %v528_v40 = vpop.f32.mrb[5].mxu0  ;;  %v1758_v42 = vpop.f32.mrb[5].mxu1  ;;  %v615_v55 = vadd.f32 %v2804_v36, %v597_v38  ;;  %v627_v38 = vld [vmem:[#allocation3 + $0x58] sm:$0xff] }
 0x33a   :  { %v608_v47 = vadd.f32 %v528_v40, %v458_v46 }
 0x33b   :  { %v1506_v45 = vmul.f32 -1.442695, %v601_v39 }
 0x33c   :  { %v1507_v48 = vmul.f32 -1.442695, %v608_v47 }
 0x33d   :  { %2414 = vpow2.f32 %v1506_v45 }
 0x33e   :  { %2416 = vpow2.f32 %v1507_v48 }
 0x347   :  { %v2415_v49 = vpop.eup %2414 }
 0x348   :  { %v605_v51 = vadd.f32 1.0, %v2415_v49  ;;  %v2417_v54 = vpop.eup %2416 }
 0x349   :  { %v612_v63 = vadd.f32 1.0, %v2417_v54 }
 0x34a   :  { %2418 = vrcp.f32 %v605_v51  ;;  %v793_v51 = vld [vmem:[#allocation3 + $0x60] sm:$0xff] }
 0x354   :  { %v2419_v56 = vpop.eup %2418 }
 0x355   :  { %v616_v58 = vmul.f32 %v2419_v56, %v615_v55 }
 0x357   :  { %v617_v60 = vadd.f32 %v616_v58, %v459_v57 }
 0x359   :  { %2420 = vtanh.f32 %v617_v60 }
 0x35a   :  { %2422 = vrcp.f32 %v612_v63  ;;  %v794_v63 = vld [vmem:[#allocation3 + $0x68] sm:$0xff] }
 0x363   :  { %v2421_v2 = vpop.eup %2420 }
 0x364   :  { %v619_v3 = vsub.f32 %v2850_v31, %v2421_v2  ;;  %v2423_v7 = vpop.eup %2422 }
 0x366   :  { %v620_v8 = vmul.f32 %v2423_v7, %v619_v3 }
 0x368   :  { %v2892_v11 = vadd.f32 %v2421_v2, %v620_v8 }
 0x36a   :  { %623 = vst [vmem:[#allocation9 + $0x10] sm:$0xff] %v2892_v11  ;;  %693 = vmatmul.mubr.f32.vlgmr.msra.gmra.mrb[6].mxu0 %v2892_v11  ;;  %1792 = vmatmul.mubr.f32.vlgmr.msra.gmra.mrb[6].mxu1 %v2892_v11 }
 0x36b   :  { %2161 = vmatpush1.bf16.msra.mxu0 %v2683_v9  ;;  %2192 = vmatpush3.bf16.msra.mxu1 %v2700_v29 }
 0x36c   :  { %2163 = vmatprep.subr.bf16.mxu0 %v2685_v10  ;;  %2193 = vmatprep.subr.bf16.mxu1 %v2597_v0 }
 0x36d   :  { %860 = vmatprep.mubr.f32.mxu0 %v2598_v1  ;;  %1826 = vmatprep.mubr.msk.f32.mxu1 %vm2599_vm0, %v2598_v1 }
 0x36f   :  { %2165 = vmatpush1.bf16.msra.mxu0 %v2689_v15  ;;  %2195 = vmatpush3.bf16.msra.mxu1 %v2706_v34 }
 0x370   :  { %2167 = vmatprep.subr.bf16.mxu0 %v2692_v16  ;;  %2196 = vmatprep.subr.bf16.mxu1 %v2597_v0 }
 0x373   :  { %2169 = vmatpush1.bf16.msra.mxu0 %v2695_v21  ;;  %2198 = vmatpush3.bf16.msra.mxu1 %v2716_v43 }
 0x374   :  { %2171 = vmatprep.subr.bf16.mxu0 %v2698_v23  ;;  %2199 = vmatprep.subr.bf16.mxu1 %v2597_v0 }
 0x377   :  { %2173 = vmatpush1.bf16.msra.mxu0 %v2703_v32  ;;  %2201 = vmatpush3.bf16.msra.mxu1 %v2726_v52 }
 0x378   :  { %2175 = vmatprep.subr.bf16.mxu0 %v2709_v35  ;;  %2202 = vmatprep.subr.bf16.mxu1 %v2597_v0 }
 0x37b   :  { %2177 = vmatpush1.bf16.msra.mxu0 %v2713_v41  ;;  %2204 = vmatpush3.bf16.msra.mxu1 %v2736_v61 }
 0x37c   :  { %2179 = vmatprep.subr.bf16.mxu0 %v2719_v44  ;;  %2205 = vmatprep.subr.bf16.mxu1 %v2597_v0 }
 0x37f   :  { %2181 = vmatpush1.bf16.msra.mxu0 %v2723_v50  ;;  %2207 = vmatpush3.bf16.msra.mxu1 %v2746_v6 }
 0x380   :  { %2183 = vmatprep.subr.bf16.mxu0 %v2729_v53  ;;  %2208 = vmatprep.subr.bf16.mxu1 %v2597_v0 }
 0x383   :  { %2185 = vmatpush1.bf16.msra.mxu0 %v2733_v59  ;;  %2210 = vmatpush3.bf16.msra.mxu1 %v2754_v12 }
 0x384   :  { %2187 = vmatprep.subr.bf16.mxu0 %v2739_v62  ;;  %2211 = vmatprep.subr.bf16.mxu1 %v2597_v0 }
 0x387   :  { %2189 = vmatpush1.bf16.msra.mxu0 %v2743_v4  ;;  %2213 = vmatpush3.bf16.msra.mxu1 %v2760_v17 }
 0x388   :  { %2215 = vmatprep.subr.bf16.mxu0 %v2681_v5  ;;  %2246 = vmatprep.subr.bf16.mxu1 %v2597_v0 }
 0x43d   :  { %v694_v14 = vpop.f32.mrb[6].mxu0  ;;  %v765_v18 = vpop.f32.mrb[6].mxu1 }
 0x43e   :  { %v769_v19 = vadd.f32 %v694_v14, %v625_v13  ;;  %v696_v20 = vpop.f32.mrb[7].mxu0  ;;  %v1793_v22 = vpop.f32.mrb[7].mxu1  ;;  %v783_v33 = vadd.f32 %v2804_v36, %v765_v18  ;;  %v795_v18 = vld [vmem:[#allocation3 + $0x70] sm:$0xff] }
 0x43f   :  { %v776_v26 = vadd.f32 %v696_v20, %v626_v25 }
 0x440   :  { %v1508_v24 = vmul.f32 -1.442695, %v769_v19 }
 0x441   :  { %v1509_v27 = vmul.f32 -1.442695, %v776_v26 }
 0x442   :  { %2424 = vpow2.f32 %v1508_v24 }
 0x443   :  { %2426 = vpow2.f32 %v1509_v27 }
 0x44c   :  { %v2425_v28 = vpop.eup %2424 }
 0x44d   :  { %v773_v30 = vadd.f32 1.0, %v2425_v28  ;;  %v2427_v31 = vpop.eup %2426 }
 0x44e   :  { %v780_v42 = vadd.f32 1.0, %v2427_v31 }
 0x44f   :  { %2428 = vrcp.f32 %v773_v30  ;;  %v961_v30 = vld [vmem:[#allocation3 + $0x78] sm:$0xff] }
 0x459   :  { %v2429_v37 = vpop.eup %2428 }
 0x45a   :  { %v784_v39 = vmul.f32 %v2429_v37, %v783_v33 }
 0x45c   :  { %v785_v40 = vadd.f32 %v784_v39, %v627_v38 }
 0x45e   :  { %2430 = vtanh.f32 %v785_v40 }
 0x45f   :  { %2432 = vrcp.f32 %v780_v42  ;;  %v962_v42 = vld [vmem:[#allocation3 + $0x80] sm:$0xff] }
 0x468   :  { %v2431_v45 = vpop.eup %2430 }
 0x469   :  { %v787_v46 = vsub.f32 %v2892_v11, %v2431_v45  ;;  %v2433_v47 = vpop.eup %2432 }
 0x46b   :  { %v788_v48 = vmul.f32 %v2433_v47, %v787_v46 }
 0x46d   :  { %v2934_v49 = vadd.f32 %v2431_v45, %v788_v48 }
 0x46f   :  { %791 = vst [vmem:[#allocation9 + $0x18] sm:$0xff] %v2934_v49  ;;  %861 = vmatmul.mubr.f32.vlgmr.msra.gmra.mrb[8].mxu0 %v2934_v49  ;;  %1827 = vmatmul.mubr.f32.vlgmr.msra.gmra.mrb[8].mxu1 %v2934_v49 }
 0x470   :  { %2217 = vmatpush1.bf16.msra.mxu0 %v2683_v9  ;;  %2248 = vmatpush3.bf16.msra.mxu1 %v2700_v29 }
 0x471   :  { %2219 = vmatprep.subr.bf16.mxu0 %v2685_v10  ;;  %2249 = vmatprep.subr.bf16.mxu1 %v2597_v0 }
 0x472   :  { %1028 = vmatprep.mubr.f32.mxu0 %v2598_v1  ;;  %1861 = vmatprep.mubr.msk.f32.mxu1 %vm2599_vm0, %v2598_v1 }
 0x474   :  { %2221 = vmatpush1.bf16.msra.mxu0 %v2689_v15  ;;  %2251 = vmatpush3.bf16.msra.mxu1 %v2706_v34 }
 0x475   :  { %2223 = vmatprep.subr.bf16.mxu0 %v2692_v16  ;;  %2252 = vmatprep.subr.bf16.mxu1 %v2597_v0 }
 0x478   :  { %2225 = vmatpush1.bf16.msra.mxu0 %v2695_v21  ;;  %2254 = vmatpush3.bf16.msra.mxu1 %v2716_v43 }
 0x479   :  { %2227 = vmatprep.subr.bf16.mxu0 %v2698_v23  ;;  %2255 = vmatprep.subr.bf16.mxu1 %v2597_v0 }
 0x47c   :  { %2229 = vmatpush1.bf16.msra.mxu0 %v2703_v32  ;;  %2257 = vmatpush3.bf16.msra.mxu1 %v2726_v52 }
 0x47d   :  { %2231 = vmatprep.subr.bf16.mxu0 %v2709_v35  ;;  %2258 = vmatprep.subr.bf16.mxu1 %v2597_v0 }
 0x480   :  { %2233 = vmatpush1.bf16.msra.mxu0 %v2713_v41  ;;  %2260 = vmatpush3.bf16.msra.mxu1 %v2736_v61 }
 0x481   :  { %2235 = vmatprep.subr.bf16.mxu0 %v2719_v44  ;;  %2261 = vmatprep.subr.bf16.mxu1 %v2597_v0 }
 0x484   :  { %2237 = vmatpush1.bf16.msra.mxu0 %v2723_v50  ;;  %2263 = vmatpush3.bf16.msra.mxu1 %v2746_v6 }
 0x485   :  { %2239 = vmatprep.subr.bf16.mxu0 %v2729_v53  ;;  %2264 = vmatprep.subr.bf16.mxu1 %v2597_v0 }
 0x488   :  { %2241 = vmatpush1.bf16.msra.mxu0 %v2733_v59  ;;  %2266 = vmatpush3.bf16.msra.mxu1 %v2754_v12 }
 0x489   :  { %2243 = vmatprep.subr.bf16.mxu0 %v2739_v62  ;;  %2267 = vmatprep.subr.bf16.mxu1 %v2597_v0 }
 0x48c   :  { %2245 = vmatpush1.bf16.msra.mxu0 %v2743_v4  ;;  %2269 = vmatpush3.bf16.msra.mxu1 %v2760_v17 }
 0x48d   :  { %2271 = vmatprep.subr.bf16.mxu0 %v2681_v5  ;;  %2302 = vmatprep.subr.bf16.mxu1 %v2597_v0 }
 0x542   :  { %v862_v54 = vpop.f32.mrb[8].mxu0  ;;  %v933_v55 = vpop.f32.mrb[8].mxu1 }
 0x543   :  { %v937_v56 = vadd.f32 %v862_v54, %v793_v51  ;;  %v864_v57 = vpop.f32.mrb[9].mxu0  ;;  %v1828_v58 = vpop.f32.mrb[9].mxu1  ;;  %v951_v13 = vadd.f32 %v2804_v36, %v933_v55  ;;  %v963_v54 = vld [vmem:[#allocation3 + $0x88] sm:$0xff] }
 0x544   :  { %v944_v2 = vadd.f32 %v864_v57, %v794_v63 }
 0x545   :  { %v1510_v60 = vmul.f32 -1.442695, %v937_v56 }
 0x546   :  { %v1511_v3 = vmul.f32 -1.442695, %v944_v2 }
 0x547   :  { %2434 = vpow2.f32 %v1510_v60 }
 0x548   :  { %2436 = vpow2.f32 %v1511_v3 }
 0x551   :  { %v2435_v7 = vpop.eup %2434 }
 0x552   :  { %v941_v8 = vadd.f32 1.0, %v2435_v7  ;;  %v2437_v11 = vpop.eup %2436 }
 0x553   :  { %v948_v22 = vadd.f32 1.0, %v2437_v11 }
 0x554   :  { %2438 = vrcp.f32 %v941_v8 }
 0x55e   :  { %v2439_v14 = vpop.eup %2438 }
 0x55f   :  { %v952_v19 = vmul.f32 %v2439_v14, %v951_v13 }
 0x561   :  { %v953_v20 = vadd.f32 %v952_v19, %v795_v18  ;;  %v1298_v19 = vld [vmem:[#allocation3 + $0xb0] sm:$0xff] }
 0x563   :  { %2440 = vtanh.f32 %v953_v20 }
 0x564   :  { %2442 = vrcp.f32 %v948_v22 }
 0x56d   :  { %v2441_v24 = vpop.eup %2440 }
 0x56e   :  { %v955_v25 = vsub.f32 %v2934_v49, %v2441_v24  ;;  %v2443_v26 = vpop.eup %2442 }
 0x570   :  { %v956_v27 = vmul.f32 %v2443_v26, %v955_v25 }
 0x572   :  { %v2976_v28 = vadd.f32 %v2441_v24, %v956_v27 }
 0x574   :  { %959 = vst [vmem:[#allocation9 + $0x20] sm:$0xff] %v2976_v28  ;;  %1029 = vmatmul.mubr.f32.vlgmr.msra.gmra.mrb[10].mxu0 %v2976_v28  ;;  %1862 = vmatmul.mubr.f32.vlgmr.msra.gmra.mrb[10].mxu1 %v2976_v28 }
 0x575   :  { %2273 = vmatpush1.bf16.msra.mxu0 %v2683_v9  ;;  %2304 = vmatpush3.bf16.msra.mxu1 %v2700_v29 }
 0x576   :  { %2275 = vmatprep.subr.bf16.mxu0 %v2685_v10  ;;  %2305 = vmatprep.subr.bf16.mxu1 %v2597_v0 }
 0x577   :  { %1196 = vmatprep.mubr.f32.mxu0 %v2598_v1  ;;  %1896 = vmatprep.mubr.msk.f32.mxu1 %vm2599_vm0, %v2598_v1 }
 0x579   :  { %2277 = vmatpush1.bf16.msra.mxu0 %v2689_v15  ;;  %2307 = vmatpush3.bf16.msra.mxu1 %v2706_v34 }
 0x57a   :  { %2279 = vmatprep.subr.bf16.mxu0 %v2692_v16  ;;  %2308 = vmatprep.subr.bf16.mxu1 %v2597_v0 }
 0x57d   :  { %2281 = vmatpush1.bf16.msra.mxu0 %v2695_v21  ;;  %2310 = vmatpush3.bf16.msra.mxu1 %v2716_v43 }
 0x57e   :  { %2283 = vmatprep.subr.bf16.mxu0 %v2698_v23  ;;  %2311 = vmatprep.subr.bf16.mxu1 %v2597_v0 }
 0x581   :  { %2285 = vmatpush1.bf16.msra.mxu0 %v2703_v32  ;;  %2313 = vmatpush3.bf16.msra.mxu1 %v2726_v52 }
 0x582   :  { %2287 = vmatprep.subr.bf16.mxu0 %v2709_v35  ;;  %2314 = vmatprep.subr.bf16.mxu1 %v2597_v0 }
 0x585   :  { %2289 = vmatpush1.bf16.msra.mxu0 %v2713_v41  ;;  %2316 = vmatpush3.bf16.msra.mxu1 %v2736_v61 }
 0x586   :  { %2291 = vmatprep.subr.bf16.mxu0 %v2719_v44  ;;  %2317 = vmatprep.subr.bf16.mxu1 %v2597_v0 }
 0x589   :  { %2293 = vmatpush1.bf16.msra.mxu0 %v2723_v50  ;;  %2319 = vmatpush3.bf16.msra.mxu1 %v2746_v6 }
 0x58a   :  { %2295 = vmatprep.subr.bf16.mxu0 %v2729_v53  ;;  %2320 = vmatprep.subr.bf16.mxu1 %v2597_v0 }
 0x58d   :  { %2297 = vmatpush1.bf16.msra.mxu0 %v2733_v59  ;;  %2322 = vmatpush3.bf16.msra.mxu1 %v2754_v12 }
 0x58e   :  { %2299 = vmatprep.subr.bf16.mxu0 %v2739_v62  ;;  %2323 = vmatprep.subr.bf16.mxu1 %v2597_v0 }
 0x591   :  { %2301 = vmatpush1.bf16.msra.mxu0 %v2743_v4  ;;  %2325 = vmatpush3.bf16.msra.mxu1 %v2760_v17 }
 0x592   :  { %2327 = vmatprep.subr.bf16.mxu0 %v2681_v5  ;;  %2358 = vmatprep.subr.bf16.mxu1 %v2597_v0 }
 0x647   :  { %v1030_v31 = vpop.f32.mrb[10].mxu0  ;;  %v1101_v33 = vpop.f32.mrb[10].mxu1 }
 0x648   :  { %v1105_v37 = vadd.f32 %v1030_v31, %v961_v30  ;;  %v1032_v38 = vpop.f32.mrb[11].mxu0  ;;  %v1863_v39 = vpop.f32.mrb[11].mxu1  ;;  %v1119_v5 = vadd.f32 %v2804_v36, %v1101_v33  ;;  %v1299_v30 = vld [vmem:[#allocation3 + $0xb8] sm:$0xff] }
 0x649   :  { %v1112_v45 = vadd.f32 %v1032_v38, %v962_v42 }
 0x64a   :  { %v1512_v40 = vmul.f32 -1.442695, %v1105_v37 }
 0x64b   :  { %v1513_v46 = vmul.f32 -1.442695, %v1112_v45 }
 0x64c   :  { %2444 = vpow2.f32 %v1512_v40 }
 0x64d   :  { %2446 = vpow2.f32 %v1513_v46 }
 0x656   :  { %v2445_v47 = vpop.eup %2444 }
 0x657   :  { %v1109_v48 = vadd.f32 1.0, %v2445_v47  ;;  %v2447_v49 = vpop.eup %2446 }
 0x658   :  { %v1116_v57 = vadd.f32 1.0, %v2447_v49 }
 0x659   :  { %2448 = vrcp.f32 %v1109_v48 }
 0x663   :  { %v2449_v51 = vpop.eup %2448 }
 0x664   :  { %v1120_v55 = vmul.f32 %v2449_v51, %v1119_v5 }
 0x666   :  { %v1121_v56 = vadd.f32 %v1120_v55, %v963_v54 }
 0x668   :  { %2450 = vtanh.f32 %v1121_v56 }
 0x669   :  { %2452 = vrcp.f32 %v1116_v57 }
 0x672   :  { %v2451_v58 = vpop.eup %2450 }
 0x673   :  { %v1123_v60 = vsub.f32 %v2976_v28, %v2451_v58  ;;  %v2453_v63 = vpop.eup %2452 }
 0x675   :  { %v1124_v2 = vmul.f32 %v2453_v63, %v1123_v60 }
 0x677   :  { %v3018_v3 = vadd.f32 %v2451_v58, %v1124_v2 }
 0x679   :  { %1127 = vst [vmem:[#allocation9 + $0x28] sm:$0xff] %v3018_v3  ;;  %1197 = vmatmul.mubr.f32.vlgmr.msra.gmra.mrb[12].mxu0 %v3018_v3  ;;  %1897 = vmatmul.mubr.f32.vlgmr.msra.gmra.mrb[12].mxu1 %v3018_v3 }
 0x67a   :  { %2329 = vmatpush1.bf16.msra.mxu0 %v2683_v9  ;;  %2360 = vmatpush3.bf16.msra.mxu1 %v2700_v29  ;;  %v1130_v29 = vld [vmem:[#allocation3 + $0x98] sm:$0xff] }
 0x67b   :  { %2331 = vmatprep.subr.bf16.mxu0 %v2685_v10  ;;  %2361 = vmatprep.subr.bf16.mxu1 %v2597_v0 }
 0x67c   :  { %1364 = vmatprep.mubr.f32.mxu0 %v2598_v1  ;;  %1931 = vmatprep.mubr.msk.f32.mxu1 %vm2599_vm0, %v2598_v1  ;;  %v1129_v1 = vld [vmem:[#allocation3 + $0x90] sm:$0xff] }
 0x67e   :  { %2333 = vmatpush1.bf16.msra.mxu0 %v2689_v15  ;;  %2363 = vmatpush3.bf16.msra.mxu1 %v2706_v34 }
 0x67f   :  { %2335 = vmatprep.subr.bf16.mxu0 %v2692_v16  ;;  %2364 = vmatprep.subr.bf16.mxu1 %v2597_v0 }
 0x682   :  { %2337 = vmatpush1.bf16.msra.mxu0 %v2695_v21  ;;  %2366 = vmatpush3.bf16.msra.mxu1 %v2716_v43 }
 0x683   :  { %2339 = vmatprep.subr.bf16.mxu0 %v2698_v23  ;;  %2367 = vmatprep.subr.bf16.mxu1 %v2597_v0 }
 0x686   :  { %2341 = vmatpush1.bf16.msra.mxu0 %v2703_v32  ;;  %2369 = vmatpush3.bf16.msra.mxu1 %v2726_v52 }
 0x687   :  { %2343 = vmatprep.subr.bf16.mxu0 %v2709_v35  ;;  %2370 = vmatprep.subr.bf16.mxu1 %v2597_v0 }
 0x68a   :  { %2345 = vmatpush1.bf16.msra.mxu0 %v2713_v41  ;;  %2372 = vmatpush3.bf16.msra.mxu1 %v2736_v61 }
 0x68b   :  { %2347 = vmatprep.subr.bf16.mxu0 %v2719_v44  ;;  %2373 = vmatprep.subr.bf16.mxu1 %v2597_v0 }
 0x68e   :  { %2349 = vmatpush1.bf16.msra.mxu0 %v2723_v50  ;;  %2375 = vmatpush3.bf16.msra.mxu1 %v2746_v6  ;;  %v1131_v50 = vld [vmem:[#allocation3 + $0xa0] sm:$0xff] }
 0x68f   :  { %2351 = vmatprep.subr.bf16.mxu0 %v2729_v53  ;;  %2376 = vmatprep.subr.bf16.mxu1 %v2597_v0 }
 0x692   :  { %2353 = vmatpush1.bf16.msra.mxu0 %v2733_v59  ;;  %2378 = vmatpush3.bf16.msra.mxu1 %v2754_v12 }
 0x693   :  { %2355 = vmatprep.subr.bf16.mxu0 %v2739_v62  ;;  %2379 = vmatprep.subr.bf16.mxu1 %v2597_v0 }
 0x696   :  { %2357 = vmatpush1.bf16.msra.mxu0 %v2743_v4  ;;  %2381 = vmatpush3.bf16.msra.mxu1 %v2760_v17  ;;  %v1297_v17 = vld [vmem:[#allocation3 + $0xa8] sm:$0xff] }
 0x74c   :  { %v1198_v9 = vpop.f32.mrb[12].mxu0  ;;  %v1269_v10 = vpop.f32.mrb[12].mxu1 }
 0x74d   :  { %v1273_v15 = vadd.f32 %v1198_v9, %v1129_v1  ;;  %v1200_v16 = vpop.f32.mrb[13].mxu0  ;;  %v1898_v21 = vpop.f32.mrb[13].mxu1  ;;  %v1287_v43 = vadd.f32 %v2804_v36, %v1269_v10 }
 0x74e   :  { %v1280_v32 = vadd.f32 %v1200_v16, %v1130_v29 }
 0x74f   :  { %v1514_v23 = vmul.f32 -1.442695, %v1273_v15 }
 0x750   :  { %v1515_v34 = vmul.f32 -1.442695, %v1280_v32 }
 0x751   :  { %2454 = vpow2.f32 %v1514_v23 }
 0x752   :  { %2456 = vpow2.f32 %v1515_v34 }
 0x75b   :  { %v2455_v35 = vpop.eup %2454 }
 0x75c   :  { %v1277_v41 = vadd.f32 1.0, %v2455_v35  ;;  %v2457_v0 = vpop.eup %2456 }
 0x75d   :  { %v1284_v59 = vadd.f32 1.0, %v2457_v0 }
 0x75e   :  { %2458 = vrcp.f32 %v1277_v41 }
 0x768   :  { %v2459_v44 = vpop.eup %2458 }
 0x769   :  { %v1288_v52 = vmul.f32 %v2459_v44, %v1287_v43 }
 0x76b   :  { %v1289_v53 = vadd.f32 %v1288_v52, %v1131_v50 }
 0x76d   :  { %2460 = vtanh.f32 %v1289_v53 }
 0x76e   :  { %2462 = vrcp.f32 %v1284_v59 }
 0x777   :  { %v2461_v61 = vpop.eup %2460 }
 0x778   :  { %v1291_v62 = vsub.f32 %v3018_v3, %v2461_v61  ;;  %v2463_v4 = vpop.eup %2462 }
 0x77a   :  { %v1292_v6 = vmul.f32 %v2463_v4, %v1291_v62 }
 0x77c   :  { %v1293_v12 = vadd.f32 %v2461_v61, %v1292_v6 }
 0x77e   :  { %1295 = vst [vmem:[#allocation9 + $0x30] sm:$0xff] %v1293_v12  ;;  %1365 = vmatmul.mubr.f32.vlgmr.msra.gmra.mrb[14].mxu0 %v1293_v12  ;;  %1932 = vmatmul.mubr.f32.vlgmr.msra.gmra.mrb[14].mxu1 %v1293_v12 }
 0x851   :  { %v1366_v7 = vpop.f32.mrb[14].mxu0  ;;  %v1437_v8 = vpop.f32.mrb[14].mxu1 }
 0x852   :  { %v1441_v11 = vadd.f32 %v1366_v7, %v1297_v17  ;;  %v1368_v13 = vpop.f32.mrb[15].mxu0  ;;  %v1933_v14 = vpop.f32.mrb[15].mxu1  ;;  %v1455_v27 = vadd.f32 %v2804_v36, %v1437_v8 }
 0x853   :  { %v1448_v20 = vadd.f32 %v1368_v13, %v1298_v19 }
 0x854   :  { %v1516_v18 = vmul.f32 -1.442695, %v1441_v11 }
 0x855   :  { %v1517_v22 = vmul.f32 -1.442695, %v1448_v20 }
 0x856   :  { %2464 = vpow2.f32 %v1516_v18 }
 0x857   :  { %2466 = vpow2.f32 %v1517_v22 }
 0x860   :  { %v2465_v24 = vpop.eup %2464 }
 0x861   :  { %v1445_v25 = vadd.f32 1.0, %v2465_v24  ;;  %v2467_v26 = vpop.eup %2466 }
 0x862   :  { %v1452_v37 = vadd.f32 1.0, %v2467_v26 }
 0x863   :  { %2468 = vrcp.f32 %v1445_v25 }
 0x86d   :  { %v2469_v28 = vpop.eup %2468 }
 0x86e   :  { %v1456_v31 = vmul.f32 %v2469_v28, %v1455_v27 }
 0x870   :  { %v1457_v33 = vadd.f32 %v1456_v31, %v1299_v30 }
 0x872   :  { %2470 = vtanh.f32 %v1457_v33 }
 0x873   :  { %2472 = vrcp.f32 %v1452_v37 }
 0x87c   :  { %v2471_v38 = vpop.eup %2470 }
 0x87d   :  { %v1459_v39 = vsub.f32 %v1293_v12, %v2471_v38  ;;  %v2473_v40 = vpop.eup %2472 }
 0x87f   :  { %v1460_v42 = vmul.f32 %v2473_v40, %v1459_v39 }
 0x881   :  { %v1461_v45 = vadd.f32 %v2471_v38, %v1460_v42 }
 0x883   :  { %1463 = vst [vmem:[#allocation9 + $0x38] sm:$0xff] %v1461_v45  ;;  %1468 = vst [vmem:[#allocation10] sm:$0xff] %v1461_v45 }
 0x884   :  { %2551 = shalt.err (!%p2548_p0)
}
 0x885   :  { %s2552_s11 = scalar_lea.hbm %s3094_s4, 1024 }
 0x886   :  { %p2553_p1 = scmp.ne.s32.totalorder %s3094_s4, %s2552_s11  ;;  %p2556_p2 = scmp.lt.u32.totalorder %s2552_s11, %s3094_s4 }
 0x888   :  { %p2558_p3 = pnand %p2556_p2, %p2553_p1 }
 0x88a   :  { %2561 = shalt.err (!%p2558_p3)
}
 0x88b   :  { %s2602_s15 = smov 128   ;;  %s2603_s16 = smov 8  }
 0x88c   :  { %1480 = dma.vmem_to_hbm [thread:$0]  %s1475_s30, 1024, %s3094_s4, [#allocation5], %s2602_s15, %s2602_s15, %s2603_s16  }
 0x88d   :  { %s2562_s19 = scalar_lea.vmem %s3059_s7, 128  ;;  %p2567_p5 = scmp.lt.s32.totalorder %s3059_s7, %s3059_s7 }
 0x88e   :  { %p2563_p4 = scmp.ne.s32.totalorder %s3059_s7, %s2562_s19  ;;  %p2568_p6 = scmp.lt.s32.totalorder %s2562_s19, %s2562_s19 }
 0x890   :  { %p2569_p7 = por %p2568_p6, %p2567_p5 }
 0x892   :  { %p2570_p8 = pnand %p2569_p7, %p2563_p4 }
 0x894   :  { %2573 = shalt.err (!%p2570_p8)
}
 0x895   :  { %s2574_s23 = scalar_lea.hbm %s3095_s5, 128 }
 0x896   :  { %p2575_p9 = scmp.ne.s32.totalorder %s3095_s5, %s2574_s23  ;;  %p2578_p10 = scmp.lt.u32.totalorder %s2574_s23, %s3095_s5 }
 0x898   :  { %p2580_p11 = pnand %p2578_p10, %p2575_p9 }
 0x89a   :  { %2583 = shalt.err (!%p2580_p11)
}
 0x89b   :  { %1490 = dma.vmem_to_hbm [thread:$0]  %s3059_s7, 128, %s3095_s5, [#allocation11]  }
 0x89c   :  { %2588 = dma.done.wait [#allocation5], 1024  }
 0x89d   :  { %2589 = vsyncadd [#allocation5], 4294966272 }
 0x89e   :  { %2590 = dma.done.wait [#allocation11], 128  }
 0x89f   :  { %2591 = vsyncadd [#allocation11], 4294967168 }
 0x8a0   :  { %1497 = vsyncpa [#allocation4], 1 }
 0x8a1   :  { %1498 = vsyncpa [#allocation7], 1 }
 0x8a2   :  { %1499 = vsyncpa [#allocation5], 1 }
 0x8a3   :  { %1500 = vsyncpa [#allocation11], 1 }

</bundles_post_ra>
